<compile_context>
chip_gen: v5e
topology: v5e:2x2
jax: 0.10.0
libtpu: 0.0.40
codegen_flags: <defaults>
</compile_context>

<pallas_src>
import functools

import jax
import jax.numpy as jnp
from jax.experimental import pallas as pl
from jax.experimental.pallas import tpu as pltpu


# ----------------------------- Pallas kernel -------------------------------

def chain_kernel(xf_ref, mask_ref, w_ref, p_ref, out_ref, ext_ref,
                 *, K, Wp, Lp, M0, dilations):
    """Whole dilation chain for one image in a lane-dense flattened-frame layout.

    xf_ref:   (1, Cp, Lp)          framed input, Lp = round_up(Hp*Wp, 128)
    mask_ref: (Cp, Lp)             1.0 on the HxW interior of the frame, else 0.0
    w_ref:    (nb, 2, Cp, K*K*Cp)  BN-scale-folded conv weights (conv1, conv2)
    p_ref:    (nb, 3, Cp, 1)       [sh1, s2, sh2]: folded shifts / residual BN scale
    out_ref:  (nb, 1, Cp, Lp)      per-block skip outputs (framed, zero border)
    ext_ref:  (Cp, Lp + 2*M0)      VMEM scratch: frame + lane margins so every conv
                                   tap is a plain static lane-window load
    """
    # Margins (never written below) must read as zero; zero the scratch once.
    @pl.when(pl.program_id(0) == 0)
    def _zero_scratch():
        ext_ref[...] = jnp.zeros_like(ext_ref)

    mask = mask_ref[...]                                        # (Cp, Lp)

    def dilated_conv(val, w_mat, d):
        # Stage the framed activation, gather the K*K shifted copies as static
        # lane-window loads, and do a single (Cp, K*K*Cp)@(K*K*Cp, Lp) MXU pass.
        ext_ref[:, M0:M0 + Lp] = val
        pieces = []
        for i in range(K):                                      # static unroll
            for j in range(K):
                s = (i - K // 2) * d * Wp + (j - K // 2) * d    # flat tap offset
                pieces.append(ext_ref[:, M0 + s:M0 + s + Lp])   # (Cp, Lp)
        patch = jnp.concatenate(pieces, axis=0)                 # (K*K*Cp, Lp)
        return jnp.dot(w_mat, patch,
                       preferred_element_type=jnp.float32,
                       precision=jax.lax.Precision.HIGHEST)     # (Cp, Lp)

    x = xf_ref[0]                                               # (Cp, Lp) f32
    for b, d in enumerate(dilations):                           # static unroll
        w1 = w_ref[b, 0]                                        # (Cp, K*K*Cp)
        w2 = w_ref[b, 1]
        sh1 = p_ref[b, 0]                                       # (Cp, 1)
        s2 = p_ref[b, 1]
        sh2 = p_ref[b, 2]

        # h = relu(BN1(conv1(x) + b1));  BN1 scale folded into w1, bias into sh1.
        h = jnp.maximum(dilated_conv(x, w1, d) + sh1, 0.0) * mask
        # y = relu(BN2(x + conv2(h) + b2)); BN2 scale folded into w2 and s2.
        y = jnp.maximum(x * s2 + dilated_conv(h, w2, d) + sh2, 0.0) * mask

        out_ref[b, 0] = y.astype(out_ref.dtype)
        x = y


# ----------------------------- pallas_call glue -----------------------------

@functools.partial(jax.jit, static_argnames=("dilations", "K"))
def dilated_convolutions2(x_nchw, w_all, p_all, *, dilations, K):
    """x_nchw: (N, C, H, W). Returns (out, skips) in NCHW like the PyTorch module."""
    N, C, H, W = x_nchw.shape
    n_blocks, _, Cp, KKCp = w_all.shape
    assert KKCp == K * K * Cp
    assert n_blocks == len(dilations)
    Pmax = max(dilations)
    Hp, Wp = H + 2 * Pmax, W + 2 * Pmax
    L = Hp * Wp
    Lp = ((L + 127) // 128) * 128              # lane-dense: multiple of 128
    M0 = 128                                   # lane margin (>= Pmax*Wp + Pmax)
    assert M0 >= Pmax * Wp + Pmax

    # Embed the input into a zero frame, pad channels to Cp (sublane-aligned),
    # flatten spatial so the lane axis is dense, pad lanes to a 128 multiple.
    xf = jnp.zeros((N, Cp, Hp, Wp), jnp.float32)
    xf = xf.at[:, :C, Pmax:Pmax + H, Pmax:Pmax + W].set(x_nchw.astype(jnp.float32))
    xf = jnp.pad(xf.reshape(N, Cp, L), ((0, 0), (0, 0), (0, Lp - L)))

    # Interior-of-frame mask, precomputed on the host side of the trace
    # (avoids in-kernel integer div/mod for row/col extraction).
    rr = jnp.arange(Hp)
    cc = jnp.arange(Wp)
    m2d = (((rr >= Pmax) & (rr < Pmax + H))[:, None]
           & ((cc >= Pmax) & (cc < Pmax + W))[None, :])
    m1d = jnp.pad(m2d.reshape(L), (0, Lp - L))
    mask = jnp.broadcast_to(m1d[None, :], (Cp, Lp)).astype(jnp.float32)

    kernel = functools.partial(
        chain_kernel, K=K, Wp=Wp, Lp=Lp, M0=M0,
        dilations=tuple(int(d) for d in dilations))

    # TODO(synk): at production H/W add a spatial row-strip grid axis (with halo)
    # so the pipeline has >2 steps and tiles fit v7x's 64 MiB VMEM; at 16x16x4
    # the whole chain fits comfortably in VMEM per image.
    out = pl.pallas_call(
        kernel,
        out_shape=jax.ShapeDtypeStruct((n_blocks, N, Cp, Lp), jnp.float32),
        grid=(N,),
        in_specs=[
            pl.BlockSpec((1, Cp, Lp), lambda n: (n, 0, 0)),
            pl.BlockSpec((Cp, Lp), lambda n: (0, 0)),
            pl.BlockSpec((n_blocks, 2, Cp, KKCp), lambda n: (0, 0, 0, 0)),
            pl.BlockSpec((n_blocks, 3, Cp, 1), lambda n: (0, 0, 0, 0)),
        ],
        out_specs=pl.BlockSpec((n_blocks, 1, Cp, Lp), lambda n: (0, n, 0, 0)),
        scratch_shapes=[pltpu.VMEM((Cp, Lp + 2 * M0), jnp.float32)],
        compiler_params=pltpu.CompilerParams(
            dimension_semantics=("parallel",)),
    )(xf, mask, w_all, p_all)

    # De-pad once: (nb, N, Cp, Lp) -> (nb, N, C, H, W); layout is already NCHW.
    skips = out[..., :L].reshape(n_blocks, N, Cp, Hp, Wp)[
        :, :, :C, Pmax:Pmax + H, Pmax:Pmax + W]
    skips_list = [skips[b] for b in range(n_blocks)]
    return skips_list[-1], skips_list


# ----------------------------- param init & packing -------------------------

def make_block_params(key, C, K):
    """Raw PyTorch-style parameters for one ResidualBlock (eval mode)."""
    ks = jax.random.split(key, 12)
    w1 = 0.1 * jax.random.normal(ks[0], (C, C, K, K), jnp.float32)   # OIHW
    w2 = 0.1 * jax.random.normal(ks[1], (C, C, K, K), jnp.float32)
    b1 = 0.1 * jax.random.normal(ks[2], (C,), jnp.float32)
    b2 = 0.1 * jax.random.normal(ks[3], (C,), jnp.float32)
    g1 = 1.0 + 0.1 * jax.random.normal(ks[4], (C,), jnp.float32)
    be1 = 0.1 * jax.random.normal(ks[5], (C,), jnp.float32)
    m1 = 0.1 * jax.random.normal(ks[6], (C,), jnp.float32)
    v1 = 1.0 + 0.1 * jnp.abs(jax.random.normal(ks[7], (C,), jnp.float32))
    g2 = 1.0 + 0.1 * jax.random.normal(ks[8], (C,), jnp.float32)
    be2 = 0.1 * jax.random.normal(ks[9], (C,), jnp.float32)
    m2 = 0.1 * jax.random.normal(ks[10], (C,), jnp.float32)
    v2 = 1.0 + 0.1 * jnp.abs(jax.random.normal(ks[11], (C,), jnp.float32))
    return dict(w1_oihw=w1, w2_oihw=w2, b1=b1, b2=b2,
                g1=g1, be1=be1, m1=m1, v1=v1,
                g2=g2, be2=be2, m2=m2, v2=v2,
                w1_hwio=jnp.transpose(w1, (2, 3, 1, 0)),
                w2_hwio=jnp.transpose(w2, (2, 3, 1, 0)))


def pack_params(raw_params, C, Cp, K, eps=1e-5):
    """Fold BN scale into the conv weights and conv bias + BN shift into one
    per-channel shift; pad channels to Cp (padded channels stay exactly zero).

    Returns w_all (nb, 2, Cp, K*K*Cp) and p_all (nb, 3, Cp, 1) = [sh1, s2, sh2]."""
    w_blocks, p_blocks = [], []
    for p in raw_params:
        s1 = p["g1"] / jnp.sqrt(p["v1"] + eps)
        s2 = p["g2"] / jnp.sqrt(p["v2"] + eps)
        sh1 = (p["b1"] - p["m1"]) * s1 + p["be1"]
        sh2 = (p["b2"] - p["m2"]) * s2 + p["be2"]

        def wmat(w_oihw, scale):
            w = w_oihw * scale[:, None, None, None]            # per-out-channel
            wp = jnp.zeros((Cp, Cp, K, K), jnp.float32).at[:C, :C].set(w)
            # column order = (i*K + j)*Cp + ci, matching the kernel's tap stacking
            return jnp.transpose(wp, (0, 2, 3, 1)).reshape(Cp, K * K * Cp)

        def cpad(v):
            return jnp.zeros((Cp,), jnp.float32).at[:C].set(v).reshape(Cp, 1)

        w_blocks.append(jnp.stack([wmat(p["w1_oihw"], s1),
                                   wmat(p["w2_oihw"], s2)], axis=0))
        p_blocks.append(jnp.stack([cpad(sh1), cpad(s2), cpad(sh2)], axis=0))
    return jnp.stack(w_blocks, axis=0), jnp.stack(p_blocks, axis=0)


# ----------------------------- pure-JAX reference ---------------------------

def ref_dilated_convolutions2(x_nchw, raw_params, dilations, eps=1e-5):
    """Unfolded reference matching the PyTorch forward literally (eval mode)."""
    x = jnp.transpose(x_nchw, (0, 2, 3, 1))                    # NHWC

    def conv(v, w_hwio, b, d):
        out = jax.lax.conv_general_dilated(
            v, w_hwio, window_strides=(1, 1), padding=[(d, d), (d, d)],
            rhs_dilation=(d, d), dimension_numbers=("NHWC", "HWIO", "NHWC"),
            precision=jax.lax.Precision.HIGHEST)
        return out + b

    skips = []
    for d, p in zip(dilations, raw_params):
        h = conv(x, p["w1_hwio"], p["b1"], d)
        h = (h - p["m1"]) / jnp.sqrt(p["v1"] + eps) * p["g1"] + p["be1"]
        h = jnp.maximum(h, 0.0)
        t = x + conv(h, p["w2_hwio"], p["b2"], d)
        t = (t - p["m2"]) / jnp.sqrt(p["v2"] + eps) * p["g2"] + p["be2"]
        x = jnp.maximum(t, 0.0)
        skips.append(x)
    to_nchw = lambda a: jnp.transpose(a, (0, 3, 1, 2))
    return to_nchw(x), [to_nchw(s) for s in skips]


# ---------------------------------- main ------------------------------------

if __name__ == "__main__":
    n_channels = 4
    n_convolutions = 2
    kernel_size = 3
    N, H, W = 2, 16, 16
    dilations = tuple(2 ** (k + 1) for k in range(n_convolutions))   # (2, 4)
    Cp = ((n_channels + 7) // 8) * 8                                 # pad C -> 8

    root = jax.random.PRNGKey(0)
    kx, kp = jax.random.split(root)
    x_nchw = jax.random.normal(kx, (N, n_channels, H, W), jnp.float32)

    pkeys = jax.random.split(kp, n_convolutions)
    raw = [make_block_params(k, n_channels, kernel_size) for k in pkeys]
    w_all, p_all = pack_params(raw, n_channels, Cp, kernel_size)

    out, skips = dilated_convolutions2(x_nchw, w_all, p_all,
                                       dilations=dilations, K=kernel_size)
    out = jax.block_until_ready(out)
    skips = [jax.block_until_ready(s) for s in skips]

    # Correctness check against a plain-JAX reference (tight f32 tolerance).
    ref_out, ref_skips = ref_dilated_convolutions2(x_nchw, raw, dilations)
    assert out.shape == (N, n_channels, H, W)
    assert len(skips) == n_convolutions
    assert jnp.allclose(out, ref_out, atol=1e-4, rtol=1e-4)
    for s, rs in zip(skips, ref_skips):
        assert s.shape == (N, n_channels, H, W)
        assert jnp.allclose(s, rs, atol=1e-4, rtol=1e-4)

    print("KERNEL_OK")
</pallas_src>

<mosaic_0001>
module attributes {stable_mosaic.version = 11 : i64} {
  func.func @chain_kernel(%arg0: i32, %arg1: memref<1x8x640xf32, #tpu.memory_space<vmem>>, %arg2: memref<8x640xf32, #tpu.memory_space<vmem>>, %arg3: memref<2x2x8x72xf32, #tpu.memory_space<vmem>>, %arg4: memref<2x3x8x1xf32, #tpu.memory_space<vmem>>, %arg5: memref<2x1x8x640xf32, #tpu.memory_space<vmem>>, %arg6: memref<8x896xf32, #tpu.memory_space<vmem>>) attributes {dimension_semantics = [#tpu.dimension_semantics<parallel>], iteration_bounds = array<i64: 2>, scalar_prefetch = 0 : i64, scratch_operands = 1 : i64, tpu.core_type = #tpu.core_type<tc>, window_params = [{transform_indices = @transform_0, window_bounds = array<i64: 1, 8, 640>}, {pipeline_mode = #tpu.pipeline_mode<synchronous>, transform_indices = @transform_1, window_bounds = array<i64: 8, 640>}, {pipeline_mode = #tpu.pipeline_mode<synchronous>, transform_indices = @transform_2, window_bounds = array<i64: 2, 2, 8, 72>}, {pipeline_mode = #tpu.pipeline_mode<synchronous>, transform_indices = @transform_3, window_bounds = array<i64: 2, 3, 8, 1>}, {transform_indices = @transform_4, window_bounds = array<i64: 2, 1, 8, 640>}]} {
    %c0_i32 = arith.constant 0 : i32
    %0 = arith.cmpi eq, %arg0, %c0_i32 : i32
    %1 = arith.extui %0 : i1 to i32
    %c0_i32_0 = arith.constant 0 : i32
    %2 = arith.cmpi ne, %1, %c0_i32_0 : i32
    scf.if %2 {
      %cst_121 = arith.constant 0.000000e+00 : f32
      %106 = vector.broadcast %cst_121 : f32 to vector<8x896xf32>
      %c0_122 = arith.constant 0 : index
      %c0_123 = arith.constant 0 : index
      %107 = vector.load %arg6[%c0_122, %c0_123] : memref<8x896xf32, #tpu.memory_space<vmem>>, vector<8x896xf32>
      tpu.vector_store %arg6[%c0_122, %c0_123], %106 {strides = array<i32>} : memref<8x896xf32, #tpu.memory_space<vmem>>, vector<8x896xf32>,
    } else {
    }
    %c0 = arith.constant 0 : index
    %c0_1 = arith.constant 0 : index
    %3 = vector.load %arg2[%c0, %c0_1] : memref<8x640xf32, #tpu.memory_space<vmem>>, vector<8x640xf32>
    %c0_2 = arith.constant 0 : index
    %c0_3 = arith.constant 0 : index
    %c0_4 = arith.constant 0 : index
    %4 = vector.load %arg1[%c0_2, %c0_3, %c0_4] : memref<1x8x640xf32, #tpu.memory_space<vmem>>, vector<1x8x640xf32>
    %5 = vector.shape_cast %4 : vector<1x8x640xf32> to vector<8x640xf32>
    %c0_5 = arith.constant 0 : index
    %c0_6 = arith.constant 0 : index
    %c0_7 = arith.constant 0 : index
    %c0_8 = arith.constant 0 : index
    %6 = vector.load %arg3[%c0_5, %c0_6, %c0_7, %c0_8] : memref<2x2x8x72xf32, #tpu.memory_space<vmem>>, vector<1x1x8x72xf32>
    %7 = vector.shape_cast %6 : vector<1x1x8x72xf32> to vector<8x72xf32>
    %c0_9 = arith.constant 0 : index
    %c1 = arith.constant 1 : index
    %c0_10 = arith.constant 0 : index
    %c0_11 = arith.constant 0 : index
    %8 = vector.load %arg3[%c0_9, %c1, %c0_10, %c0_11] : memref<2x2x8x72xf32, #tpu.memory_space<vmem>>, vector<1x1x8x72xf32>
    %9 = vector.shape_cast %8 : vector<1x1x8x72xf32> to vector<8x72xf32>
    %c0_12 = arith.constant 0 : index
    %c0_13 = arith.constant 0 : index
    %c0_14 = arith.constant 0 : index
    %c0_15 = arith.constant 0 : index
    %10 = vector.load %arg4[%c0_12, %c0_13, %c0_14, %c0_15] : memref<2x3x8x1xf32, #tpu.memory_space<vmem>>, vector<1x1x8x1xf32>
    %11 = vector.shape_cast %10 : vector<1x1x8x1xf32> to vector<8x1xf32>
    %c0_16 = arith.constant 0 : index
    %c1_17 = arith.constant 1 : index
    %c0_18 = arith.constant 0 : index
    %c0_19 = arith.constant 0 : index
    %12 = vector.load %arg4[%c0_16, %c1_17, %c0_18, %c0_19] : memref<2x3x8x1xf32, #tpu.memory_space<vmem>>, vector<1x1x8x1xf32>
    %13 = vector.shape_cast %12 : vector<1x1x8x1xf32> to vector<8x1xf32>
    %c0_20 = arith.constant 0 : index
    %c2 = arith.constant 2 : index
    %c0_21 = arith.constant 0 : index
    %c0_22 = arith.constant 0 : index
    %14 = vector.load %arg4[%c0_20, %c2, %c0_21, %c0_22] : memref<2x3x8x1xf32, #tpu.memory_space<vmem>>, vector<1x1x8x1xf32>
    %15 = vector.shape_cast %14 : vector<1x1x8x1xf32> to vector<8x1xf32>
    %c0_23 = arith.constant 0 : index
    %c128 = arith.constant 128 : index
    %16 = vector.load %arg6[%c0_23, %c128] : memref<8x896xf32, #tpu.memory_space<vmem>>, vector<8x640xf32>
    tpu.vector_store %arg6[%c0_23, %c128], %5 {strides = array<i32>} : memref<8x896xf32, #tpu.memory_space<vmem>>, vector<8x640xf32>,
    %c0_24 = arith.constant 0 : index
    %c78 = arith.constant 78 : index
    %17 = vector.load %arg6[%c0_24, %c78] : memref<8x896xf32, #tpu.memory_space<vmem>>, vector<8x640xf32>
    %c0_25 = arith.constant 0 : index
    %c80 = arith.constant 80 : index
    %18 = vector.load %arg6[%c0_25, %c80] : memref<8x896xf32, #tpu.memory_space<vmem>>, vector<8x640xf32>
    %c0_26 = arith.constant 0 : index
    %c82 = arith.constant 82 : index
    %19 = vector.load %arg6[%c0_26, %c82] : memref<8x896xf32, #tpu.memory_space<vmem>>, vector<8x640xf32>
    %c0_27 = arith.constant 0 : index
    %c126 = arith.constant 126 : index
    %20 = vector.load %arg6[%c0_27, %c126] : memref<8x896xf32, #tpu.memory_space<vmem>>, vector<8x640xf32>
    %c0_28 = arith.constant 0 : index
    %c128_29 = arith.constant 128 : index
    %21 = vector.load %arg6[%c0_28, %c128_29] : memref<8x896xf32, #tpu.memory_space<vmem>>, vector<8x640xf32>
    %c0_30 = arith.constant 0 : index
    %c130 = arith.constant 130 : index
    %22 = vector.load %arg6[%c0_30, %c130] : memref<8x896xf32, #tpu.memory_space<vmem>>, vector<8x640xf32>
    %c0_31 = arith.constant 0 : index
    %c174 = arith.constant 174 : index
    %23 = vector.load %arg6[%c0_31, %c174] : memref<8x896xf32, #tpu.memory_space<vmem>>, vector<8x640xf32>
    %c0_32 = arith.constant 0 : index
    %c176 = arith.constant 176 : index
    %24 = vector.load %arg6[%c0_32, %c176] : memref<8x896xf32, #tpu.memory_space<vmem>>, vector<8x640xf32>
    %c0_33 = arith.constant 0 : index
    %c178 = arith.constant 178 : index
    %25 = vector.load %arg6[%c0_33, %c178] : memref<8x896xf32, #tpu.memory_space<vmem>>, vector<8x640xf32>
    %26 = tpu.concatenate %17, %18, %19, %20, %21, %22, %23, %24, %25 in 0 : vector<8x640xf32>, vector<8x640xf32>, vector<8x640xf32>, vector<8x640xf32>, vector<8x640xf32>, vector<8x640xf32>, vector<8x640xf32>, vector<8x640xf32>, vector<8x640xf32> -> vector<72x640xf32>
    %cst = arith.constant dense<0.000000e+00> : vector<8x640xf32>
    %27 = tpu.matmul %7, %26, %cst {dimension_numbers = #tpu.dot_dimension_numbers<[1], [0], [0], [1], [0, 0, 1, 1], [], []>, precision = #tpu.contract_precision<fp32>} : vector<8x72xf32>, vector<72x640xf32>, vector<8x640xf32> -> vector<8x640xf32>
    %28 = vector.broadcast %11 : vector<8x1xf32> to vector<8x640xf32>
    %29 = arith.addf %27, %28 : vector<8x640xf32>
    %cst_34 = arith.constant 0.000000e+00 : f32
    %30 = vector.broadcast %cst_34 : f32 to vector<8x640xf32>
    %31 = arith.maximumf %29, %30 : vector<8x640xf32>
    %32 = arith.mulf %31, %3 : vector<8x640xf32>
    %33 = vector.broadcast %13 : vector<8x1xf32> to vector<8x640xf32>
    %34 = arith.mulf %5, %33 : vector<8x640xf32>
    %c0_35 = arith.constant 0 : index
    %c128_36 = arith.constant 128 : index
    %35 = vector.load %arg6[%c0_35, %c128_36] : memref<8x896xf32, #tpu.memory_space<vmem>>, vector<8x640xf32>
    tpu.vector_store %arg6[%c0_35, %c128_36], %32 {strides = array<i32>} : memref<8x896xf32, #tpu.memory_space<vmem>>, vector<8x640xf32>,
    %c0_37 = arith.constant 0 : index
    %c78_38 = arith.constant 78 : index
    %36 = vector.load %arg6[%c0_37, %c78_38] : memref<8x896xf32, #tpu.memory_space<vmem>>, vector<8x640xf32>
    %c0_39 = arith.constant 0 : index
    %c80_40 = arith.constant 80 : index
    %37 = vector.load %arg6[%c0_39, %c80_40] : memref<8x896xf32, #tpu.memory_space<vmem>>, vector<8x640xf32>
    %c0_41 = arith.constant 0 : index
    %c82_42 = arith.constant 82 : index
    %38 = vector.load %arg6[%c0_41, %c82_42] : memref<8x896xf32, #tpu.memory_space<vmem>>, vector<8x640xf32>
    %c0_43 = arith.constant 0 : index
    %c126_44 = arith.constant 126 : index
    %39 = vector.load %arg6[%c0_43, %c126_44] : memref<8x896xf32, #tpu.memory_space<vmem>>, vector<8x640xf32>
    %c0_45 = arith.constant 0 : index
    %c128_46 = arith.constant 128 : index
    %40 = vector.load %arg6[%c0_45, %c128_46] : memref<8x896xf32, #tpu.memory_space<vmem>>, vector<8x640xf32>
    %c0_47 = arith.constant 0 : index
    %c130_48 = arith.constant 130 : index
    %41 = vector.load %arg6[%c0_47, %c130_48] : memref<8x896xf32, #tpu.memory_space<vmem>>, vector<8x640xf32>
    %c0_49 = arith.constant 0 : index
    %c174_50 = arith.constant 174 : index
    %42 = vector.load %arg6[%c0_49, %c174_50] : memref<8x896xf32, #tpu.memory_space<vmem>>, vector<8x640xf32>
    %c0_51 = arith.constant 0 : index
    %c176_52 = arith.constant 176 : index
    %43 = vector.load %arg6[%c0_51, %c176_52] : memref<8x896xf32, #tpu.memory_space<vmem>>, vector<8x640xf32>
    %c0_53 = arith.constant 0 : index
    %c178_54 = arith.constant 178 : index
    %44 = vector.load %arg6[%c0_53, %c178_54] : memref<8x896xf32, #tpu.memory_space<vmem>>, vector<8x640xf32>
    %45 = tpu.concatenate %36, %37, %38, %39, %40, %41, %42, %43, %44 in 0 : vector<8x640xf32>, vector<8x640xf32>, vector<8x640xf32>, vector<8x640xf32>, vector<8x640xf32>, vector<8x640xf32>, vector<8x640xf32>, vector<8x640xf32>, vector<8x640xf32> -> vector<72x640xf32>
    %cst_55 = arith.constant dense<0.000000e+00> : vector<8x640xf32>
    %46 = tpu.matmul %9, %45, %cst_55 {dimension_numbers = #tpu.dot_dimension_numbers<[1], [0], [0], [1], [0, 0, 1, 1], [], []>, precision = #tpu.contract_precision<fp32>} : vector<8x72xf32>, vector<72x640xf32>, vector<8x640xf32> -> vector<8x640xf32>
    %47 = arith.addf %34, %46 : vector<8x640xf32>
    %48 = vector.broadcast %15 : vector<8x1xf32> to vector<8x640xf32>
    %49 = arith.addf %47, %48 : vector<8x640xf32>
    %cst_56 = arith.constant 0.000000e+00 : f32
    %50 = vector.broadcast %cst_56 : f32 to vector<8x640xf32>
    %51 = arith.maximumf %49, %50 : vector<8x640xf32>
    %52 = arith.mulf %51, %3 : vector<8x640xf32>
    %c0_57 = arith.constant 0 : index
    %c0_58 = arith.constant 0 : index
    %c0_59 = arith.constant 0 : index
    %c0_60 = arith.constant 0 : index
    %53 = vector.load %arg5[%c0_57, %c0_58, %c0_59, %c0_60] : memref<2x1x8x640xf32, #tpu.memory_space<vmem>>, vector<1x1x8x640xf32>
    %54 = vector.shape_cast %53 : vector<1x1x8x640xf32> to vector<8x640xf32>
    %55 = vector.shape_cast %52 : vector<8x640xf32> to vector<1x1x8x640xf32>
    tpu.vector_store %arg5[%c0_57, %c0_58, %c0_59, %c0_60], %55 {strides = array<i32>} : memref<2x1x8x640xf32, #tpu.memory_space<vmem>>, vector<1x1x8x640xf32>,
    %c1_61 = arith.constant 1 : index
    %c0_62 = arith.constant 0 : index
    %c0_63 = arith.constant 0 : index
    %c0_64 = arith.constant 0 : index
    %56 = vector.load %arg3[%c1_61, %c0_62, %c0_63, %c0_64] : memref<2x2x8x72xf32, #tpu.memory_space<vmem>>, vector<1x1x8x72xf32>
    %57 = vector.shape_cast %56 : vector<1x1x8x72xf32> to vector<8x72xf32>
    %c1_65 = arith.constant 1 : index
    %c1_66 = arith.constant 1 : index
    %c0_67 = arith.constant 0 : index
    %c0_68 = arith.constant 0 : index
    %58 = vector.load %arg3[%c1_65, %c1_66, %c0_67, %c0_68] : memref<2x2x8x72xf32, #tpu.memory_space<vmem>>, vector<1x1x8x72xf32>
    %59 = vector.shape_cast %58 : vector<1x1x8x72xf32> to vector<8x72xf32>
    %c1_69 = arith.constant 1 : index
    %c0_70 = arith.constant 0 : index
    %c0_71 = arith.constant 0 : index
    %c0_72 = arith.constant 0 : index
    %60 = vector.load %arg4[%c1_69, %c0_70, %c0_71, %c0_72] : memref<2x3x8x1xf32, #tpu.memory_space<vmem>>, vector<1x1x8x1xf32>
    %61 = vector.shape_cast %60 : vector<1x1x8x1xf32> to vector<8x1xf32>
    %c1_73 = arith.constant 1 : index
    %c1_74 = arith.constant 1 : index
    %c0_75 = arith.constant 0 : index
    %c0_76 = arith.constant 0 : index
    %62 = vector.load %arg4[%c1_73, %c1_74, %c0_75, %c0_76] : memref<2x3x8x1xf32, #tpu.memory_space<vmem>>, vector<1x1x8x1xf32>
    %63 = vector.shape_cast %62 : vector<1x1x8x1xf32> to vector<8x1xf32>
    %c1_77 = arith.constant 1 : index
    %c2_78 = arith.constant 2 : index
    %c0_79 = arith.constant 0 : index
    %c0_80 = arith.constant 0 : index
    %64 = vector.load %arg4[%c1_77, %c2_78, %c0_79, %c0_80] : memref<2x3x8x1xf32, #tpu.memory_space<vmem>>, vector<1x1x8x1xf32>
    %65 = vector.shape_cast %64 : vector<1x1x8x1xf32> to vector<8x1xf32>
    %c0_81 = arith.constant 0 : index
    %c128_82 = arith.constant 128 : index
    %66 = vector.load %arg6[%c0_81, %c128_82] : memref<8x896xf32, #tpu.memory_space<vmem>>, vector<8x640xf32>
    tpu.vector_store %arg6[%c0_81, %c128_82], %52 {strides = array<i32>} : memref<8x896xf32, #tpu.memory_space<vmem>>, vector<8x640xf32>,
    %c0_83 = arith.constant 0 : index
    %c28 = arith.constant 28 : index
    %67 = vector.load %arg6[%c0_83, %c28] : memref<8x896xf32, #tpu.memory_space<vmem>>, vector<8x640xf32>
    %c0_84 = arith.constant 0 : index
    %c32 = arith.constant 32 : index
    %68 = vector.load %arg6[%c0_84, %c32] : memref<8x896xf32, #tpu.memory_space<vmem>>, vector<8x640xf32>
    %c0_85 = arith.constant 0 : index
    %c36 = arith.constant 36 : index
    %69 = vector.load %arg6[%c0_85, %c36] : memref<8x896xf32, #tpu.memory_space<vmem>>, vector<8x640xf32>
    %c0_86 = arith.constant 0 : index
    %c124 = arith.constant 124 : index
    %70 = vector.load %arg6[%c0_86, %c124] : memref<8x896xf32, #tpu.memory_space<vmem>>, vector<8x640xf32>
    %c0_87 = arith.constant 0 : index
    %c128_88 = arith.constant 128 : index
    %71 = vector.load %arg6[%c0_87, %c128_88] : memref<8x896xf32, #tpu.memory_space<vmem>>, vector<8x640xf32>
    %c0_89 = arith.constant 0 : index
    %c132 = arith.constant 132 : index
    %72 = vector.load %arg6[%c0_89, %c132] : memref<8x896xf32, #tpu.memory_space<vmem>>, vector<8x640xf32>
    %c0_90 = arith.constant 0 : index
    %c220 = arith.constant 220 : index
    %73 = vector.load %arg6[%c0_90, %c220] : memref<8x896xf32, #tpu.memory_space<vmem>>, vector<8x640xf32>
    %c0_91 = arith.constant 0 : index
    %c224 = arith.constant 224 : index
    %74 = vector.load %arg6[%c0_91, %c224] : memref<8x896xf32, #tpu.memory_space<vmem>>, vector<8x640xf32>
    %c0_92 = arith.constant 0 : index
    %c228 = arith.constant 228 : index
    %75 = vector.load %arg6[%c0_92, %c228] : memref<8x896xf32, #tpu.memory_space<vmem>>, vector<8x640xf32>
    %76 = tpu.concatenate %67, %68, %69, %70, %71, %72, %73, %74, %75 in 0 : vector<8x640xf32>, vector<8x640xf32>, vector<8x640xf32>, vector<8x640xf32>, vector<8x640xf32>, vector<8x640xf32>, vector<8x640xf32>, vector<8x640xf32>, vector<8x640xf32> -> vector<72x640xf32>
    %cst_93 = arith.constant dense<0.000000e+00> : vector<8x640xf32>
    %77 = tpu.matmul %57, %76, %cst_93 {dimension_numbers = #tpu.dot_dimension_numbers<[1], [0], [0], [1], [0, 0, 1, 1], [], []>, precision = #tpu.contract_precision<fp32>} : vector<8x72xf32>, vector<72x640xf32>, vector<8x640xf32> -> vector<8x640xf32>
    %78 = vector.broadcast %61 : vector<8x1xf32> to vector<8x640xf32>
    %79 = arith.addf %77, %78 : vector<8x640xf32>
    %cst_94 = arith.constant 0.000000e+00 : f32
    %80 = vector.broadcast %cst_94 : f32 to vector<8x640xf32>
    %81 = arith.maximumf %79, %80 : vector<8x640xf32>
    %82 = arith.mulf %81, %3 : vector<8x640xf32>
    %83 = vector.broadcast %63 : vector<8x1xf32> to vector<8x640xf32>
    %84 = arith.mulf %52, %83 : vector<8x640xf32>
    %c0_95 = arith.constant 0 : index
    %c128_96 = arith.constant 128 : index
    %85 = vector.load %arg6[%c0_95, %c128_96] : memref<8x896xf32, #tpu.memory_space<vmem>>, vector<8x640xf32>
    tpu.vector_store %arg6[%c0_95, %c128_96], %82 {strides = array<i32>} : memref<8x896xf32, #tpu.memory_space<vmem>>, vector<8x640xf32>,
    %c0_97 = arith.constant 0 : index
    %c28_98 = arith.constant 28 : index
    %86 = vector.load %arg6[%c0_97, %c28_98] : memref<8x896xf32, #tpu.memory_space<vmem>>, vector<8x640xf32>
    %c0_99 = arith.constant 0 : index
    %c32_100 = arith.constant 32 : index
    %87 = vector.load %arg6[%c0_99, %c32_100] : memref<8x896xf32, #tpu.memory_space<vmem>>, vector<8x640xf32>
    %c0_101 = arith.constant 0 : index
    %c36_102 = arith.constant 36 : index
    %88 = vector.load %arg6[%c0_101, %c36_102] : memref<8x896xf32, #tpu.memory_space<vmem>>, vector<8x640xf32>
    %c0_103 = arith.constant 0 : index
    %c124_104 = arith.constant 124 : index
    %89 = vector.load %arg6[%c0_103, %c124_104] : memref<8x896xf32, #tpu.memory_space<vmem>>, vector<8x640xf32>
    %c0_105 = arith.constant 0 : index
    %c128_106 = arith.constant 128 : index
    %90 = vector.load %arg6[%c0_105, %c128_106] : memref<8x896xf32, #tpu.memory_space<vmem>>, vector<8x640xf32>
    %c0_107 = arith.constant 0 : index
    %c132_108 = arith.constant 132 : index
    %91 = vector.load %arg6[%c0_107, %c132_108] : memref<8x896xf32, #tpu.memory_space<vmem>>, vector<8x640xf32>
    %c0_109 = arith.constant 0 : index
    %c220_110 = arith.constant 220 : index
    %92 = vector.load %arg6[%c0_109, %c220_110] : memref<8x896xf32, #tpu.memory_space<vmem>>, vector<8x640xf32>
    %c0_111 = arith.constant 0 : index
    %c224_112 = arith.constant 224 : index
    %93 = vector.load %arg6[%c0_111, %c224_112] : memref<8x896xf32, #tpu.memory_space<vmem>>, vector<8x640xf32>
    %c0_113 = arith.constant 0 : index
    %c228_114 = arith.constant 228 : index
    %94 = vector.load %arg6[%c0_113, %c228_114] : memref<8x896xf32, #tpu.memory_space<vmem>>, vector<8x640xf32>
    %95 = tpu.concatenate %86, %87, %88, %89, %90, %91, %92, %93, %94 in 0 : vector<8x640xf32>, vector<8x640xf32>, vector<8x640xf32>, vector<8x640xf32>, vector<8x640xf32>, vector<8x640xf32>, vector<8x640xf32>, vector<8x640xf32>, vector<8x640xf32> -> vector<72x640xf32>
    %cst_115 = arith.constant dense<0.000000e+00> : vector<8x640xf32>
    %96 = tpu.matmul %59, %95, %cst_115 {dimension_numbers = #tpu.dot_dimension_numbers<[1], [0], [0], [1], [0, 0, 1, 1], [], []>, precision = #tpu.contract_precision<fp32>} : vector<8x72xf32>, vector<72x640xf32>, vector<8x640xf32> -> vector<8x640xf32>
    %97 = arith.addf %84, %96 : vector<8x640xf32>
    %98 = vector.broadcast %65 : vector<8x1xf32> to vector<8x640xf32>
    %99 = arith.addf %97, %98 : vector<8x640xf32>
    %cst_116 = arith.constant 0.000000e+00 : f32
    %100 = vector.broadcast %cst_116 : f32 to vector<8x640xf32>
    %101 = arith.maximumf %99, %100 : vector<8x640xf32>
    %102 = arith.mulf %101, %3 : vector<8x640xf32>
    %c1_117 = arith.constant 1 : index
    %c0_118 = arith.constant 0 : index
    %c0_119 = arith.constant 0 : index
    %c0_120 = arith.constant 0 : index
    %103 = vector.load %arg5[%c1_117, %c0_118, %c0_119, %c0_120] : memref<2x1x8x640xf32, #tpu.memory_space<vmem>>, vector<1x1x8x640xf32>
    %104 = vector.shape_cast %103 : vector<1x1x8x640xf32> to vector<8x640xf32>
    %105 = vector.shape_cast %102 : vector<8x640xf32> to vector<1x1x8x640xf32>
    tpu.vector_store %arg5[%c1_117, %c0_118, %c0_119, %c0_120], %105 {strides = array<i32>} : memref<2x1x8x640xf32, #tpu.memory_space<vmem>>, vector<1x1x8x640xf32>,
    return
  }
  func.func @transform_0(%arg0: i32) -> (i32, i32, i32) {
    %c0_i32 = arith.constant 0 : i32
    %c0_i32_0 = arith.constant 0 : i32
    %c0_i32_1 = arith.constant 0 : i32
    return %arg0, %c0_i32, %c0_i32_0 : i32, i32, i32
  }
  func.func @transform_1(%arg0: i32) -> (i32, i32) {
    %c0_i32 = arith.constant 0 : i32
    %c0_i32_0 = arith.constant 0 : i32
    %c0_i32_1 = arith.constant 0 : i32
    return %c0_i32, %c0_i32_0 : i32, i32
  }
  func.func @transform_2(%arg0: i32) -> (i32, i32, i32, i32) {
    %c0_i32 = arith.constant 0 : i32
    %c0_i32_0 = arith.constant 0 : i32
    %c0_i32_1 = arith.constant 0 : i32
    %c0_i32_2 = arith.constant 0 : i32
    %c0_i32_3 = arith.constant 0 : i32
    return %c0_i32, %c0_i32_0, %c0_i32_1, %c0_i32_2 : i32, i32, i32, i32
  }
  func.func @transform_3(%arg0: i32) -> (i32, i32, i32, i32) {
    %c0_i32 = arith.constant 0 : i32
    %c0_i32_0 = arith.constant 0 : i32
    %c0_i32_1 = arith.constant 0 : i32
    %c0_i32_2 = arith.constant 0 : i32
    %c0_i32_3 = arith.constant 0 : i32
    return %c0_i32, %c0_i32_0, %c0_i32_1, %c0_i32_2 : i32, i32, i32, i32
  }
  func.func @transform_4(%arg0: i32) -> (i32, i32, i32, i32) {
    %c0_i32 = arith.constant 0 : i32
    %c0_i32_0 = arith.constant 0 : i32
    %c0_i32_1 = arith.constant 0 : i32
    %c0_i32_2 = arith.constant 0 : i32
    return %c0_i32, %arg0, %c0_i32_0, %c0_i32_1 : i32, i32, i32, i32
  }
}

</mosaic_0001>

<bundles_post_ra>
// kernel: dilated_convolutions2.1
= control target key start
LH: loop header
LB: loop body
LE: loop exit
PB: predicated region body
PF: predicated region fallthrough
CT: control target
= control target key end

     0   :  { %s7066_s15 = smov 0   ;;  %s7068_s16 = smov 0   ;;  %s11725_s0 = inlined_call_operand.vmem [shape: f32[2,8,640], index: 0, kind: input, shape index: {}]   ;;  %s11726_s1 = inlined_call_operand.vmem [shape: f32[8,640], index: 1, kind: input, shape index: {}]   ;;  %s11727_s2 = inlined_call_operand.vmem [shape: f32[2,2,8,72], index: 2, kind: input, shape index: {}]   ;;  %s11728_s3 = inlined_call_operand.vmem [shape: f32[2,3,8,1], index: 3, kind: input, shape index: {}]   ;;  %s11729_s4 = inlined_call_operand.vmem [shape: f32[2,2,8,640], index: 4, kind: output, shape index: {}]  }
   0x1   :  { %s7070_s17 = smov 0  }
   0x2 LB: > { %s7077_s18 = sadd.s32 4294967295, %s7022_s17   ;;  %s7079_s19 = sadd.s32 1, %s7022_s17   ;;  %s7022_s17 = sphi %s7070_s17, %s11780_s17   ;;  %s7018_s16 = sphi %s7068_s16, %s11779_s16   ;;  %s7014_s15 = sphi %s7066_s15, %s11778_s15  }
   0x3   : > { %s107_s20 = ssub.s32 %s7022_s17, %s7079_s19  ;;  %s110_s21 = sadd.s32 1, %s7018_s16 }
   0x4   : > { %p108_p0 = scmp.eq.s32.totalorder %s107_s20, 0  ;;  %p120_p1 = scmp.ne.s32.totalorder %s7018_s16, %s7014_s15 }
   0x5   : > { %p121_p2 = scmp.eq.s32.totalorder %s7077_s18, 1  ;;  %p6909_p3 = scmp.ge.s32.totalorder %s7022_s17, 1 }
   0x6   : > { %s7086_s22 = scalar_select %p108_p0, %s7018_s16, %s110_s21  }
   0x7   : > { %p7088_p4 = por %p121_p2, %p120_p1  ;;  %p162_p5 = scmp.lt.s32.totalorder %s7022_s17, 3 }
   0x9   : > { %p163_p6 = pnand %p6909_p3, %p162_p5 }
   0xa   : > { %s184_s24 = sand.u32 (!%p163_p6), 1, %s7014_s15   ;;  %p187_p7 = scmp.lt.s32.totalorder (!%p163_p6), %s7077_s18, 1 }
   0xb   : > { %166 = sbr.rel (%p163_p6) target bundleno = 2237 (0x8bd), region = 36  ;;  %p6911_p8 = scmp.ne.s32.totalorder (!%p163_p6), %s7077_s18, 0 }
   0xc   : > { %s6928_s25 = smul.u32 (!%p163_p6), 80, %s184_s24 }
   0xe   : > { %s7099_s5 = scalar_lea.vmem (!%p163_p6), [#allocation3], %s6928_s25 }
  0x10   : > { %s188_s26 = scalar_select %p187_p7, %s7077_s18, 1 }
  0x11   : > { %195 = sbr.rel (%p6911_p8) target bundleno = 25 (0x19), region = 40 }
  0x12   : > { %s6929_s27 = smul.u32 40, %s188_s26 }
  0x14   : > { %s7097_s30 = scalar_lea.vmem %s11725_s0, %s6929_s27 }
  0x16   : > { %v7024_v0 = vmov 0.0  }
  0x17   : > { %196 = vst [vmem:[#allocation2 + $0x30] sm:$0xff] %v7024_v0 }
  0x18   : > { %202 = vst [vmem:[#allocation2 + $0x28] sm:$0xff] %v7024_v0 }
  0x19 PF: > { %v7105_v2 = vld [vmem:[%s7097_s30 + $0x8] sm:$0xff]  ;;  %s7025_s6 = smov 126   ;;  %v7112_v3 = vld [vmem:[%s7097_s30 + $0x18] sm:$0xff]  ;;  %v7117_v4 = vld [vmem:[%s7097_s30] sm:$0xff]  ;;  %s7026_s7 = smov 124   ;;  %vm385_vm0 = vcmask 228352  }
  0x1a   : > { %248 = vrot.lane.b32.xlu1 %v7105_v2, %s7025_s6  ;;  %252 = vrot.lane.b32.xlu2 %v7112_v3, %s7025_s6  ;;  %v7120_v5 = vld [vmem:[%s7097_s30 + $0x10] sm:$0xff]  ;;  %v7123_v6 = vld [vmem:[%s7097_s30 + $0x20] sm:$0xff]  ;;  %s7027_s8 = smov 80   ;;  %s7028_s9 = smov 78   ;;  %vm367_vm1 = vcmask 244736   ;;  %vm349_vm2 = vcmask 261120  }
  0x1b   : > { %s7029_s10 = smov 76   ;;  %s7030_s11 = smov 32   ;;  %vm331_vm3 = vcmask 621568   ;;  %vm308_vm4 = vcmask 637952   ;;  %vm292_vm5 = vcmask 654336   ;;  %vm274_vm6 = vcmask 1014784  }
  0x1c   : > { %s7031_s12 = smov 28   ;;  %s7032_s13 = smov 30   ;;  %vm256_vm7 = vcmask 1031168   ;;  %vm504_vm8 = vcmask 408576   ;;  %vm595_vm9 = vcmask 588800   ;;  %vm3683_vm10 = vcmask 457728  }
  0x1d   : > { %s7033_s14 = smov 50   ;;  %s7037_s26 = smov 120   ;;  %vm3665_vm11 = vcmask 490496   ;;  %vm3574_vm12 = vcmask 982016   ;;  %vm3629_vm13 = vcmask 195584   ;;  %vm3647_vm14 = vcmask 523264  }
  0x1e   : > { %v7102_v1 = vld [vmem:[#allocation2 + $0x30] sm:$0xff]  ;;  %s7038_s27 = smov 24   ;;  %s7039_s28 = smov 60   ;;  %vm3802_vm15 = vcmask 818176  }
  0x1f   : > { %244 = vrot.lane.b32.xlu0 %v7102_v1, %s7025_s6  ;;  %v7173_v7 = vld [vmem:[#allocation2 + $0x28] sm:$0xff]  ;;  %s7040_s29 = smov 100  }
  0x22   : > { %250 = vrot.lane.b32.xlu1 %v7120_v5, %s7025_s6  ;;  %254 = vrot.lane.b32.xlu2 %v7123_v6, %s7025_s6 }
  0x27   : > { %246 = vrot.lane.b32.xlu0 %v7117_v4, %s7025_s6 }
  0x2a   : > { %264 = vrot.lane.b32.xlu1 %v7117_v4, %s7026_s7  ;;  %266 = vrot.lane.b32.xlu2 %v7105_v2, %s7026_s7 }
  0x2f   : > { %262 = vrot.lane.b32.xlu0 %v7102_v1, %s7026_s7 }
  0x32   : > { %270 = vrot.lane.b32.xlu1 %v7112_v3, %s7026_s7  ;;  %272 = vrot.lane.b32.xlu2 %v7123_v6, %s7026_s7 }
  0x37   : > { %268 = vrot.lane.b32.xlu0 %v7120_v5, %s7026_s7 }
  0x3a   : > { %282 = vrot.lane.b32.xlu1 %v7117_v4, %s7027_s8  ;;  %284 = vrot.lane.b32.xlu2 %v7105_v2, %s7027_s8 }
  0x3f   : > { %280 = vrot.lane.b32.xlu0 %v7102_v1, %s7027_s8 }
  0x42   : > { %288 = vrot.lane.b32.xlu1 %v7112_v3, %s7027_s8  ;;  %290 = vrot.lane.b32.xlu2 %v7123_v6, %s7027_s8 }
  0x47   : > { %286 = vrot.lane.b32.xlu0 %v7120_v5, %s7027_s8 }
  0x4a   : > { %300 = vrot.lane.b32.xlu1 %v7105_v2, %s7028_s9  ;;  %302 = vrot.lane.b32.xlu2 %v7120_v5, %s7028_s9 }
  0x4f   : > { %298 = vrot.lane.b32.xlu0 %v7117_v4, %s7028_s9 }
  0x52   : > { %306 = vrot.lane.b32.xlu1 %v7123_v6, %s7028_s9  ;;  %319 = vrot.lane.b32.xlu2 %v7117_v4, %s7029_s10 }
  0x57   : > { %304 = vrot.lane.b32.xlu0 %v7112_v3, %s7028_s9 }
  0x5a   : > { %323 = vrot.lane.b32.xlu1 %v7120_v5, %s7029_s10  ;;  %325 = vrot.lane.b32.xlu2 %v7112_v3, %s7029_s10 }
  0x5f   : > { %321 = vrot.lane.b32.xlu0 %v7105_v2, %s7029_s10 }
  0x62   : > { %329 = vrot.lane.b32.xlu1 %v7173_v7, %s7029_s10  ;;  %337 = vrot.lane.b32.xlu2 %v7117_v4, %s7030_s11 }
  0x67   : > { %327 = vrot.lane.b32.xlu0 %v7123_v6, %s7029_s10 }
  0x6a   : > { %375 = vrot.lane.b32.xlu1 %v7105_v2, %s7031_s12  ;;  %355 = vrot.lane.b32.xlu2 %v7117_v4, %s7032_s13 }
  0x6f   : > { %373 = vrot.lane.b32.xlu0 %v7117_v4, %s7031_s12 }
  0x72   : > { %339 = vrot.lane.b32.xlu1 %v7105_v2, %s7030_s11  ;;  %377 = vrot.lane.b32.xlu2 %v7120_v5, %s7031_s12 }
  0x74   : > { %v7193_v8 = vpop.permute.xlu2 %252 }
  0x77   : > { %357 = vrot.lane.b32.xlu0 %v7105_v2, %s7032_s13 }
  0x7a   : > { %341 = vrot.lane.b32.xlu1 %v7120_v5, %s7030_s11  ;;  %379 = vrot.lane.b32.xlu2 %v7112_v3, %s7031_s12 }
  0x7c   : > { %v7201_v9 = vpop.permute.xlu2 %254 }
  0x7f   : > { %359 = vrot.lane.b32.xlu0 %v7120_v5, %s7032_s13 }
  0x82   : > { %343 = vrot.lane.b32.xlu1 %v7112_v3, %s7030_s11  ;;  %381 = vrot.lane.b32.xlu2 %v7123_v6, %s7031_s12 }
  0x84   : > { %v7209_v10 = vpop.permute.xlu2 %266 }
  0x87   : > { %361 = vrot.lane.b32.xlu0 %v7112_v3, %s7032_s13 }
  0x8a   : > { %345 = vrot.lane.b32.xlu1 %v7123_v6, %s7030_s11 }
  0x8c   : > { %v7217_v12 = vpop.permute.xlu1 %248  ;;  %v7219_v13 = vpop.permute.xlu2 %272 }
  0x8f   : > { %363 = vrot.lane.b32.xlu0 %v7123_v6, %s7032_s13 }
  0x91   : > { %v7215_v11 = vpop.permute.xlu0 %244 }
  0x94   : > { %v7223_v15 = vpop.permute.xlu1 %250  ;;  %v7225_v16 = vpop.permute.xlu2 %284 }
  0x95   : > { %v259_v0 = vsel %vm256_vm7, %v7217_v12, %v7223_v15 }
  0x99   : > { %v7221_v14 = vpop.permute.xlu0 %246 }
  0x9a   : > { %v257_v59 = vsel %vm256_vm7, %v7215_v11, %v7221_v14  ;;  %v258_v61 = vsel %vm256_vm7, %v7221_v14, %v7217_v12 }
  0x9c   : > { %v7229_v18 = vpop.permute.xlu1 %264  ;;  %v7231_v19 = vpop.permute.xlu2 %290 }
  0x9d   : > { %v276_v58 = vsel %vm274_vm6, %v7229_v18, %v7209_v10 }
  0xa1   : > { %v7227_v17 = vpop.permute.xlu0 %262 }
  0xa2   : > { %v275_v56 = vsel %vm274_vm6, %v7227_v17, %v7229_v18 }
  0xa4   : > { %v7235_v21 = vpop.permute.xlu1 %270  ;;  %v7237_v22 = vpop.permute.xlu2 %302 }
  0xa9   : > { %v7233_v20 = vpop.permute.xlu0 %268 }
  0xaa   : > { %v277_v63 = vsel %vm274_vm6, %v7209_v10, %v7233_v20 }
  0xac   : > { %v283_v24 = vpop.permute.xlu1 %282  ;;  %v320_v25 = vpop.permute.xlu2 %319 }
  0xad   : > { %v294_v55 = vsel %vm292_vm5, %v283_v24, %v7225_v16 }
  0xb1   : > { %v281_v23 = vpop.permute.xlu0 %280 }
  0xb2   : > { %v293_v53 = vsel %vm292_vm5, %v281_v23, %v283_v24 }
  0xb4   : > { %v7241_v27 = vpop.permute.xlu1 %288  ;;  %v7243_v28 = vpop.permute.xlu2 %325 }
  0xb9   : > { %v7239_v26 = vpop.permute.xlu0 %286 }
  0xba   : > { %v295_v62 = vsel %vm292_vm5, %v7225_v16, %v7239_v26 }
  0xbc   : > { %v301_v30 = vpop.permute.xlu1 %300  ;;  %v338_v31 = vpop.permute.xlu2 %337 }
  0xbd   : > { %v310_v60 = vsel %vm308_vm4, %v301_v30, %v7237_v22 }
  0xc1   : > { %v299_v29 = vpop.permute.xlu0 %298 }
  0xc2   : > { %v309_v51 = vsel %vm308_vm4, %v299_v29, %v301_v30  ;;  %v278_v30 = vsel %vm274_vm6, %v7233_v20, %v7235_v21  ;;  %v260_v20 = vsel %vm256_vm7, %v7223_v15, %v7193_v8 }
  0xc4   : > { %v7247_v33 = vpop.permute.xlu1 %306  ;;  %v356_v34 = vpop.permute.xlu2 %355 }
  0xc5   : > { %480 = vrot.lane.b32.xlu1 %v356_v34, %s7033_s14 }
  0xc9   : > { %v7245_v32 = vpop.permute.xlu0 %304 }
  0xca   : > { %v311_v17 = vsel %vm308_vm4, %v7237_v22, %v7245_v32  ;;  %v312_v15 = vsel %vm308_vm4, %v7245_v32, %v7247_v33 }
  0xcc   : > { %v7250_v36 = vpop.permute.xlu1 %323  ;;  %v378_v46 = vpop.permute.xlu2 %377 }
  0xd1   : > { %v322_v35 = vpop.permute.xlu0 %321 }
  0xd2   : > { %v332_v48 = vsel %vm331_vm3, %v320_v25, %v322_v35  ;;  %v333_v57 = vsel %vm331_vm3, %v322_v35, %v7250_v36 }
  0xd4   : > { %v7254_v38 = vpop.permute.xlu1 %329 }
  0xd9   : > { %v7252_v37 = vpop.permute.xlu0 %327 }
  0xdc   : > { %v376_v40 = vpop.permute.xlu1 %375 }
  0xdd   : > { %v387_v47 = vsel %vm385_vm0, %v376_v40, %v378_v46 }
  0xe1   : > { %v374_v39 = vpop.permute.xlu0 %373 }
  0xe2   : > { %492 = vrot.lane.b32.xlu2 %v374_v39, %s7033_s14  ;;  %v386_v41 = vsel %vm385_vm0, %v374_v39, %v376_v40 }
  0xe3   : > { %494 = vrot.lane.b32.xlu0 %v386_v41, %s7033_s14 }
  0xe4   : > { %v340_v43 = vpop.permute.xlu1 %339 }
  0xe5   : > { %v350_v45 = vsel %vm349_vm2, %v338_v31, %v340_v43 }
  0xe6   : > { %470 = vrot.lane.b32.xlu1 %v350_v45, %s7033_s14  ;;  %v261_v45 = vsel %vm256_vm7, %v7193_v8, %v7201_v9 }
  0xe9   : > { %v358_v42 = vpop.permute.xlu0 %357 }
  0xea   : > { %v368_v44 = vsel %vm367_vm1, %v356_v34, %v358_v42  ;;  %v335_v34 = vsel %vm331_vm3, %v7243_v28, %v7252_v37 }
  0xeb   : > { %482 = vrot.lane.b32.xlu2 %v368_v44, %s7033_s14  ;;  %468 = vrot.lane.b32.xlu0 %v338_v31, %s7033_s14  ;;  %v279_v44 = vsel %vm274_vm6, %v7235_v21, %v7219_v13 }
  0xec   : > { %v342_v52 = vpop.permute.xlu1 %341 }
  0xed   : > { %v351_v54 = vsel %vm349_vm2, %v340_v43, %v342_v52 }
  0xee   : > { %496 = vrot.lane.b32.xlu1 %v387_v47, %s7033_s14 }
  0xf1   : > { %v360_v49 = vpop.permute.xlu0 %359 }
  0xf2   : > { %v369_v50 = vsel %vm367_vm1, %v358_v42, %v360_v49 }
  0xf3   : > { %456 = vrot.lane.b32.xlu2 %v320_v25, %s7033_s14  ;;  %458 = vrot.lane.b32.xlu0 %v332_v48, %s7033_s14 }
  0xf6   : > { %484 = vrot.lane.b32.xlu1 %v369_v50, %s7033_s14 }
  0xf9   : > { %v362_v10 = vpop.permute.xlu0 %361 }
  0xfa   : > { %v370_v16 = vsel %vm367_vm1, %v360_v49, %v362_v10 }
  0xfb   : > { %444 = vrot.lane.b32.xlu2 %v299_v29, %s7033_s14  ;;  %446 = vrot.lane.b32.xlu0 %v309_v51, %s7033_s14  ;;  %v296_v29 = vsel %vm292_vm5, %v7239_v26, %v7241_v27 }
  0xfe   : > { %472 = vrot.lane.b32.xlu1 %v351_v54, %s7033_s14 }
 0x101   : > { %v7346_v23 = vpop.permute.xlu0 %363 }
 0x102   : > { %v371_v25 = vsel %vm367_vm1, %v362_v10, %v7346_v23 }
 0x103   : > { %432 = vrot.lane.b32.xlu2 %v293_v53, %s7033_s14  ;;  %434 = vrot.lane.b32.xlu0 %v294_v55, %s7033_s14 }
 0x106   : > { %460 = vrot.lane.b32.xlu1 %v333_v57, %s7033_s14 }
 0x10b   : > { %420 = vrot.lane.b32.xlu2 %v275_v56, %s7033_s14  ;;  %422 = vrot.lane.b32.xlu0 %v276_v58, %s7033_s14 }
 0x10e   : > { %448 = vrot.lane.b32.xlu1 %v310_v60, %s7033_s14 }
 0x113   : > { %408 = vrot.lane.b32.xlu2 %v257_v59, %s7033_s14  ;;  %410 = vrot.lane.b32.xlu0 %v258_v61, %s7033_s14 }
 0x116   : > { %436 = vrot.lane.b32.xlu1 %v295_v62, %s7033_s14 }
 0x11b   : > { %396 = vrot.lane.b32.xlu2 %v7102_v1, %s7033_s14  ;;  %398 = vrot.lane.b32.xlu0 %v7117_v4, %s7033_s14  ;;  %v380_v1 = vpop.permute.xlu2 %379  ;;  %v344_v4 = vpop.permute.xlu1 %343 }
 0x11c   : > { %v388_v11 = vsel %vm385_vm0, %v378_v46, %v380_v1  ;;  %v352_v14 = vsel %vm349_vm2, %v342_v52, %v344_v4 }
 0x11e   : > { %412 = vrot.lane.b32.xlu1 %v259_v0, %s7033_s14 }
 0x123   : > { %424 = vrot.lane.b32.xlu2 %v277_v63, %s7033_s14  ;;  %383 = vrot.lane.b32.xlu0 %v7173_v7, %s7031_s12  ;;  %v7328_v12 = vpop.permute.xlu2 %381  ;;  %v7348_v24 = vpop.permute.xlu1 %345 }
 0x124   : > { %v353_v31 = vsel %vm349_vm2, %v344_v4, %v7348_v24 }
 0x126   : > { %347 = vrot.lane.b32.xlu1 %v7173_v7, %s7030_s11 }
 0x12b   : > { %365 = vrot.lane.b32.xlu2 %v7173_v7, %s7032_s13  ;;  %400 = vrot.lane.b32.xlu0 %v7105_v2, %s7033_s14  ;;  %v389_v7 = vsel %vm385_vm0, %v380_v1, %v7328_v12  ;;  %v334_v2 = vsel %vm331_vm3, %v7250_v36, %v7243_v28  ;;  %v297_v28 = vsel %vm292_vm5, %v7241_v27, %v7231_v19 }
 0x12e   : > { %474 = vrot.lane.b32.xlu1 %v352_v14, %s7033_s14 }
 0x133   : > { %498 = vrot.lane.b32.xlu2 %v388_v11, %s7033_s14  ;;  %486 = vrot.lane.b32.xlu0 %v370_v16, %s7033_s14 }
 0x136   : > { %500 = vrot.lane.b32.xlu1 %v389_v7, %s7033_s14 }
 0x137   : > { %v481_v26 = vpop.permute.xlu1 %480 }
 0x13b   : > { %462 = vrot.lane.b32.xlu2 %v334_v2, %s7033_s14  ;;  %450 = vrot.lane.b32.xlu0 %v311_v17, %s7033_s14 }
 0x13c   : > { %v493_v18 = vpop.permute.xlu2 %492 }
 0x13e   : > { %426 = vrot.lane.b32.xlu1 %v278_v30, %s7033_s14 }
 0x143   : > { %438 = vrot.lane.b32.xlu2 %v296_v29, %s7033_s14  ;;  %488 = vrot.lane.b32.xlu0 %v371_v25, %s7033_s14 }
 0x145   : > { %v7361_v22 = vpop.permute.xlu2 %482 }
 0x146   : > { %464 = vrot.lane.b32.xlu1 %v335_v34, %s7033_s14  ;;  %v540_v36 = vsel %vm504_vm8, %v481_v26, %v7361_v22 }
 0x147   : > { %v7376_v39 = vand.u32 4294901760, %v540_v36 }
 0x149   : > { %v7391_v42 = vsub.f32 %v540_v36, %v7376_v39 }
 0x14b   : > { %476 = vrot.lane.b32.xlu2 %v353_v31, %s7033_s14  ;;  %414 = vrot.lane.b32.xlu0 %v260_v20, %s7033_s14  ;;  %v648_v32 = vand.u32 4294901760, %v7391_v42 }
 0x14d   : > { %v457_v35 = vpop.permute.xlu2 %456  ;;  %v649_v21 = vsub.f32 %v7391_v42, %v648_v32 }
 0x14e   : > { %440 = vrot.lane.b32.xlu1 %v297_v28, %s7033_s14 }
 0x14f   : > { %v650_v53 = vand.u32 4294901760, %v649_v21 }
 0x153   : > { %402 = vrot.lane.b32.xlu2 %v7120_v5, %s7033_s14  ;;  %452 = vrot.lane.b32.xlu0 %v312_v15, %s7033_s14 }
 0x155   : > { %v445_v40 = vpop.permute.xlu2 %444  ;;  %v7388_v41 = vpop.permute.xlu0 %494 }
 0x156   : > { %v545_v27 = vsel %vm504_vm8, %v493_v18, %v7388_v41  ;;  %404 = vrot.lane.b32.xlu1 %v7112_v3, %s7033_s14 }
 0x157   : > { %v7395_v43 = vand.u32 4294901760, %v545_v27 }
 0x158   : > { %v7415_v48 = vpop.permute.xlu1 %470 }
 0x159   : > { %607 = vmatpush.msra.mxu0 %v7395_v43  ;;  %747 = vmatpush.msra.mxu3 %v7395_v43  ;;  %v7400_v5 = vsub.f32 %v545_v27, %v7395_v43 }
 0x15b   : > { %428 = vrot.lane.b32.xlu2 %v279_v44, %s7033_s14  ;;  %609 = vmatpush.msra.mxu0 %v7376_v39  ;;  %v642_v46 = vand.u32 4294901760, %v7400_v5 }
 0x15c   : > { %416 = vrot.lane.b32.xlu0 %v261_v45, %s7033_s14  ;;  %708 = vmatpush.msra.mxu2 %v7400_v5 }
 0x15d   : > { %v433_v47 = vpop.permute.xlu2 %432  ;;  %749 = vmatpush.msra.mxu3 %v7376_v39  ;;  %v643_v8 = vsub.f32 %v7400_v5, %v642_v46  ;;  %v469_v49 = vpop.permute.xlu0 %468 }
 0x15e   : > { %711 = vmatpush.msra.mxu2 %v7391_v42  ;;  %v535_v50 = vsel %vm504_vm8, %v469_v49, %v7415_v48 }
 0x15f   : > { %v644_v51 = vand.u32 4294901760, %v643_v8  ;;  %v7428_v52 = vand.u32 4294901760, %v535_v50 }
 0x160   : > { %v7437_v56 = vpop.permute.xlu1 %496 }
 0x161   : > { %645 = vmatpush.msra.mxu1 %v644_v51  ;;  %v7431_v3 = vsub.f32 %v535_v50, %v7428_v52  ;;  %611 = vmatpush.msra.mxu0 %v7428_v52  ;;  %v546_v28 = vsel %vm504_vm8, %v7388_v41, %v7437_v56 }
 0x162   : > { %751 = vmatpush.msra.mxu3 %v7428_v52  ;;  %v7500_v8 = vand.u32 4294901760, %v546_v28 }
 0x163   : > { %651 = vmatpush.msra.mxu1 %v650_v53  ;;  %714 = vmatpush.msra.mxu2 %v7431_v3  ;;  %v654_v54 = vand.u32 4294901760, %v7431_v3 }
 0x164   : > { %v7515_v50 = vsub.f32 %v546_v28, %v7500_v8 }
 0x165   : > { %v421_v55 = vpop.permute.xlu2 %420  ;;  %v459_v57 = vpop.permute.xlu0 %458  ;;  %v655_v58 = vsub.f32 %v7431_v3, %v654_v54 }
 0x166   : > { %v530_v59 = vsel %vm504_vm8, %v457_v35, %v459_v57 }
 0x167   : > { %v7443_v60 = vand.u32 4294901760, %v530_v59  ;;  %v656_v61 = vand.u32 4294901760, %v655_v58 }
 0x168   : > { %v7452_v1 = vpop.permute.xlu1 %484 }
 0x169   : > { %613 = vmatpush.msra.mxu0 %v7443_v60  ;;  %657 = vmatpush.msra.mxu1 %v656_v61  ;;  %v7447_v62 = vsub.f32 %v530_v59, %v7443_v60  ;;  %v541_v27 = vsel %vm504_vm8, %v7361_v22, %v7452_v1 }
 0x16a   : > { %753 = vmatpush.msra.mxu3 %v7443_v60  ;;  %v7502_v21 = vand.u32 4294901760, %v541_v27 }
 0x16b   : > { %717 = vmatpush.msra.mxu2 %v7447_v62  ;;  %v11736_v63 = vand.u32 4294901760, %v7447_v62 }
 0x16c   : > { %v7522_v58 = vsub.f32 %v541_v27, %v7502_v21 }
 0x16d   : > { %v409_v0 = vpop.permute.xlu2 %408  ;;  %v447_v4 = vpop.permute.xlu0 %446  ;;  %v661_v10 = vsub.f32 %v7447_v62, %v11736_v63 }
 0x16e   : > { %v525_v11 = vsel %vm504_vm8, %v445_v40, %v447_v4 }
 0x16f   : > { %v7458_v14 = vand.u32 4294901760, %v525_v11  ;;  %v662_v16 = vand.u32 4294901760, %v661_v10 }
 0x170   : > { %v7469_v18 = vpop.permute.xlu1 %472 }
 0x171   : > { %615 = vmatpush.msra.mxu0 %v7458_v14  ;;  %663 = vmatpush.msra.mxu1 %v662_v16  ;;  %v7462_v7 = vsub.f32 %v525_v11, %v7458_v14  ;;  %v536_v49 = vsel %vm504_vm8, %v7415_v48, %v7469_v18 }
 0x172   : > { %755 = vmatpush.msra.mxu3 %v7458_v14  ;;  %v7524_v59 = vand.u32 4294901760, %v536_v49 }
 0x173   : > { %720 = vmatpush.msra.mxu2 %v7462_v7  ;;  %v11735_v2 = vand.u32 4294901760, %v7462_v7 }
 0x175   : > { %v7467_v17 = vpop.permute.xlu2 %396  ;;  %v435_v25 = vpop.permute.xlu0 %434  ;;  %v667_v29 = vsub.f32 %v7462_v7, %v11735_v2 }
 0x176   : > { %v520_v30 = vsel %vm504_vm8, %v433_v47, %v435_v25 }
 0x177   : > { %v7475_v31 = vand.u32 4294901760, %v520_v30  ;;  %v668_v34 = vand.u32 4294901760, %v667_v29 }
 0x178   : > { %v7486_v36 = vpop.permute.xlu1 %460 }
 0x179   : > { %617 = vmatpush.msra.mxu0 %v7475_v31  ;;  %669 = vmatpush.msra.mxu1 %v668_v34  ;;  %v7479_v26 = vsub.f32 %v520_v30, %v7475_v31  ;;  %v531_v53 = vsel %vm504_vm8, %v459_v57, %v7486_v36  ;;  %v11731_v34 = vand.u32 4294901760, %v7515_v50 }
 0x17a   : > { %757 = vmatpush.msra.mxu3 %v7475_v31  ;;  %v7533_v57 = vand.u32 4294901760, %v531_v53 }
 0x17b   : > { %723 = vmatpush.msra.mxu2 %v7479_v26  ;;  %v11733_v20 = vand.u32 4294901760, %v7479_v26 }
 0x17c   : > { %v7555_v27 = vsub.f32 %v531_v53, %v7533_v57 }
 0x17d   : > { %v7484_v35 = vpop.permute.xlu2 %424  ;;  %v423_v15 = vpop.permute.xlu0 %422  ;;  %v673_v40 = vsub.f32 %v7479_v26, %v11733_v20 }
 0x17e   : > { %v515_v44 = vsel %vm504_vm8, %v421_v55, %v423_v15 }
 0x17f   : > { %v7498_v45 = vand.u32 4294901760, %v515_v44  ;;  %v674_v47 = vand.u32 4294901760, %v673_v40 }
 0x180   : > { %v7519_v55 = vpop.permute.xlu1 %448 }
 0x181   : > { %619 = vmatpush.msra.mxu0 %v7498_v45  ;;  %675 = vmatpush.msra.mxu1 %v674_v47  ;;  %v7506_v41 = vsub.f32 %v515_v44, %v7498_v45  ;;  %v526_v16 = vsel %vm504_vm8, %v447_v4, %v7519_v55  ;;  %v213_v4 = vld [vmem:[%s11727_s2] sm:$0xff]  ;;  %v516_v44 = vsel %vm504_vm8, %v423_v15, %v7484_v35 }
 0x182   : > { %759 = vmatpush.msra.mxu3 %v7498_v45  ;;  %v7551_v40 = vand.u32 4294901760, %v526_v16 }
 0x183   : > { %726 = vmatpush.msra.mxu2 %v7506_v41  ;;  %v11730_v22 = vand.u32 4294901760, %v7506_v41 }
 0x185   : > { %v366_v51 = vpop.permute.xlu2 %365  ;;  %v411_v61 = vpop.permute.xlu0 %410  ;;  %v679_v10 = vsub.f32 %v7506_v41, %v11730_v22  ;;  %v7578_v22 = vand.u32 4294901760, %v516_v44 }
 0x186   : > { %v372_v48 = vsel %vm367_vm1, %v7346_v23, %v366_v51  ;;  %v510_v11 = vsel %vm504_vm8, %v409_v0, %v411_v61  ;;  %v7541_v23 = vsub.f32 %v536_v49, %v7524_v59  ;;  %v11734_v0 = vand.u32 4294901760, %v7522_v58 }
 0x187   : > { %490 = vrot.lane.b32.xlu0 %v372_v48, %s7033_s14  ;;  %v7537_v29 = vand.u32 4294901760, %v510_v11  ;;  %v680_v30 = vand.u32 4294901760, %v679_v10  ;;  %v893_v51 = vsub.f32 %v7515_v50, %v11731_v34  ;;  %v597_v48 = vsel %vm595_vm9, %v213_v4, 0 }
 0x188   : > { %v7561_v49 = vpop.permute.xlu1 %436  ;;  %v7581_v34 = vsub.f32 %v526_v16, %v7551_v40  ;;  %v7593_v2 = vand.u32 4294901760, %v597_v48 }
 0x189   : > { %621 = vmatpush.msra.mxu0 %v7537_v29  ;;  %681 = vmatpush.msra.mxu1 %v680_v30  ;;  %v7545_v28 = vsub.f32 %v510_v11, %v7537_v29  ;;  %v521_v10 = vsel %vm504_vm8, %v435_v25, %v7561_v49  ;;  %v899_v11 = vsub.f32 %v7522_v58, %v11734_v0  ;;  %v11738_v30 = vand.u32 4294901760, %v7541_v23 }
 0x18a   : > { %761 = vmatpush.msra.mxu3 %v7537_v29  ;;  %v7585_v25 = vand.u32 4294901760, %v521_v10  ;;  %v11737_v0 = vand.u32 4294901760, %v7555_v27 }
 0x18b   : > { %729 = vmatpush.msra.mxu2 %v7545_v28  ;;  %v11732_v47 = vand.u32 4294901760, %v7545_v28 }
 0x18c   : > { %v7596_v63 = vsub.f32 %v521_v10, %v7585_v25  ;;  %v916_v10 = vand.u32 4294901760, %v7581_v34 }
 0x18d   : > { %v7569_v53 = vpop.permute.xlu0 %398  ;;  %v685_v15 = vsub.f32 %v7545_v28, %v11732_v47 }
 0x18e   : > { %v505_v4 = vsel %vm504_vm8, %v7467_v17, %v7569_v53  ;;  %v905_v17 = vsub.f32 %v7541_v23, %v11738_v30 }
 0x18f   : > { %454 = vrot.lane.b32.xlu0 %v7247_v33, %s7033_s14  ;;  %v7590_v47 = vand.u32 4294901760, %v505_v4  ;;  %v686_v20 = vand.u32 4294901760, %v685_v15  ;;  %v894_v33 = vand.u32 4294901760, %v893_v51  ;;  %v7606_v15 = vsub.f32 %v516_v44, %v7578_v22 }
 0x190   : > { %v911_v51 = vsub.f32 %v7555_v27, %v11737_v0  ;;  %v7618_v44 = vsub.f32 %v597_v48, %v7593_v2  ;;  %v7623_v5 = vpop.permute.xlu1 %412  ;;  %v906_v0 = vand.u32 4294901760, %v905_v17 }
 0x191   : > { %623 = vmatpush.msra.mxu0 %v7590_v47  ;;  %687 = vmatpush.msra.mxu1 %v686_v20  ;;  %v7600_v16 = vsub.f32 %v505_v4, %v7590_v47  ;;  %v900_v20 = vand.u32 4294901760, %v899_v11  ;;  %v511_v11 = vsel %vm504_vm8, %v411_v61, %v7623_v5  ;;  %v917_v61 = vsub.f32 %v7581_v34, %v916_v10 }
 0x192   : > { %763 = vmatpush.msra.mxu3 %v7590_v47  ;;  %v7634_v42 = vand.u32 4294901760, %v511_v11  ;;  %v928_v17 = vand.u32 4294901760, %v7606_v15 }
 0x193   : > { %781 = vmatpush.msrb.mxu0 %v642_v46  ;;  %732 = vmatpush.msra.mxu2 %v7600_v16  ;;  %v11739_v4 = vand.u32 4294901760, %v7600_v16  ;;  %v922_v46 = vand.u32 4294901760, %v7596_v63 }
 0x194   : > { %895 = vmatpush.msrb.mxu3 %v894_v33  ;;  %735 = vmatmul.f32.vlgmr.msra.gmra.mxu2 %v7618_v44  ;;  %v7651_v3 = vsub.f32 %v511_v11, %v7634_v42  ;;  %v929_v11 = vsub.f32 %v7606_v15, %v928_v17 }
 0x195   : > { %785 = vmatpush.msrb.mxu0 %v648_v32  ;;  %857 = vmatpush.msrb.mxu2 %v7500_v8  ;;  %v384_v33 = vpop.permute.xlu0 %383  ;;  %v691_v48 = vsub.f32 %v7600_v16, %v11739_v4  ;;  %v7648_v4 = vpop.permute.xlu2 %498 }
 0x196   : > { %901 = vmatpush.msrb.mxu3 %v900_v20  ;;  %v390_v32 = vsel %vm385_vm0, %v7328_v12, %v384_v33  ;;  %v912_v20 = vand.u32 4294901760, %v911_v51  ;;  %v11755_v12 = vand.u32 4294901760, %v7447_v62  ;;  %v918_v51 = vand.u32 4294901760, %v917_v61 }
 0x197   : > { %418 = vrot.lane.b32.xlu0 %v7201_v9, %s7033_s14  ;;  %789 = vmatpush.msrb.mxu0 %v654_v54  ;;  %v692_v30 = vand.u32 4294901760, %v691_v48  ;;  %v7646_v9 = vand.u32 4294901760, %v7618_v44  ;;  %v923_v54 = vsub.f32 %v7596_v63, %v922_v46  ;;  %v934_v33 = vand.u32 4294901760, %v7651_v3 }
 0x198   : > { %859 = vmatpush.msrb.mxu2 %v7502_v21  ;;  %907 = vmatpush.msrb.mxu3 %v906_v0  ;;  %v11756_v0 = vand.u32 4294901760, %v7462_v7  ;;  %v348_v48 = vpop.permute.xlu1 %347 }
 0x199   : > { %502 = vrot.lane.b32.xlu2 %v390_v32, %s7033_s14  ;;  %793 = vmatpush.msrb.mxu0 %v11755_v12  ;;  %v627_v62 = vsub.f32 %v7618_v44, %v7646_v9  ;;  %v924_v7 = vand.u32 4294901760, %v923_v54  ;;  %v935_v32 = vsub.f32 %v7651_v3, %v934_v33  ;;  %v354_v61 = vsel %vm349_vm2, %v7348_v24, %v348_v48 }
 0x19a   : > { %861 = vmatpush.msrb.mxu2 %v7524_v59  ;;  %913 = vmatpush.msrb.mxu3 %v912_v20  ;;  %v11758_v20 = vand.u32 4294901760, %v7506_v41  ;;  %v930_v12 = vand.u32 4294901760, %v929_v11  ;;  %v336_v24 = vsel %vm331_vm3, %v7252_v37, %v7254_v38  ;;  %v11760_v38 = vand.u32 4294901760, %v7600_v16 }
 0x19b   : > { %693 = vmatpush.msra.mxu1 %v692_v30  ;;  %797 = vmatpush.msrb.mxu0 %v11756_v0  ;;  %v11757_v30 = vand.u32 4294901760, %v7479_v26  ;;  %v11759_v0 = vand.u32 4294901760, %v7545_v28 }
 0x19c   : > { %863 = vmatpush.msrb.mxu2 %v7533_v57  ;;  %919 = vmatpush.msrb.mxu3 %v918_v51 }
 0x19d   : > { %827 = vmatpush.msrb.mxu1 %v7395_v43  ;;  %801 = vmatpush.msrb.mxu0 %v11757_v30  ;;  %v7677_v43 = vpop.permute.xlu0 %400 }
 0x19e   : > { %865 = vmatpush.msrb.mxu2 %v7551_v40  ;;  %925 = vmatpush.msrb.mxu3 %v924_v7  ;;  %v506_v26 = vsel %vm504_vm8, %v7569_v53, %v7677_v43  ;;  %v936_v53 = vand.u32 4294901760, %v935_v32 }
 0x19f   : > { %829 = vmatpush.msrb.mxu1 %v7376_v39  ;;  %805 = vmatpush.msrb.mxu0 %v11758_v20  ;;  %v7686_v54 = vand.u32 4294901760, %v506_v26  ;;  %v7690_v39 = vand.u32 4294901760, %v627_v62 }
 0x1a0   : > { %867 = vmatpush.msrb.mxu2 %v7585_v25  ;;  %931 = vmatpush.msrb.mxu3 %v930_v12  ;;  %v7711_v51 = vpop.permute.xlu1 %474 }
 0x1a1   : > { %831 = vmatpush.msrb.mxu1 %v7428_v52  ;;  %478 = vrot.lane.b32.xlu1 %v354_v61, %s7033_s14  ;;  %v7697_v41 = vsub.f32 %v506_v26, %v7686_v54  ;;  %v7702_v52 = vpop.permute.xlu2 %462 }
 0x1a2   : > { %466 = vrot.lane.b32.xlu2 %v336_v24, %s7033_s14  ;;  %809 = vmatpush.msrb.mxu0 %v11759_v0 }
 0x1a3   : > { %833 = vmatpush.msrb.mxu1 %v7443_v60  ;;  %869 = vmatpush.msrb.mxu2 %v7578_v22  ;;  %v940_v37 = vand.u32 4294901760, %v7697_v41 }
 0x1a4   : > { %629 = vmatmul.f32.vlgmr.msra.gmra.mxu0 %v7690_v39  ;;  %767 = vmatmul.f32.vlgmr.msra.gmra.mxu3 %v7646_v9 }
 0x1a5   : > { %937 = vmatpush.msrb.mxu3 %v936_v53  ;;  %813 = vmatpush.msrb.mxu0 %v11760_v38  ;;  %v7715_v28 = vpop.permute.xlu0 %486  ;;  %v941_v60 = vsub.f32 %v7697_v41, %v940_v37 }
 0x1a6   : > { %835 = vmatpush.msrb.mxu1 %v7458_v14  ;;  %871 = vmatpush.msrb.mxu2 %v7634_v42  ;;  %v11761_v14 = vand.u32 4294901760, %v7515_v50 }
 0x1a7   : > { %695 = vmatmul.f32.vlgmr.msra.gmra.mxu1 %v7593_v2  ;;  %958 = vmatpush.msra.mxu0 %v7515_v50  ;;  %v942_v16 = vand.u32 4294901760, %v941_v60 }
 0x1a8   : > { %837 = vmatpush.msrb.mxu1 %v7475_v31  ;;  %873 = vmatpush.msrb.mxu2 %v7686_v54  ;;  %v11762_v31 = vand.u32 4294901760, %v7522_v58  ;;  %v7739_v50 = vpop.permute.xlu1 %500 }
 0x1a9   : > { %961 = vmatpush.msra.mxu0 %v7522_v58  ;;  %442 = vrot.lane.b32.xlu1 %v7231_v19, %s7033_s14  ;;  %v7736_v11 = vpop.permute.xlu2 %438  ;;  %v11763_v19 = vand.u32 4294901760, %v7541_v23  ;;  %v11764_v58 = vand.u32 4294901760, %v7555_v27  ;;  %v548_v20 = vsel %vm504_vm8, %v7648_v4, %v7739_v50 }
 0x1aa   : > { %1031 = vmatpush.msra.mxu2 %v11761_v14  ;;  %839 = vmatpush.msrb.mxu1 %v7498_v45  ;;  %v7909_v38 = vand.u32 4294901760, %v548_v20 }
 0x1ab   : > { %964 = vmatpush.msra.mxu0 %v7541_v23  ;;  %430 = vrot.lane.b32.xlu2 %v7219_v13, %s7033_s14  ;;  %v547_v13 = vsel %vm504_vm8, %v7437_v56, %v7648_v4  ;;  %v537_v56 = vsel %vm504_vm8, %v7469_v18, %v7711_v51 }
 0x1ac   : > { %1035 = vmatpush.msra.mxu2 %v11762_v31  ;;  %841 = vmatpush.msrb.mxu1 %v7537_v29  ;;  %v542_v29 = vsel %vm504_vm8, %v7452_v1, %v7715_v28  ;;  %v7764_v23 = vand.u32 4294901760, %v547_v13 }
 0x1ad   : > { %815 = vmatmul.f32.vlgmr.msrb.gmra.mxu0 %v7593_v2  ;;  %943 = vmatpush.msrb.mxu3 %v942_v16  ;;  %v7744_v45 = vpop.permute.xlu0 %450 }
 0x1ae   : > { %967 = vmatpush.msra.mxu0 %v7555_v27  ;;  %1039 = vmatpush.msra.mxu2 %v11763_v19 }
 0x1af   : > { %843 = vmatpush.msrb.mxu1 %v7590_v47  ;;  %1077 = vmatpush.msra.mxu3 %v7500_v8  ;;  %v522_v47 = vsel %vm504_vm8, %v7561_v49, %v7736_v11 }
 0x1b0   : > { %845 = vmatmul.f32.vlgmr.msrb.gmra.mxu1 %v7593_v2  ;;  %970 = vmatpush.msra.mxu0 %v7581_v34  ;;  %v7774_v1 = vpop.permute.xlu1 %426  ;;  %v7793_v34 = vand.u32 4294901760, %v537_v56 }
 0x1b1   : > { %997 = vmatpush.msra.mxu1 %v7500_v8  ;;  %1043 = vmatpush.msra.mxu2 %v11764_v58  ;;  %v7776_v8 = vand.u32 4294901760, %v542_v29  ;;  %v7786_v18 = vpop.permute.xlu2 %476 }
 0x1b2   : > { %1079 = vmatpush.msra.mxu3 %v7502_v21  ;;  %973 = vmatpush.msra.mxu0 %v7596_v63  ;;  %v538_v14 = vsel %vm504_vm8, %v7711_v51, %v7786_v18 }
 0x1b3   : > { %999 = vmatpush.msra.mxu1 %v7502_v21  ;;  %1047 = vmatpush.msra.mxu2 %v916_v10  ;;  %v7808_v27 = vsub.f32 %v542_v29, %v7776_v8  ;;  %v7835_v10 = vand.u32 4294901760, %v522_v47  ;;  %v216_v29 = vld [vmem:[%s11728_s3] sm:$0xff] }
 0x1b4   : > { %1081 = vmatpush.msra.mxu3 %v7524_v59  ;;  %406 = vrot.lane.b32.xlu1 %v7123_v6, %s7033_s14  ;;  %v532_v6 = vsel %vm504_vm8, %v7486_v36, %v7702_v52  ;;  %v527_v36 = vsel %vm504_vm8, %v7519_v55, %v7744_v45  ;;  %v7820_v55 = vsub.f32 %v537_v56, %v7793_v34 }
 0x1b5   : > { %976 = vmatpush.msra.mxu0 %v7606_v15  ;;  %1001 = vmatpush.msra.mxu1 %v7524_v59  ;;  %v7781_v21 = vpop.permute.xlu0 %488  ;;  %v7791_v59 = vsub.f32 %v547_v13, %v7764_v23  ;;  %v7800_v63 = vand.u32 4294901760, %v532_v6  ;;  %v7876_v32 = vsub.f32 %v522_v47, %v7835_v10  ;;  %v7944_v47 = vsub.f32 %v548_v20, %v7909_v38 }
 0x1b6   : > { %1051 = vmatpush.msra.mxu2 %v922_v46  ;;  %1083 = vmatpush.msra.mxu3 %v7533_v57  ;;  %v517_v46 = vsel %vm504_vm8, %v7484_v35, %v7774_v1  ;;  %v1154_v35 = vand.u32 4294901760, %v7820_v55  ;;  %v543_v4 = vsel %vm504_vm8, %v7715_v28, %v7781_v21 }
 0x1b7   : > { %879 = vmatmul.f32.vlgmr.msrb.gmra.mxu2 %v7690_v39  ;;  %979 = vmatpush.msra.mxu0 %v7651_v3  ;;  %v7830_v49 = vsub.f32 %v532_v6, %v7800_v63  ;;  %v7863_v7 = vand.u32 4294901760, %v517_v46  ;;  %v7925_v19 = vand.u32 4294901760, %v543_v4 }
 0x1b8   : > { %1003 = vmatpush.msra.mxu1 %v7533_v57  ;;  %1055 = vmatpush.msra.mxu2 %v928_v17  ;;  %v1142_v57 = vand.u32 4294901760, %v7791_v59  ;;  %v7842_v17 = vpop.permute.xlu1 %464  ;;  %v1155_v61 = vsub.f32 %v7820_v55, %v1154_v35 }
 0x1b9   : > { %1085 = vmatpush.msra.mxu3 %v7551_v40  ;;  %982 = vmatpush.msra.mxu0 %v7697_v41  ;;  %v7853_v62 = vpop.permute.xlu2 %402  ;;  %v7896_v53 = vsub.f32 %v517_v46, %v7863_v7  ;;  %v533_v58 = vsel %vm504_vm8, %v7702_v52, %v7842_v17  ;;  %v11740_v52 = vmov 0  }
 0x1ba   : > { %945 = vmatmul.f32.vlgmr.msrb.gmra.mxu3 %v7593_v2  ;;  %1005 = vmatpush.msra.mxu1 %v7551_v40  ;;  %v7822_v40 = vand.u32 4294901760, %v527_v36  ;;  %v1143_v3 = vsub.f32 %v7791_v59, %v1142_v57  ;;  %v507_v30 = vsel %vm504_vm8, %v7677_v43, %v7853_v62  ;;  %v1156_v60 = vand.u32 4294901760, %v1155_v61 }
 0x1bb   : > { %1059 = vmatpush.msra.mxu2 %v934_v33  ;;  %1087 = vmatpush.msra.mxu3 %v7585_v25  ;;  %v7883_v26 = vand.u32 4294901760, %v507_v30  ;;  %v1178_v51 = vand.u32 4294901760, %v7896_v53 }
 0x1bc   : > { %1107 = vmatpush.msrb.mxu0 %v7764_v23  ;;  %1007 = vmatpush.msra.mxu1 %v7585_v25  ;;  %v1148_v25 = vand.u32 4294901760, %v7808_v27  ;;  %v1144_v43 = vand.u32 4294901760, %v1143_v3 }
 0x1bd   : > { %1063 = vmatpush.msra.mxu2 %v940_v37  ;;  %1089 = vmatpush.msra.mxu3 %v7578_v22  ;;  %v7832_v15 = vpop.permute.xlu0 %414  ;;  %v1172_v37 = vand.u32 4294901760, %v7876_v32  ;;  %v7923_v31 = vsub.f32 %v507_v30, %v7883_v26  ;;  %v1179_v61 = vsub.f32 %v7896_v53, %v1178_v51 }
 0x1be   : > { %1109 = vmatpush.msrb.mxu0 %v7776_v8  ;;  %1009 = vmatpush.msra.mxu1 %v7578_v22  ;;  %v512_v33 = vsel %vm504_vm8, %v7623_v5, %v7832_v15  ;;  %v7858_v22 = vsub.f32 %v527_v36, %v7822_v40  ;;  %v1149_v5 = vsub.f32 %v7808_v27, %v1148_v25  ;;  %v7941_v36 = vand.u32 4294901760, %v538_v14 }
 0x1bf   : > { %1208 = vmatpush.msrb.mxu2 %v7791_v59  ;;  %1091 = vmatpush.msra.mxu3 %v7634_v42  ;;  %v7873_v48 = vand.u32 4294901760, %v512_v33  ;;  %v1173_v56 = vsub.f32 %v7876_v32, %v1172_v37 }
 0x1c0   : > { %1111 = vmatpush.msrb.mxu0 %v7793_v34  ;;  %1011 = vmatpush.msra.mxu1 %v7634_v42  ;;  %v1160_v42 = vand.u32 4294901760, %v7830_v49  ;;  %v1166_v12 = vand.u32 4294901760, %v7858_v22  ;;  %v7920_v16 = vpop.permute.xlu1 %440 }
 0x1c1   : > { %1211 = vmatpush.msrb.mxu2 %v7808_v27  ;;  %1093 = vmatpush.msra.mxu3 %v7686_v54  ;;  %v7906_v0 = vsub.f32 %v512_v33, %v7873_v48  ;;  %v1190_v33 = vand.u32 4294901760, %v7923_v31  ;;  %v7953_v30 = vpop.permute.xlu2 %428 }
 0x1c2   : > { %1065 = vmatmul.f32.vlgmr.msra.gmra.mxu2 %v7593_v2  ;;  %1113 = vmatpush.msrb.mxu0 %v7800_v63  ;;  %v1161_v24 = vsub.f32 %v7830_v49, %v1160_v42  ;;  %v1167_v28 = vsub.f32 %v7858_v22, %v1166_v12 }
 0x1c3   : > { %1214 = vmatpush.msrb.mxu2 %v7820_v55  ;;  %985 = vmatmul.f32.vlgmr.msra.gmra.mxu0 %v7618_v44  ;;  %v1184_v6 = vand.u32 4294901760, %v7906_v0 }
 0x1c4   : > { %1013 = vmatpush.msra.mxu1 %v7686_v54  ;;  %1095 = vmatmul.f32.vlgmr.msra.gmra.mxu3 %v7593_v2  ;;  %v1150_v54 = vand.u32 4294901760, %v1149_v5  ;;  %v1162_v13 = vand.u32 4294901760, %v1161_v24  ;;  %v1168_v46 = vand.u32 4294901760, %v1167_v28  ;;  %v7956_v5 = vsub.f32 %v543_v4, %v7925_v19 }
 0x1c5   : > { %1247 = vmatpush.msrb.mxu3 %v7764_v23  ;;  %1115 = vmatpush.msrb.mxu0 %v7822_v40  ;;  %v7898_v41 = vpop.permute.xlu0 %452  ;;  %v1185_v20 = vsub.f32 %v7906_v0, %v1184_v6  ;;  %v7971_v24 = vsub.f32 %v538_v14, %v7941_v36  ;;  %v1392_v4 = vand.u32 4294901760, %v7944_v47  ;;  %v1191_v14 = vsub.f32 %v7923_v31, %v1190_v33 }
 0x1c6   : > { %1145 = vmatpush.msrb.mxu1 %v1144_v43  ;;  %1217 = vmatpush.msrb.mxu2 %v7830_v49  ;;  %v528_v3 = vsel %vm504_vm8, %v7744_v45, %v7898_v41  ;;  %v7958_v43 = vand.u32 4294901760, %v533_v58  ;;  %v1174_v45 = vand.u32 4294901760, %v1173_v56  ;;  %v1180_v56 = vand.u32 4294901760, %v1179_v61 }
 0x1c7   : > { %1017 = vmatmul.f32.vlgmr.msra.gmra.mxu1 %v7646_v9  ;;  %1249 = vmatpush.msrb.mxu3 %v7776_v8  ;;  %v7979_v28 = vand.u32 4294901760, %v528_v3  ;;  %v1398_v59 = vand.u32 4294901760, %v7956_v5  ;;  %v1404_v27 = vand.u32 4294901760, %v7971_v24 }
 0x1c8   : > { %1117 = vmatpush.msrb.mxu0 %v7835_v10  ;;  %1151 = vmatpush.msrb.mxu1 %v1150_v54 }
 0x1c9   : > { %1220 = vmatpush.msrb.mxu2 %v7858_v22  ;;  %1251 = vmatpush.msrb.mxu3 %v7793_v34 }
 0x1ca   : > { %1119 = vmatpush.msrb.mxu0 %v7863_v7  ;;  %1157 = vmatpush.msrb.mxu1 %v1156_v60  ;;  %v523_v60 = vsel %vm504_vm8, %v7736_v11, %v7920_v16  ;;  %v7992_v11 = vsub.f32 %v533_v58, %v7958_v43  ;;  %v1186_v58 = vand.u32 4294901760, %v1185_v20 }
 0x1cb   : > { %1223 = vmatpush.msrb.mxu2 %v7876_v32  ;;  %1253 = vmatpush.msrb.mxu3 %v7800_v63 }
 0x1cc   : > { %1121 = vmatpush.msrb.mxu0 %v7873_v48  ;;  %1163 = vmatpush.msrb.mxu1 %v1162_v13  ;;  %v518_v13 = vsel %vm504_vm8, %v7774_v1, %v7953_v30  ;;  %v1410_v20 = vand.u32 4294901760, %v7992_v11 }
 0x1cd   : > { %1226 = vmatpush.msrb.mxu2 %v7896_v53  ;;  %6972 = vset.pattern.permute.xlu2 %v11740_v52 }
 0x1ce   : > { %1255 = vmatpush.msrb.mxu3 %v7822_v40  ;;  %393 = vperm.xlu2 %6972, %v216_v29   ;;  %v7968_v54 = vpop.permute.xlu0 %416  ;;  %v7989_v29 = vpop.permute.xlu1 %404 }
 0x1cf   : > { %1123 = vmatpush.msrb.mxu0 %v7883_v26  ;;  %1169 = vmatpush.msrb.mxu1 %v1168_v46  ;;  %v513_v1 = vsel %vm504_vm8, %v7832_v15, %v7968_v54  ;;  %v8006_v46 = vsub.f32 %v528_v3, %v7979_v28  ;;  %v1393_v15 = vsub.f32 %v7944_v47, %v1392_v4  ;;  %v1192_v3 = vand.u32 4294901760, %v1191_v14 }
 0x1d0   : > { %1229 = vmatpush.msrb.mxu2 %v7906_v0  ;;  %1257 = vmatpush.msrb.mxu3 %v7835_v10  ;;  %v508_v61 = vsel %vm504_vm8, %v7853_v62, %v7989_v29  ;;  %v1399_v62 = vsub.f32 %v7956_v5, %v1398_v59  ;;  %v1405_v14 = vsub.f32 %v7971_v24, %v1404_v27 }
 0x1d1   : > { %1281 = vmatpush.msra.mxu0 %v1142_v57  ;;  %1175 = vmatpush.msrb.mxu1 %v1174_v45  ;;  %v8000_v57 = vand.u32 4294901760, %v523_v60  ;;  %v8021_v45 = vand.u32 4294901760, %v513_v1  ;;  %v8033_v55 = vand.u32 4294901760, %v508_v61  ;;  %v1416_v52 = vand.u32 4294901760, %v8006_v46 }
 0x1d2   : > { %1232 = vmatpush.msrb.mxu2 %v7923_v31  ;;  %1259 = vmatpush.msrb.mxu3 %v7863_v7  ;;  %v1400_v49 = vand.u32 4294901760, %v1399_v62 }
 0x1d3   : > { %1285 = vmatpush.msra.mxu0 %v1148_v25  ;;  %1181 = vmatpush.msrb.mxu1 %v1180_v56  ;;  %v8016_v25 = vand.u32 4294901760, %v518_v13  ;;  %v8030_v56 = vsub.f32 %v523_v60, %v8000_v57 }
 0x1d4   : > { %1357 = vmatpush.msra.mxu2 %v7909_v38  ;;  %1261 = vmatpush.msrb.mxu3 %v7873_v48 }
 0x1d5   : > { %1235 = vmatmul.f32.vlgmr.msrb.gmra.mxu2 %v7618_v44  ;;  %1289 = vmatpush.msra.mxu0 %v1154_v35  ;;  %v1394_v35 = vand.u32 4294901760, %v1393_v15  ;;  %v8043_v60 = vsub.f32 %v518_v13, %v8016_v25  ;;  %v8057_v13 = vsub.f32 %v508_v61, %v8033_v55  ;;  %v1422_v15 = vand.u32 4294901760, %v8030_v56  ;;  %v1885_v61 = vld [vmem:[#allocation2 + $0x28] sm:$0xff] }
 0x1d6   : > { %1359 = vmatpush.msra.mxu2 %v7925_v19  ;;  %1129 = vmatmul.f32.vlgmr.msrb.gmra.mxu0 %v7690_v39 }
 0x1d7   : > { %1187 = vmatpush.msrb.mxu1 %v1186_v58  ;;  %1263 = vmatpush.msrb.mxu3 %v7883_v26  ;;  %v8047_v58 = vsub.f32 %v513_v1, %v8021_v45  ;;  %v1406_v1 = vand.u32 4294901760, %v1405_v14  ;;  %v1423_v32 = vsub.f32 %v8030_v56, %v1422_v15 }
 0x1d8   : > { %1293 = vmatpush.msra.mxu0 %v1160_v42  ;;  %1361 = vmatpush.msra.mxu2 %v7941_v36  ;;  %v1411_v42 = vsub.f32 %v7992_v11, %v1410_v20 }
 0x1d9   : > { %1193 = vmatpush.msrb.mxu1 %v1192_v3  ;;  %1267 = vmatmul.f32.vlgmr.msrb.gmra.mxu3 %v7646_v9  ;;  %v1417_v3 = vsub.f32 %v8006_v46, %v1416_v52  ;;  %v1434_v22 = vand.u32 4294901760, %v8047_v58  ;;  %v1424_v0 = vand.u32 4294901760, %v1423_v32 }
 0x1da   : > { %1395 = vmatpush.msra.mxu3 %v1394_v35  ;;  %1195 = vmatmul.f32.vlgmr.msrb.gmra.mxu1 %v7593_v2 }
 0x1db   : > { %1297 = vmatpush.msra.mxu0 %v1166_v12  ;;  %1327 = vmatpush.msra.mxu1 %v7764_v23  ;;  %v1428_v23 = vand.u32 4294901760, %v8043_v60  ;;  %v1412_v12 = vand.u32 4294901760, %v1411_v42 }
 0x1dc   : > { %1363 = vmatpush.msra.mxu2 %v7958_v43  ;;  %1401 = vmatpush.msra.mxu3 %v1400_v49 }
 0x1dd   : > { %1301 = vmatpush.msra.mxu0 %v1172_v37  ;;  %1329 = vmatpush.msra.mxu1 %v7776_v8  ;;  %v1440_v37 = vand.u32 4294901760, %v8057_v13  ;;  %v1418_v8 = vand.u32 4294901760, %v1417_v3  ;;  %v1429_v53 = vsub.f32 %v8043_v60, %v1428_v23 }
 0x1de   : > { %1365 = vmatpush.msra.mxu2 %v7979_v28  ;;  %1407 = vmatpush.msra.mxu3 %v1406_v1 }
 0x1df   : > { %1305 = vmatpush.msra.mxu0 %v1178_v51  ;;  %1331 = vmatpush.msra.mxu1 %v7793_v34  ;;  %v1435_v34 = vsub.f32 %v8047_v58, %v1434_v22  ;;  %v1430_v51 = vand.u32 4294901760, %v1429_v53 }
 0x1e0   : > { %1367 = vmatpush.msra.mxu2 %v8000_v57  ;;  %1413 = vmatpush.msra.mxu3 %v1412_v12 }
 0x1e1   : > { %1309 = vmatpush.msra.mxu0 %v1184_v6  ;;  %1333 = vmatpush.msra.mxu1 %v7800_v63  ;;  %v1441_v63 = vsub.f32 %v8057_v13, %v1440_v37  ;;  %v1436_v6 = vand.u32 4294901760, %v1435_v34 }
 0x1e2   : > { %1369 = vmatpush.msra.mxu2 %v8016_v25  ;;  %1419 = vmatpush.msra.mxu3 %v1418_v8 }
 0x1e3   : > { %1313 = vmatpush.msra.mxu0 %v1190_v33  ;;  %1335 = vmatpush.msra.mxu1 %v7822_v40  ;;  %v1442_v40 = vand.u32 4294901760, %v1441_v63 }
 0x1e4   : > { %1371 = vmatpush.msra.mxu2 %v8021_v45  ;;  %1315 = vmatmul.f32.vlgmr.msra.gmra.mxu0 %v7593_v2 }
 0x1e5   : > { %1425 = vmatpush.msra.mxu3 %v1424_v0  ;;  %1458 = vmatpush.msrb.mxu0 %v7944_v47  ;;  %v11765_v47 = vmov 0  }
 0x1e6   : > { %1337 = vmatpush.msra.mxu1 %v7835_v10  ;;  %1373 = vmatpush.msra.mxu2 %v8033_v55 }
 0x1e7   : > { %1379 = vmatmul.f32.vlgmr.msra.gmra.mxu2 %v7690_v39  ;;  %1431 = vmatpush.msra.mxu3 %v1430_v51 }
 0x1e8   : > { %1461 = vmatpush.msrb.mxu0 %v7956_v5  ;;  %1531 = vmatpush.msrb.mxu2 %v1392_v4 }
 0x1e9   : > { %1339 = vmatpush.msra.mxu1 %v7863_v7  ;;  %1437 = vmatpush.msra.mxu3 %v1436_v6 }
 0x1ea   : > { %1464 = vmatpush.msrb.mxu0 %v7971_v24  ;;  %1535 = vmatpush.msrb.mxu2 %v1398_v59  ;;  %v6913_v24 = vld [vmem:[%s11728_s3 + $0x8] sm:$0xff] }
 0x1eb   : > { %1341 = vmatpush.msra.mxu1 %v7873_v48  ;;  %1443 = vmatpush.msra.mxu3 %v1442_v40 }
 0x1ec   : > { %1467 = vmatpush.msrb.mxu0 %v7992_v11  ;;  %1539 = vmatpush.msrb.mxu2 %v1404_v27 }
 0x1ed   : > { %1343 = vmatpush.msra.mxu1 %v7883_v26  ;;  %1445 = vmatmul.f32.vlgmr.msra.gmra.mxu3 %v7593_v2 }
 0x1ee   : > { %1577 = vmatpush.msrb.mxu3 %v7909_v38  ;;  %1345 = vmatmul.f32.vlgmr.msra.gmra.mxu1 %v7593_v2 }
 0x1ef   : > { %1470 = vmatpush.msrb.mxu0 %v8006_v46  ;;  %1497 = vmatpush.msrb.mxu1 %v7909_v38 }
 0x1f0   : > { %1543 = vmatpush.msrb.mxu2 %v1410_v20  ;;  %1579 = vmatpush.msrb.mxu3 %v7925_v19 }
 0x1f1   : > { %1473 = vmatpush.msrb.mxu0 %v8030_v56  ;;  %1499 = vmatpush.msrb.mxu1 %v7925_v19 }
 0x1f2   : > { %1547 = vmatpush.msrb.mxu2 %v1416_v52  ;;  %1581 = vmatpush.msrb.mxu3 %v7941_v36 }
 0x1f3   : > { %1476 = vmatpush.msrb.mxu0 %v8043_v60  ;;  %1501 = vmatpush.msrb.mxu1 %v7941_v36  ;;  %v503_v10 = vpop.permute.xlu2 %502 }
 0x1f4   : > { %1551 = vmatpush.msrb.mxu2 %v1422_v15  ;;  %1583 = vmatpush.msrb.mxu3 %v7958_v43  ;;  %v549_v7 = vsel %vm504_vm8, %v7739_v50, %v503_v10 }
 0x1f5   : > { %1479 = vmatpush.msrb.mxu0 %v8047_v58  ;;  %1503 = vmatpush.msrb.mxu1 %v7958_v43  ;;  %v8134_v48 = vand.u32 4294901760, %v549_v7 }
 0x1f6   : > { %1555 = vmatpush.msrb.mxu2 %v1428_v23  ;;  %1585 = vmatpush.msrb.mxu3 %v7979_v28 }
 0x1f7   : > { %1482 = vmatpush.msrb.mxu0 %v8057_v13  ;;  %1505 = vmatpush.msrb.mxu1 %v7979_v28  ;;  %v8142_v26 = vsub.f32 %v549_v7, %v8134_v48  ;;  %v1874_v28 = vld [vmem:[#allocation2 + $0x30] sm:$0xff] }
 0x1f8   : > { %1559 = vmatpush.msrb.mxu2 %v1434_v22  ;;  %1485 = vmatmul.f32.vlgmr.msrb.gmra.mxu0 %v7618_v44 }
 0x1f9   : > { %1587 = vmatpush.msrb.mxu3 %v8000_v57  ;;  %1507 = vmatpush.msrb.mxu1 %v8000_v57  ;;  %v1642_v50 = vand.u32 4294901760, %v8142_v26  ;;  %v491_v38 = vpop.permute.xlu0 %490 }
 0x1fa   : > { %1563 = vmatpush.msrb.mxu2 %v1440_v37  ;;  %v544_v31 = vsel %vm504_vm8, %v7781_v21, %v491_v38  ;;  %1607 = vmatpush.msra.mxu0 %v8134_v48 }
 0x1fb   : > { %1589 = vmatpush.msrb.mxu3 %v8016_v25  ;;  %1509 = vmatpush.msrb.mxu1 %v8016_v25  ;;  %v1643_v19 = vsub.f32 %v8142_v26, %v1642_v50  ;;  %v8160_v36 = vand.u32 4294901760, %v544_v31 }
 0x1fc   : > { %1565 = vmatmul.f32.vlgmr.msrb.gmra.mxu2 %v7593_v2  ;;  %6973 = vset.pattern.permute.xlu0 %v11765_v47  ;;  %v467_v4 = vpop.permute.xlu2 %466 }
 0x1fd   : > { %1591 = vmatpush.msrb.mxu3 %v8021_v45  ;;  %1511 = vmatpush.msrb.mxu1 %v8021_v45  ;;  %v8167_v21 = vsub.f32 %v544_v31, %v8160_v36  ;;  %v1644_v52 = vand.u32 4294901760, %v1643_v19  ;;  %v534_v59 = vsel %vm504_vm8, %v7842_v17, %v467_v4 }
 0x1fe   : > { %1609 = vmatpush.msra.mxu0 %v8160_v36  ;;  %1708 = vmatpush.msra.mxu2 %v8142_v26  ;;  %v8192_v46 = vand.u32 4294901760, %v534_v59 }
 0x1ff   : > { %1593 = vmatpush.msrb.mxu3 %v8033_v55  ;;  %1513 = vmatpush.msrb.mxu1 %v8033_v55  ;;  %v1648_v33 = vand.u32 4294901760, %v8167_v21 }
 0x200   : > { %1595 = vmatmul.f32.vlgmr.msrb.gmra.mxu3 %v7593_v2  ;;  %1517 = vmatmul.f32.vlgmr.msrb.gmra.mxu1 %v7646_v9  ;;  %v8200_v25 = vsub.f32 %v534_v59, %v8192_v46 }
 0x201   : > { %1747 = vmatpush.msra.mxu3 %v8134_v48  ;;  %1711 = vmatpush.msra.mxu2 %v8167_v21  ;;  %v1649_v5 = vsub.f32 %v8167_v21, %v1648_v33  ;;  %v455_v11 = vpop.permute.xlu0 %454 }
 0x202   : > { %1645 = vmatpush.msra.mxu1 %v1644_v52  ;;  %6974 = vset.pattern.permute.xlu1 %v11765_v47  ;;  %v529_v57 = vsel %vm504_vm8, %v7898_v41, %v455_v11  ;;  %v1660_v14 = vand.u32 4294901760, %v8200_v25 }
 0x203   : > { %1749 = vmatpush.msra.mxu3 %v8160_v36  ;;  %v1650_v43 = vand.u32 4294901760, %v1649_v5  ;;  %1861 = vperm.xlu0 %6973, %v6913_v24   ;;  %v8194_v27 = vand.u32 4294901760, %v529_v57 }
 0x204   : > { %1909 = vrot.lane.b32.xlu2 %v1874_v28, %s7026_s7  ;;  %1892 = vrot.lane.b32.xlu1 %v1874_v28, %s7025_s6  ;;  %v1661_v42 = vsub.f32 %v8200_v25, %v1660_v14 }
 0x205   : > { %1651 = vmatpush.msra.mxu1 %v1650_v43  ;;  %v431_v45 = vpop.permute.xlu2 %430  ;;  %v8205_v41 = vsub.f32 %v529_v57, %v8194_v27 }
 0x206   : > { %v519_v55 = vsel %vm504_vm8, %v7953_v30, %v431_v45  ;;  %v1662_v32 = vand.u32 4294901760, %v1661_v42 }
 0x207   : > { %v8219_v60 = vand.u32 4294901760, %v519_v55  ;;  %v1666_v58 = vand.u32 4294901760, %v8205_v41 }
 0x209   : > { %v419_v20 = vpop.permute.xlu0 %418  ;;  %v8240_v15 = vsub.f32 %v519_v55, %v8219_v60  ;;  %v1667_v23 = vsub.f32 %v8205_v41, %v1666_v58 }
 0x20b   : > { %2024 = vrot.lane.b32.xlu0 %v1885_v61, %s7031_s12  ;;  %v1678_v8 = vand.u32 4294901760, %v8240_v15 }
 0x20c   : > { %1926 = vrot.lane.b32.xlu2 %v1874_v28, %s7027_s8  ;;  %2031 = vrot.lane.b32.xlu1 %v1874_v28, %s7033_s14 }
 0x20d   : > { %v1679_v51 = vsub.f32 %v8240_v15, %v1678_v8 }
 0x20f   : > { %v1680_v52 = vand.u32 4294901760, %v1679_v51 }
 0x213   : > { %v479_v62 = vpop.permute.xlu1 %478  ;;  %1973 = vrot.lane.b32.xlu0 %v1885_v61, %s7029_s10 }
 0x214   : > { %v539_v17 = vsel %vm504_vm8, %v7786_v18, %v479_v62  ;;  %v514_v18 = vsel %vm504_vm8, %v7968_v54, %v419_v20  ;;  %2007 = vrot.lane.b32.xlu2 %v1885_v61, %s7032_s13  ;;  %1990 = vrot.lane.b32.xlu1 %v1885_v61, %s7030_s11 }
 0x215   : > { %v8207_v56 = vand.u32 4294901760, %v539_v17  ;;  %v8227_v49 = vand.u32 4294901760, %v514_v18 }
 0x217   : > { %v8212_v35 = vsub.f32 %v539_v17, %v8207_v56  ;;  %1611 = vmatpush.msra.mxu0 %v8207_v56  ;;  %1751 = vmatpush.msra.mxu3 %v8207_v56  ;;  %v8252_v12 = vsub.f32 %v514_v18, %v8227_v49  ;;  %v736_v43 = vpop.f32.mrf.mxu2 }
 0x219   : > { %1613 = vmatpush.msra.mxu0 %v8192_v46  ;;  %1714 = vmatpush.msra.mxu2 %v8212_v35  ;;  %v1654_v30 = vand.u32 4294901760, %v8212_v35  ;;  %v1684_v34 = vand.u32 4294901760, %v8252_v12 }
 0x21a   : > { %1753 = vmatpush.msra.mxu3 %v8192_v46 }
 0x21b   : > { %1615 = vmatpush.msra.mxu0 %v8194_v27  ;;  %1717 = vmatpush.msra.mxu2 %v8200_v25  ;;  %v1655_v54 = vsub.f32 %v8212_v35, %v1654_v30  ;;  %v443_v13 = vpop.permute.xlu1 %442  ;;  %v1685_v38 = vsub.f32 %v8252_v12, %v1684_v34  ;;  %v204_v35 = vld [vmem:[%s11726_s1 + $0x8] sm:$0xff] }
 0x21c   : > { %1755 = vmatpush.msra.mxu3 %v8194_v27  ;;  %v524_v1 = vsel %vm504_vm8, %v7920_v16, %v443_v13  ;;  %v1668_v16 = vand.u32 4294901760, %v1667_v23 }
 0x21d   : > { %1720 = vmatpush.msra.mxu2 %v8205_v41  ;;  %v1656_v3 = vand.u32 4294901760, %v1655_v54  ;;  %v8249_v22 = vand.u32 4294901760, %v524_v1  ;;  %v1686_v4 = vand.u32 4294901760, %v1685_v38  ;;  %v206_v38 = vld [vmem:[%s11726_s1 + $0x18] sm:$0xff] }
 0x21f   : > { %1657 = vmatpush.msra.mxu1 %v1656_v3  ;;  %v1671_v37 = vsub.f32 %v524_v1, %v8249_v22  ;;  %1617 = vmatpush.msra.mxu0 %v8249_v22 }
 0x220   : > { %1757 = vmatpush.msra.mxu3 %v8249_v22 }
 0x221   : > { %1663 = vmatpush.msra.mxu1 %v1662_v32  ;;  %1619 = vmatpush.msra.mxu0 %v8219_v60  ;;  %v1672_v53 = vand.u32 4294901760, %v1671_v37  ;;  %v630_v0 = vpop.f32.mrf.mxu0 }
 0x222   : > { %1723 = vmatpush.msra.mxu2 %v1671_v37  ;;  %1759 = vmatpush.msra.mxu3 %v8219_v60 }
 0x223   : > { %1669 = vmatpush.msra.mxu1 %v1668_v16  ;;  %1621 = vmatpush.msra.mxu0 %v8227_v49  ;;  %v1673_v63 = vsub.f32 %v1671_v37, %v1672_v53 }
 0x224   : > { %1726 = vmatpush.msra.mxu2 %v8240_v15  ;;  %1761 = vmatpush.msra.mxu3 %v8227_v49  ;;  %v696_v6 = vpop.f32.mrf.mxu1 }
 0x225   : > { %v1674_v10 = vand.u32 4294901760, %v1673_v63 }
 0x226   : > { %v407_v40 = vpop.permute.xlu1 %406  ;;  %1729 = vmatpush.msra.mxu2 %v8252_v12 }
 0x227   : > { %v509_v7 = vsel %vm504_vm8, %v7989_v29, %v407_v40  ;;  %1675 = vmatpush.msra.mxu1 %v1674_v10  ;;  %v768_v28 = vpop.f32.mrf.mxu3 }
 0x228   : > { %v8269_v31 = vpop.permute.xlu2 %393  ;;  %v1622_v19 = vand.u32 4294901760, %v509_v7 }
 0x229   : > { %v631_v47 = vadd.f32 %v630_v0, %v8269_v31  ;;  %1681 = vmatpush.msra.mxu1 %v1680_v52 }
 0x22a   : > { %v1689_v5 = vsub.f32 %v509_v7, %v1622_v19  ;;  %1623 = vmatpush.msra.mxu0 %v1622_v19  ;;  %1763 = vmatpush.msra.mxu3 %v1622_v19  ;;  %v816_v59 = vpop.f32.mrf.mxu0 }
 0x22b   : > { %v697_v24 = vadd.f32 %v696_v6, %v631_v47  ;;  %1629 = vmatmul.f32.vlgmr.msra.gmra.mxu0 %v7690_v39  ;;  %1687 = vmatpush.msra.mxu1 %v1686_v4 }
 0x22c   : > { %1781 = vmatpush.msrb.mxu0 %v1642_v50  ;;  %1732 = vmatpush.msra.mxu2 %v1689_v5  ;;  %v1690_v29 = vand.u32 4294901760, %v1689_v5 }
 0x22d   : > { %v737_v11 = vadd.f32 %v736_v43, %v697_v24  ;;  %1735 = vmatmul.f32.vlgmr.msra.gmra.mxu2 %v7618_v44  ;;  %1767 = vmatmul.f32.vlgmr.msra.gmra.mxu3 %v7646_v9  ;;  %v846_v61 = vpop.f32.mrf.mxu1  ;;  %v203_v44 = vld [vmem:[%s11726_s1] sm:$0xff] }
 0x22e   : > { %1785 = vmatpush.msrb.mxu0 %v1648_v33  ;;  %v1691_v57 = vsub.f32 %v1689_v5, %v1690_v29 }
 0x22f   : > { %v769_v39 = vadd.f32 %v768_v28, %v737_v11 }
 0x230   : > { %1789 = vmatpush.msrb.mxu0 %v1654_v30  ;;  %v1692_v26 = vand.u32 4294901760, %v1691_v57 }
 0x231   : > { %v817_v50 = vadd.f32 %v816_v59, %v769_v39 }
 0x232   : > { %1793 = vmatpush.msrb.mxu0 %v1660_v14  ;;  %1693 = vmatpush.msra.mxu1 %v1692_v26 }
 0x233   : > { %v847_v45 = vadd.f32 %v846_v61, %v817_v50  ;;  %1695 = vmatmul.f32.vlgmr.msra.gmra.mxu1 %v7593_v2 }
 0x234   : > { %1797 = vmatpush.msrb.mxu0 %v1666_v58  ;;  %1827 = vmatpush.msrb.mxu1 %v8134_v48 }
 0x235   : > { %v1849_v9 = vmax.f32 %v847_v45, 0.0 }
 0x236   : > { %1801 = vmatpush.msrb.mxu0 %v1672_v53  ;;  %1829 = vmatpush.msrb.mxu1 %v8160_v36 }
 0x237   : > { %v1854_v21 = vmul.f32 %v1849_v9, %v203_v44 }
 0x238   : > { %1805 = vmatpush.msrb.mxu0 %v1678_v8  ;;  %1831 = vmatpush.msrb.mxu1 %v8207_v56 }
 0x239   : > { %1911 = vrot.lane.b32.xlu0 %v1854_v21, %s7026_s7  ;;  %1894 = vrot.lane.b32.xlu2 %v1854_v21, %s7025_s6 }
 0x23a   : > { %v880_v33 = vpop.f32.mrf.mxu2  ;;  %1809 = vmatpush.msrb.mxu0 %v1684_v34  ;;  %1833 = vmatpush.msrb.mxu1 %v8192_v46 }
 0x23b   : > { %v881_v25 = vadd.f32 %v880_v33, %v8269_v31  ;;  %2014 = vrot.lane.b32.xlu1 %v1854_v21, %s7031_s12 }
 0x23c   : > { %1813 = vmatpush.msrb.mxu0 %v1690_v29  ;;  %1835 = vmatpush.msrb.mxu1 %v8194_v27 }
 0x23d   : > { %v946_v48 = vpop.f32.mrf.mxu3  ;;  %1815 = vmatmul.f32.vlgmr.msrb.gmra.mxu0 %v7593_v2 }
 0x23e   : > { %v947_v36 = vadd.f32 %v946_v48, %v881_v25  ;;  %1837 = vmatpush.msrb.mxu1 %v8249_v22  ;;  %v205_v22 = vld [vmem:[%s11726_s1 + $0x10] sm:$0xff] }
 0x240   : > { %v986_v62 = vpop.f32.mrf.mxu0  ;;  %1839 = vmatpush.msrb.mxu1 %v8219_v60 }
 0x241   : > { %v987_v17 = vadd.f32 %v986_v62, %v947_v36  ;;  %1928 = vrot.lane.b32.xlu0 %v1854_v21, %s7027_s8  ;;  %1980 = vrot.lane.b32.xlu2 %v1854_v21, %s7030_s11 }
 0x242   : > { %1841 = vmatpush.msrb.mxu1 %v8227_v49 }
 0x243   : > { %1963 = vrot.lane.b32.xlu1 %v1854_v21, %s7029_s10 }
 0x244   : > { %v1018_v46 = vpop.f32.mrf.mxu1  ;;  %1843 = vmatpush.msrb.mxu1 %v1622_v19 }
 0x245   : > { %v1066_v27 = vpop.f32.mrf.mxu2  ;;  %v1019_v41 = vadd.f32 %v1018_v46, %v987_v17  ;;  %1845 = vmatmul.f32.vlgmr.msrb.gmra.mxu1 %v7593_v2 }
 0x247   : > { %v1067_v20 = vadd.f32 %v1066_v27, %v1019_v41  ;;  %v1096_v56 = vpop.f32.mrf.mxu3 }
 0x249   : > { %v1097_v55 = vadd.f32 %v1096_v56, %v1067_v20  ;;  %1997 = vrot.lane.b32.xlu0 %v1854_v21, %s7032_s13  ;;  %2033 = vrot.lane.b32.xlu2 %v1854_v21, %s7033_s14 }
 0x24b   : > { %v1850_v14 = vmax.f32 %v1097_v55, 0.0 }
 0x24d   : > { %v1855_v18 = vmul.f32 %v1850_v14, %v204_v35 }
 0x24f   : > { %1896 = vrot.lane.b32.xlu1 %v1855_v18, %s7025_s6 }
 0x251   : > { %1943 = vrot.lane.b32.xlu0 %v1854_v21, %s7028_s9  ;;  %2016 = vrot.lane.b32.xlu2 %v1855_v18, %s7031_s12 }
 0x253   : > { %v1130_v2 = vpop.f32.mrf.mxu0 }
 0x254   : > { %v1131_v60 = vadd.f32 %v1130_v2, %v8269_v31 }
 0x257   : > { %1913 = vrot.lane.b32.xlu1 %v1855_v18, %s7026_s7  ;;  %v1196_v30 = vpop.f32.mrf.mxu1 }
 0x258   : > { %v1197_v58 = vadd.f32 %v1196_v30, %v1131_v60  ;;  %v1236_v49 = vpop.f32.mrf.mxu2 }
 0x259   : > { %1982 = vrot.lane.b32.xlu0 %v1855_v18, %s7030_s11  ;;  %1965 = vrot.lane.b32.xlu2 %v1855_v18, %s7029_s10 }
 0x25a   : > { %v1237_v54 = vadd.f32 %v1236_v49, %v1197_v58 }
 0x25c   : > { %v1268_v42 = vpop.f32.mrf.mxu3 }
 0x25d   : > { %v1269_v15 = vadd.f32 %v1268_v42, %v1237_v54 }
 0x25e   : > { %v8340_v52 = vpop.permute.xlu2 %1909 }
 0x25f   : > { %1999 = vrot.lane.b32.xlu1 %v1855_v18, %s7032_s13 }
 0x261   : > { %1930 = vrot.lane.b32.xlu2 %v1855_v18, %s7027_s8  ;;  %v1316_v13 = vpop.f32.mrf.mxu0 }
 0x262   : > { %v1317_v1 = vadd.f32 %v1316_v13, %v1269_v15 }
 0x266   : > { %v8349_v24 = vpop.permute.xlu2 %1926 }
 0x267   : > { %1945 = vrot.lane.b32.xlu1 %v1855_v18, %s7028_s9 }
 0x26a   : > { %v1380_v37 = vpop.f32.mrf.mxu2 }
 0x26b   : > { %v1346_v3 = vpop.f32.mrf.mxu1  ;;  %v1381_v8 = vadd.f32 %v1380_v37, %v8269_v31 }
 0x26c   : > { %v1347_v23 = vadd.f32 %v1346_v3, %v1317_v1 }
 0x26e   : > { %v1851_v12 = vmax.f32 %v1347_v23, 0.0  ;;  %v8357_v29 = vpop.permute.xlu2 %2007 }
 0x26f   : > { %2035 = vrot.lane.b32.xlu1 %v1855_v18, %s7033_s14 }
 0x270   : > { %v1856_v32 = vmul.f32 %v1851_v12, %v205_v22  ;;  %v1446_v16 = vpop.f32.mrf.mxu3 }
 0x271   : > { %v1447_v34 = vadd.f32 %v1446_v16, %v1381_v8 }
 0x272   : > { %2018 = vrot.lane.b32.xlu0 %v1856_v32, %s7031_s12  ;;  %1898 = vrot.lane.b32.xlu2 %v1856_v32, %s7025_s6 }
 0x275   : > { %v1486_v53 = vpop.f32.mrf.mxu0  ;;  %v8342_v5 = vpop.permute.xlu0 %1861 }
 0x276   : > { %v1487_v0 = vadd.f32 %v1486_v53, %v1447_v34  ;;  %v8344_v43 = vpop.permute.xlu1 %1892 }
 0x277   : > { %2001 = vrot.lane.b32.xlu1 %v1856_v32, %s7032_s13 }
 0x27a   : > { %1967 = vrot.lane.b32.xlu0 %v1856_v32, %s7029_s10  ;;  %1915 = vrot.lane.b32.xlu2 %v1856_v32, %s7026_s7 }
 0x27d   : > { %v1518_v63 = vpop.f32.mrf.mxu1  ;;  %v8351_v4 = vpop.permute.xlu0 %2024 }
 0x27e   : > { %v1519_v51 = vadd.f32 %v1518_v63, %v1487_v0  ;;  %v8353_v28 = vpop.permute.xlu1 %2031 }
 0x27f   : > { %v1566_v6 = vpop.f32.mrf.mxu2  ;;  %1947 = vrot.lane.b32.xlu1 %v1856_v32, %s7028_s9 }
 0x280   : > { %v1567_v40 = vadd.f32 %v1566_v6, %v1519_v51 }
 0x282   : > { %1932 = vrot.lane.b32.xlu0 %v1856_v32, %s7027_s8  ;;  %1984 = vrot.lane.b32.xlu2 %v1856_v32, %s7030_s11 }
 0x283   : > { %v1596_v10 = vpop.f32.mrf.mxu3 }
 0x284   : > { %v1597_v7 = vadd.f32 %v1596_v10, %v1567_v40 }
 0x285   : > { %v8359_v11 = vpop.permute.xlu0 %1973 }
 0x286   : > { %v1852_v19 = vmax.f32 %v1597_v7, 0.0  ;;  %v8363_v59 = vpop.permute.xlu1 %1990 }
 0x288   : > { %v1857_v47 = vmul.f32 %v1852_v19, %v206_v38 }
 0x28a   : > { %2037 = vrot.lane.b32.xlu0 %v1856_v32, %s7033_s14  ;;  %2020 = vrot.lane.b32.xlu2 %v1857_v47, %s7031_s12 }
 0x28b   : > { %2003 = vrot.lane.b32.xlu1 %v1857_v47, %s7032_s13 }
 0x292   : > { %1900 = vrot.lane.b32.xlu0 %v1857_v47, %s7025_s6  ;;  %1986 = vrot.lane.b32.xlu2 %v1857_v47, %s7030_s11 }
 0x293   : > { %1949 = vrot.lane.b32.xlu1 %v1857_v47, %s7028_s9  ;;  %v8365_v57 = vpop.permute.xlu2 %1894 }
 0x294   : > { %v1904_v10 = vsel %vm256_vm7, %v8344_v43, %v8365_v57 }
 0x29a   : > { %1917 = vrot.lane.b32.xlu0 %v1857_v47, %s7026_s7  ;;  %1934 = vrot.lane.b32.xlu2 %v1857_v47, %s7027_s8 }
 0x29b   : > { %v1981_v44 = vpop.permute.xlu2 %1980 }
 0x2a2   : > { %1969 = vrot.lane.b32.xlu0 %v1857_v47, %s7029_s10  ;;  %2039 = vrot.lane.b32.xlu2 %v1857_v47, %s7033_s14 }
 0x2a3   : > { %v8373_v46 = vpop.permute.xlu2 %2033 }
 0x2a8   : > { %v1630_v26 = vpop.f32.mrf.mxu0 }
 0x2a9   : > { %v1631_v9 = vadd.f32 %v1630_v26, %v8269_v31  ;;  %v207_v31 = vld [vmem:[%s11726_s1 + $0x20] sm:$0xff] }
 0x2ab   : > { %v8367_v39 = vpop.permute.xlu0 %1911  ;;  %v8382_v2 = vpop.permute.xlu2 %2016 }
 0x2ac   : > { %v1921_v63 = vsel %vm274_vm6, %v8340_v52, %v8367_v39 }
 0x2ad   : > { %v8369_v61 = vpop.permute.xlu1 %2014 }
 0x2ae   : > { %v2026_v52 = vsel %vm385_vm0, %v8369_v61, %v8382_v2 }
 0x2b0   : > { %v1696_v45 = vpop.f32.mrf.mxu1  ;;  %v1736_v25 = vpop.f32.mrf.mxu2 }
 0x2b1   : > { %v1697_v21 = vadd.f32 %v1696_v45, %v1631_v9  ;;  %v1768_v62 = vpop.f32.mrf.mxu3 }
 0x2b3   : > { %v1929_v50 = vpop.permute.xlu0 %1928  ;;  %v1737_v48 = vadd.f32 %v1736_v25, %v1697_v21  ;;  %v1966_v54 = vpop.permute.xlu2 %1965 }
 0x2b4   : > { %v1938_v8 = vsel %vm292_vm5, %v8349_v24, %v1929_v50 }
 0x2b5   : > { %v1964_v33 = vpop.permute.xlu1 %1963  ;;  %v1769_v27 = vadd.f32 %v1768_v62, %v1737_v48 }
 0x2b6   : > { %v1975_v42 = vsel %vm331_vm3, %v1964_v33, %v1966_v54 }
 0x2ba   : > { %v1816_v17 = vpop.f32.mrf.mxu0 }
 0x2bb   : > { %v1998_v36 = vpop.permute.xlu0 %1997  ;;  %v1817_v41 = vadd.f32 %v1816_v17, %v1769_v27  ;;  %v8402_v1 = vpop.permute.xlu2 %1930 }
 0x2bc   : > { %2115 = vrot.lane.b32.xlu2 %v1998_v36, %s7033_s14  ;;  %v1939_v23 = vsel %vm292_vm5, %v1929_v50, %v8402_v1 }
 0x2c1   : > { %v8375_v20 = vpop.permute.xlu1 %1896 }
 0x2c2   : > { %v1846_v56 = vpop.f32.mrf.mxu1  ;;  %v1905_v53 = vsel %vm256_vm7, %v8365_v57, %v8375_v20 }
 0x2c3   : > { %v1847_v55 = vadd.f32 %v1846_v56, %v1817_v41  ;;  %v1944_v35 = vpop.permute.xlu0 %1943 }
 0x2c5   : > { %v1853_v14 = vmax.f32 %v1847_v55, 0.0 }
 0x2c7   : > { %v8380_v18 = vmul.f32 %v1853_v14, %v207_v31 }
 0x2c9   : > { %v8384_v60 = vpop.permute.xlu1 %1913  ;;  %1902 = vrot.lane.b32.xlu1 %v8380_v18, %s7025_s6  ;;  %2022 = vrot.lane.b32.xlu0 %v8380_v18, %s7031_s12 }
 0x2ca   : > { %v1922_v32 = vsel %vm274_vm6, %v8367_v39, %v8384_v60 }
 0x2cb   : > { %v1983_v30 = vpop.permute.xlu0 %1982 }
 0x2cc   : > { %v1992_v58 = vsel %vm349_vm2, %v1981_v44, %v1983_v30  ;;  %v1899_v22 = vpop.permute.xlu2 %1898 }
 0x2cd   : > { %2105 = vrot.lane.b32.xlu2 %v1992_v58, %s7033_s14  ;;  %v1906_v57 = vsel %vm256_vm7, %v8375_v20, %v1899_v22 }
 0x2d1   : > { %v2000_v49 = vpop.permute.xlu1 %1999  ;;  %1919 = vrot.lane.b32.xlu1 %v8380_v18, %s7026_s7  ;;  %2005 = vrot.lane.b32.xlu0 %v8380_v18, %s7032_s13  ;;  %s7035_s13 = smov 56  }
 0x2d2   : > { %v2009_v7 = vsel %vm367_vm1, %v1998_v36, %v2000_v49 }
 0x2d4   : > { %v1916_v16 = vpop.permute.xlu2 %1915 }
 0x2d5   : > { %2093 = vrot.lane.b32.xlu2 %v1975_v42, %s7033_s14  ;;  %v1923_v50 = vsel %vm274_vm6, %v8384_v60, %v1916_v16 }
 0x2d9   : > { %v1946_v13 = vpop.permute.xlu1 %1945  ;;  %1988 = vrot.lane.b32.xlu0 %v8380_v18, %s7030_s11  ;;  %2103 = vrot.lane.b32.xlu1 %v1981_v44, %s7033_s14 }
 0x2da   : > { %v1953_v15 = vsel %vm308_vm4, %v1944_v35, %v1946_v13 }
 0x2dc   : > { %v1985_v51 = vpop.permute.xlu2 %1984 }
 0x2dd   : > { %2081 = vrot.lane.b32.xlu2 %v1953_v15, %s7033_s14  ;;  %v1993_v6 = vsel %vm349_vm2, %v1983_v30, %v1985_v51 }
 0x2e1   : > { %1971 = vrot.lane.b32.xlu0 %v8380_v18, %s7029_s10  ;;  %2091 = vrot.lane.b32.xlu1 %v1964_v33, %s7033_s14  ;;  %v8417_v37 = vpop.permute.xlu1 %2035 }
 0x2e4   : > { %v2019_v3 = vpop.permute.xlu0 %2018  ;;  %v2021_v43 = vpop.permute.xlu2 %2020 }
 0x2e5   : > { %2069 = vrot.lane.b32.xlu2 %v1939_v23, %s7033_s14  ;;  %v2027_v26 = vsel %vm385_vm0, %v8382_v2, %v2019_v3  ;;  %v2028_v21 = vsel %vm385_vm0, %v2019_v3, %v2021_v43 }
 0x2e9   : > { %1951 = vrot.lane.b32.xlu0 %v8380_v18, %s7028_s9  ;;  %2079 = vrot.lane.b32.xlu1 %v1944_v35, %s7033_s14  ;;  %v2002_v0 = vpop.permute.xlu1 %2001 }
 0x2ea   : > { %v2010_v47 = vsel %vm367_vm1, %v2000_v49, %v2002_v0 }
 0x2ec   : > { %v1968_v12 = vpop.permute.xlu0 %1967  ;;  %v1987_v45 = vpop.permute.xlu2 %1986 }
 0x2ed   : > { %2057 = vrot.lane.b32.xlu2 %v1922_v32, %s7033_s14  ;;  %v1976_v9 = vsel %vm331_vm3, %v1966_v54, %v1968_v12  ;;  %v1994_v20 = vsel %vm349_vm2, %v1985_v51, %v1987_v45 }
 0x2f1   : > { %1936 = vrot.lane.b32.xlu0 %v8380_v18, %s7027_s8  ;;  %2067 = vrot.lane.b32.xlu1 %v1938_v8, %s7033_s14  ;;  %v1948_v38 = vpop.permute.xlu1 %1947 }
 0x2f2   : > { %v1954_v19 = vsel %vm308_vm4, %v1946_v13, %v1948_v38 }
 0x2f4   : > { %v1933_v34 = vpop.permute.xlu0 %1932  ;;  %v1935_v36 = vpop.permute.xlu2 %1934 }
 0x2f5   : > { %2045 = vrot.lane.b32.xlu2 %v1905_v53, %s7033_s14  ;;  %v1940_v62 = vsel %vm292_vm5, %v8402_v1, %v1933_v34  ;;  %v1941_v56 = vsel %vm292_vm5, %v1933_v34, %v1935_v36 }
 0x2f9   : > { %2127 = vrot.lane.b32.xlu0 %v8369_v61, %s7033_s14  ;;  %2055 = vrot.lane.b32.xlu1 %v1921_v63, %s7033_s14 }
 0x2fc   : > { %v8437_v40 = vpop.permute.xlu0 %2037  ;;  %v8480_v41 = vpop.permute.xlu2 %2039 }
 0x2fd   : > { %2107 = vrot.lane.b32.xlu2 %v1993_v6, %s7033_s14  ;;  %v2004_v39 = vpop.permute.xlu1 %2003 }
 0x2fe   : > { %v2011_v44 = vsel %vm367_vm1, %v2002_v0, %v2004_v39 }
 0x301   : > { %2117 = vrot.lane.b32.xlu0 %v2009_v7, %s7033_s14  ;;  %2043 = vrot.lane.b32.xlu1 %v1904_v10, %s7033_s14 }
 0x304   : > { %v8451_v24 = vpop.permute.xlu0 %1900 }
 0x305   : > { %2083 = vrot.lane.b32.xlu2 %v1954_v19, %s7033_s14  ;;  %v1950_v33 = vpop.permute.xlu1 %1949  ;;  %v1907_v27 = vsel %vm256_vm7, %v1899_v22, %v8451_v24 }
 0x306   : > { %v1955_v25 = vsel %vm308_vm4, %v1948_v38, %v1950_v33 }
 0x309   : > { %2119 = vrot.lane.b32.xlu0 %v2010_v47, %s7033_s14  ;;  %2129 = vrot.lane.b32.xlu1 %v2026_v52, %s7033_s14 }
 0x30c   : > { %v1918_v61 = vpop.permute.xlu0 %1917 }
 0x30d   : > { %2047 = vrot.lane.b32.xlu2 %v1906_v57, %s7033_s14  ;;  %v1924_v35 = vsel %vm274_vm6, %v1916_v16, %v1918_v61 }
 0x311   : > { %2131 = vrot.lane.b32.xlu1 %v2027_v26, %s7033_s14  ;;  %2059 = vrot.lane.b32.xlu0 %v1923_v50, %s7033_s14 }
 0x314   : > { %v1970_v48 = vpop.permute.xlu0 %1969 }
 0x315   : > { %2121 = vrot.lane.b32.xlu2 %v2011_v44, %s7033_s14  ;;  %v1977_v17 = vsel %vm331_vm3, %v1968_v12, %v1970_v48 }
 0x316   : > { %v2116_v55 = vpop.permute.xlu2 %2115 }
 0x319   : > { %2095 = vrot.lane.b32.xlu1 %v1976_v9, %s7033_s14  ;;  %2133 = vrot.lane.b32.xlu0 %v2028_v21, %s7033_s14 }
 0x31d   : > { %2085 = vrot.lane.b32.xlu2 %v1955_v25, %s7033_s14 }
 0x321   : > { %2071 = vrot.lane.b32.xlu1 %v1940_v62, %s7033_s14  ;;  %2097 = vrot.lane.b32.xlu0 %v1977_v17, %s7033_s14 }
 0x325   : > { %2049 = vrot.lane.b32.xlu2 %v1907_v27, %s7033_s14  ;;  %v6912_v27 = vld [vmem:[%s11727_s2 + $0x8] sm:$0xff] }
 0x327   : > { %v8488_v31 = vpop.permute.xlu2 %2105 }
 0x329   : > { %2109 = vrot.lane.b32.xlu1 %v1994_v20, %s7033_s14  ;;  %2073 = vrot.lane.b32.xlu0 %v1941_v56, %s7033_s14 }
 0x32f   : > { %v8492_v49 = vpop.permute.xlu2 %2093 }
 0x331   : > { %2061 = vrot.lane.b32.xlu1 %v1924_v35, %s7033_s14 }
 0x337   : > { %v8498_v1 = vpop.permute.xlu2 %2081 }
 0x33b   : > { %v1903_v14 = vpop.permute.xlu1 %1902  ;;  %v2023_v2 = vpop.permute.xlu0 %2022 }
 0x33c   : > { %v2029_v60 = vsel %vm385_vm0, %v2021_v43, %v2023_v2  ;;  %v2030_v51 = vsel %vm385_vm0, %v2023_v2, %v8351_v4  ;;  %v1908_v4 = vsel %vm256_vm7, %v8451_v24, %v1903_v14 }
 0x33d   : > { %2135 = vrot.lane.b32.xlu1 %v2029_v60, %s7033_s14 }
 0x33f   : > { %v8502_v12 = vpop.permute.xlu2 %2069 }
 0x343   : > { %v1920_v30 = vpop.permute.xlu1 %1919  ;;  %v2006_v58 = vpop.permute.xlu0 %2005 }
 0x344   : > { %v2012_v54 = vsel %vm367_vm1, %v2004_v39, %v2006_v58  ;;  %v1925_v53 = vsel %vm274_vm6, %v1918_v61, %v1920_v30  ;;  %v2013_v6 = vsel %vm367_vm1, %v2006_v58, %v8357_v29 }
 0x345   : > { %2123 = vrot.lane.b32.xlu2 %v2012_v54, %s7033_s14 }
 0x347   : > { %v8508_v34 = vpop.permute.xlu2 %2057 }
 0x34b   : > { %v1989_v42 = vpop.permute.xlu0 %1988  ;;  %v2104_v13 = vpop.permute.xlu1 %2103 }
 0x34c   : > { %v1995_v15 = vsel %vm349_vm2, %v1987_v45, %v1989_v42  ;;  %v2169_v57 = vsel %vm504_vm8, %v2104_v13, %v8488_v31 }
 0x34d   : > { %2111 = vrot.lane.b32.xlu0 %v1995_v15, %s7033_s14  ;;  %v8541_v50 = vand.u32 4294901760, %v2169_v57 }
 0x34f   : > { %v8520_v47 = vpop.permute.xlu2 %2045 }
 0x353   : > { %v1972_v3 = vpop.permute.xlu0 %1971  ;;  %v2092_v23 = vpop.permute.xlu1 %2091 }
 0x354   : > { %v1978_v22 = vsel %vm331_vm3, %v1970_v48, %v1972_v3  ;;  %v1979_v19 = vsel %vm331_vm3, %v1972_v3, %v8359_v11  ;;  %v1996_v11 = vsel %vm349_vm2, %v1989_v42, %v8363_v59  ;;  %v2164_v24 = vsel %vm504_vm8, %v2092_v23, %v8492_v49 }
 0x355   : > { %2099 = vrot.lane.b32.xlu1 %v1978_v22, %s7033_s14  ;;  %v8543_v61 = vand.u32 4294901760, %v2164_v24 }
 0x357   : > { %v8537_v39 = vpop.permute.xlu2 %2107  ;;  %v8563_v62 = vsub.f32 %v2164_v24, %v8543_v61 }
 0x358   : > { %v2170_v17 = vsel %vm504_vm8, %v8488_v31, %v8537_v39  ;;  %v2139_v31 = vsel %vm504_vm8, %v8353_v28, %v8373_v46  ;;  %v2230_v28 = vsel %vm595_vm9, %v6912_v27, 0 }
 0x359   : > { %v8599_v42 = vand.u32 4294901760, %v2170_v17  ;;  %v8606_v3 = vand.u32 4294901760, %v2139_v31 }
 0x35b   : > { %v1952_v32 = vpop.permute.xlu0 %1951  ;;  %v2080_v16 = vpop.permute.xlu1 %2079  ;;  %v8668_v24 = vsub.f32 %v2139_v31, %v8606_v3 }
 0x35c   : > { %v1956_v8 = vsel %vm308_vm4, %v1950_v33, %v1952_v32  ;;  %v2159_v45 = vsel %vm504_vm8, %v2080_v16, %v8498_v1  ;;  %v8554_v33 = vsub.f32 %v2169_v57, %v8541_v50  ;;  %v11749_v16 = vand.u32 4294901760, %v8563_v62 }
 0x35d   : > { %2087 = vrot.lane.b32.xlu2 %v1956_v8, %s7033_s14  ;;  %2063 = vrot.lane.b32.xlu1 %v1925_v53, %s7033_s14  ;;  %v8556_v25 = vand.u32 4294901760, %v2159_v45 }
 0x35e   : > { %v2287_v54 = vand.u32 4294901760, %v8554_v33 }
 0x35f   : > { %v8588_v2 = vsub.f32 %v2159_v45, %v8556_v25  ;;  %v8590_v60 = vpop.permute.xlu2 %2083 }
 0x360   : > { %v2160_v8 = vsel %vm504_vm8, %v8498_v1, %v8590_v60  ;;  %v2288_v1 = vsub.f32 %v8554_v33, %v2287_v54 }
 0x363   : > { %v1937_v0 = vpop.permute.xlu0 %1936  ;;  %v2068_v63 = vpop.permute.xlu1 %2067 }
 0x364   : > { %v1942_v10 = vsel %vm292_vm5, %v1935_v36, %v1937_v0  ;;  %v2154_v48 = vsel %vm504_vm8, %v2068_v63, %v8502_v12 }
 0x365   : > { %2137 = vrot.lane.b32.xlu2 %v2030_v51, %s7033_s14  ;;  %2125 = vrot.lane.b32.xlu1 %v2013_v6, %s7033_s14 }
 0x366   : > { %2075 = vrot.lane.b32.xlu0 %v1942_v10, %s7033_s14  ;;  %v11747_v10 = vand.u32 4294901760, %v8588_v2 }
 0x36b   : > { %v2128_v7 = vpop.permute.xlu0 %2127  ;;  %v2056_v38 = vpop.permute.xlu1 %2055 }
 0x36c   : > { %v2149_v20 = vsel %vm504_vm8, %v2056_v38, %v8508_v34  ;;  %v8641_v38 = vsub.f32 %v2170_v17, %v8599_v42 }
 0x36d   : > { %2089 = vrot.lane.b32.xlu2 %v1952_v32, %s7033_s14  ;;  %2101 = vrot.lane.b32.xlu1 %v1979_v19, %s7033_s14  ;;  %v8601_v13 = vand.u32 4294901760, %v2149_v20 }
 0x36e   : > { %2051 = vrot.lane.b32.xlu0 %v1908_v4, %s7033_s14 }
 0x36f   : > { %v8644_v19 = vsub.f32 %v2149_v20, %v8601_v13 }
 0x371   : > { %v11745_v20 = vand.u32 4294901760, %v8644_v19 }
 0x373   : > { %v2118_v29 = vpop.permute.xlu0 %2117  ;;  %v2044_v52 = vpop.permute.xlu1 %2043 }
 0x374   : > { %v2174_v43 = vsel %vm504_vm8, %v2116_v55, %v2118_v29 }
 0x375   : > { %2053 = vrot.lane.b32.xlu2 %v1903_v14, %s7033_s14  ;;  %2065 = vrot.lane.b32.xlu1 %v1920_v30, %s7033_s14  ;;  %v8539_v26 = vand.u32 4294901760, %v2174_v43  ;;  %v8585_v14 = vand.u32 4294901760, %v2154_v48  ;;  %v2144_v30 = vsel %vm504_vm8, %v2044_v52, %v8520_v47 }
 0x376   : > { %2113 = vrot.lane.b32.xlu0 %v1996_v11, %s7033_s14  ;;  %v2294_v11 = vsub.f32 %v8563_v62, %v11749_v16 }
 0x377   : > { %v8548_v44 = vsub.f32 %v2174_v43, %v8539_v26  ;;  %v8623_v53 = vsub.f32 %v2154_v48, %v8585_v14 }
 0x379   : > { %v2281_v35 = vand.u32 4294901760, %v8548_v44 }
 0x37b   : > { %v2130_v59 = vpop.permute.xlu1 %2129  ;;  %v8550_v9 = vpop.permute.xlu0 %2119  ;;  %v2282_v32 = vsub.f32 %v8548_v44, %v2281_v35 }
 0x37c   : > { %v2179_v21 = vsel %vm504_vm8, %v2128_v7, %v2130_v59  ;;  %v2175_v56 = vsel %vm504_vm8, %v2118_v29, %v8550_v9  ;;  %v8638_v7 = vand.u32 4294901760, %v2230_v28  ;;  %v8652_v29 = vand.u32 4294901760, %v2160_v8 }
 0x37d   : > { %v8560_v36 = vand.u32 4294901760, %v2179_v21  ;;  %v8603_v15 = vand.u32 4294901760, %v2175_v56  ;;  %v2283_v43 = vand.u32 4294901760, %v2282_v32  ;;  %v8694_v32 = vpop.permute.xlu2 %2047 }
 0x37e   : > { %2077 = vrot.lane.b32.xlu0 %v1937_v0, %s7033_s14  ;;  %v8625_v0 = vand.u32 4294901760, %v2144_v30  ;;  %v8676_v48 = vsub.f32 %v2230_v28, %v8638_v7 }
 0x37f   : > { %v8577_v55 = vsub.f32 %v2179_v21, %v8560_v36  ;;  %2240 = vmatpush.msrb.mxu2 %v8560_v36  ;;  %2380 = vmatpush.msra.mxu1 %v8560_v36  ;;  %v8647_v4 = vsub.f32 %v2175_v56, %v8603_v15  ;;  %v2300_v21 = vsub.f32 %v8588_v2, %v11747_v10 }
 0x380   : > { %v8662_v57 = vsub.f32 %v2144_v30, %v8625_v0  ;;  %v8685_v56 = vsub.f32 %v2160_v8, %v8652_v29  ;;  %v2295_v30 = vand.u32 4294901760, %v2294_v11 }
 0x381   : > { %v2275_v58 = vand.u32 4294901760, %v8577_v55  ;;  %2242 = vmatpush.msrb.mxu2 %v8539_v26  ;;  %2341 = vmatpush.msra.mxu0 %v8577_v55  ;;  %v11744_v27 = vand.u32 4294901760, %v8647_v4 }
 0x382   : > { %2382 = vmatpush.msra.mxu1 %v8539_v26 }
 0x383   : > { %v8608_v23 = vpop.permute.xlu1 %2131  ;;  %2244 = vmatpush.msrb.mxu2 %v8541_v50  ;;  %2344 = vmatpush.msra.mxu0 %v8548_v44  ;;  %v2276_v22 = vsub.f32 %v8577_v55, %v2275_v58  ;;  %v8678_v17 = vpop.permute.xlu0 %2059 }
 0x384   : > { %v2180_v63 = vsel %vm504_vm8, %v2130_v59, %v8608_v23  ;;  %2384 = vmatpush.msra.mxu1 %v8541_v50  ;;  %v2289_v59 = vand.u32 4294901760, %v2288_v1  ;;  %v2323_v1 = vand.u32 4294901760, %v8668_v24 }
 0x385   : > { %v8630_v51 = vand.u32 4294901760, %v2180_v63  ;;  %2246 = vmatpush.msrb.mxu2 %v8543_v61  ;;  %2347 = vmatpush.msra.mxu0 %v8554_v33  ;;  %v2277_v6 = vand.u32 4294901760, %v2276_v22  ;;  %v11746_v22 = vand.u32 4294901760, %v8641_v38 }
 0x386   : > { %2041 = vrot.lane.b32.xlu0 %v8380_v18, %s7033_s14  ;;  %2386 = vmatpush.msra.mxu1 %v8543_v61  ;;  %v11743_v18 = vand.u32 4294901760, %v8623_v53  ;;  %s7036_s14 = smov 64  }
 0x387   : > { %v8655_v52 = vsub.f32 %v2180_v63, %v8630_v51  ;;  %2248 = vmatpush.msrb.mxu2 %v8556_v25  ;;  %2278 = vmatpush.msrb.mxu3 %v2277_v6  ;;  %v11748_v6 = vand.u32 4294901760, %v8662_v57 }
 0x388   : > { %2350 = vmatpush.msra.mxu0 %v8563_v62  ;;  %2388 = vmatpush.msra.mxu1 %v8556_v25  ;;  %v2306_v8 = vsub.f32 %v8623_v53, %v11743_v18  ;;  %v2312_v18 = vsub.f32 %v8644_v19, %v11745_v20 }
 0x389   : > { %v11742_v45 = vand.u32 4294901760, %v8655_v52  ;;  %2250 = vmatpush.msrb.mxu2 %v8585_v14  ;;  %2284 = vmatpush.msrb.mxu3 %v2283_v43  ;;  %v2150_v43 = vsel %vm504_vm8, %v8508_v34, %v8678_v17  ;;  %v2145_v34 = vsel %vm504_vm8, %v8520_v47, %v8694_v32  ;;  %v2318_v47 = vsub.f32 %v8662_v57, %v11748_v6 }
 0x38a   : > { %2353 = vmatpush.msra.mxu0 %v8588_v2  ;;  %2390 = vmatpush.msra.mxu1 %v8585_v14  ;;  %v2307_v20 = vand.u32 4294901760, %v2306_v8  ;;  %v2140_v8 = vsel %vm504_vm8, %v8373_v46, %v8417_v37  ;;  %v8750_v10 = vand.u32 4294901760, %v2145_v34  ;;  %v2313_v16 = vand.u32 4294901760, %v2312_v18 }
 0x38b   : > { %v8687_v31 = vpop.permute.xlu1 %2095  ;;  %2252 = vmatpush.msrb.mxu2 %v8601_v13  ;;  %2290 = vmatpush.msrb.mxu3 %v2289_v59  ;;  %v2526_v28 = vsub.f32 %v8655_v52, %v11742_v45  ;;  %v2532_v45 = vsub.f32 %v8647_v4, %v11744_v27  ;;  %v8731_v27 = vand.u32 4294901760, %v2150_v43 }
 0x38c   : > { %v2165_v63 = vsel %vm504_vm8, %v8492_v49, %v8687_v31  ;;  %2356 = vmatpush.msra.mxu0 %v8623_v53  ;;  %2392 = vmatpush.msra.mxu1 %v8601_v13  ;;  %v2301_v49 = vand.u32 4294901760, %v2300_v21  ;;  %v2538_v21 = vsub.f32 %v8641_v38, %v11746_v22 }
 0x38d   : > { %v8709_v11 = vand.u32 4294901760, %v2165_v63  ;;  %2254 = vmatpush.msrb.mxu2 %v8625_v0  ;;  %2296 = vmatpush.msrb.mxu3 %v2295_v30  ;;  %v2527_v59 = vand.u32 4294901760, %v2526_v28  ;;  %v2549_v28 = vand.u32 4294901760, %v8685_v56  ;;  %v2533_v6 = vand.u32 4294901760, %v2532_v45 }
 0x38e   : > { %2359 = vmatpush.msra.mxu0 %v8644_v19  ;;  %2394 = vmatpush.msra.mxu1 %v8625_v0  ;;  %v8772_v45 = vand.u32 4294901760, %v2140_v8 }
 0x38f   : > { %v8724_v30 = vsub.f32 %v2165_v63, %v8709_v11  ;;  %2256 = vmatpush.msrb.mxu2 %v8606_v3  ;;  %2302 = vmatpush.msrb.mxu3 %v2301_v49  ;;  %v8739_v63 = vand.u32 4294901760, %v8676_v48  ;;  %v2324_v49 = vsub.f32 %v8668_v24, %v2323_v1  ;;  %v2550_v46 = vsub.f32 %v8685_v56, %v2549_v28 }
 0x390   : > { %2362 = vmatpush.msra.mxu0 %v8662_v57  ;;  %2396 = vmatpush.msra.mxu1 %v8606_v3 }
 0x391   : > { %2414 = vmatpush.msra.mxu2 %v2275_v58  ;;  %v2543_v22 = vand.u32 4294901760, %v8724_v30  ;;  %2308 = vmatpush.msrb.mxu3 %v2307_v20  ;;  %v2539_v58 = vand.u32 4294901760, %v2538_v21  ;;  %v8765_v20 = vsub.f32 %v2150_v43, %v8731_v27  ;;  %v2260_v18 = vsub.f32 %v8676_v48, %v8739_v63 }
 0x392   : > { %2528 = vmatpush.msrb.mxu1 %v2527_v59  ;;  %2365 = vmatpush.msra.mxu0 %v8668_v24  ;;  %v2551_v33 = vand.u32 4294901760, %v2550_v46  ;;  %v11768_v46 = vand.u32 4294901760, %v8623_v53 }
 0x393   : > { %2418 = vmatpush.msra.mxu2 %v2281_v35  ;;  %v8756_v55 = vpop.permute.xlu1 %2071  ;;  %v2544_v59 = vsub.f32 %v8724_v30, %v2543_v22  ;;  %2314 = vmatpush.msrb.mxu3 %v2313_v16  ;;  %v2319_v35 = vand.u32 4294901760, %v2318_v47  ;;  %v11766_v47 = vand.u32 4294901760, %v8563_v62 }
 0x394   : > { %2490 = vmatpush.msrb.mxu0 %v8630_v51  ;;  %2534 = vmatpush.msrb.mxu1 %v2533_v6  ;;  %v2155_v44 = vsel %vm504_vm8, %v8502_v12, %v8756_v55  ;;  %v8780_v6 = vsub.f32 %v2145_v34, %v8750_v10  ;;  %v2325_v12 = vand.u32 4294901760, %v2324_v49  ;;  %v8792_v34 = vsub.f32 %v2140_v8, %v8772_v45 }
 0x395   : > { %v8774_v21 = vand.u32 4294901760, %v2155_v44  ;;  %2422 = vmatpush.msra.mxu2 %v2287_v54  ;;  %v2545_v43 = vand.u32 4294901760, %v2544_v59  ;;  %2320 = vmatpush.msrb.mxu3 %v2319_v35  ;;  %v8788_v54 = vand.u32 4294901760, %v2260_v18  ;;  %v2561_v59 = vand.u32 4294901760, %v8765_v20  ;;  %v8820_v35 = vpop.permute.xlu2 %2121 }
 0x396   : > { %2492 = vmatpush.msrb.mxu0 %v8603_v15  ;;  %2540 = vmatpush.msrb.mxu1 %v2539_v58  ;;  %v11767_v49 = vand.u32 4294901760, %v8588_v2  ;;  %v2567_v58 = vand.u32 4294901760, %v8780_v6  ;;  %v11769_v2 = vand.u32 4294901760, %v8644_v19  ;;  %v11770_v18 = vand.u32 4294901760, %v8662_v57  ;;  %v8826_v19 = vpop.permute.xlu0 %2133 }
 0x397   : > { %v8783_v16 = vsub.f32 %v2155_v44, %v8774_v21  ;;  %2426 = vmatpush.msra.mxu2 %v11766_v47  ;;  %2326 = vmatpush.msrb.mxu3 %v2325_v12 }
 0x398   : > { %2494 = vmatpush.msrb.mxu0 %v8599_v42  ;;  %2546 = vmatpush.msrb.mxu1 %v2545_v43  ;;  %v2568_v44 = vsub.f32 %v8780_v6, %v2567_v58 }
 0x399   : > { %2430 = vmatpush.msra.mxu2 %v11767_v49  ;;  %2460 = vmatpush.msra.mxu3 %v8560_v36  ;;  %v2555_v62 = vand.u32 4294901760, %v8783_v16  ;;  %v2562_v36 = vsub.f32 %v8765_v20, %v2561_v59  ;;  %v2141_v49 = vsel %vm504_vm8, %v8417_v37, %v8437_v40 }
 0x39a   : > { %2496 = vmatpush.msrb.mxu0 %v8709_v11  ;;  %2552 = vmatpush.msrb.mxu1 %v2551_v33  ;;  %v2569_v57 = vand.u32 4294901760, %v2568_v44 }
 0x39b   : > { %2434 = vmatpush.msra.mxu2 %v11768_v46  ;;  %2462 = vmatpush.msra.mxu3 %v8539_v26  ;;  %v2556_v8 = vsub.f32 %v8783_v16, %v2555_v62  ;;  %v2573_v26 = vand.u32 4294901760, %v8792_v34  ;;  %v8844_v24 = vpop.permute.xlu1 %2109 }
 0x39c   : > { %2498 = vmatpush.msrb.mxu0 %v8652_v29  ;;  %2262 = vmatmul.f32.vlgmr.msrb.gmra.mxu2 %v8788_v54 }
 0x39d   : > { %2438 = vmatpush.msra.mxu2 %v11769_v2  ;;  %2464 = vmatpush.msra.mxu3 %v8541_v50  ;;  %v2557_v53 = vand.u32 4294901760, %v2556_v8  ;;  %v2563_v50 = vand.u32 4294901760, %v2562_v36  ;;  %v2574_v43 = vsub.f32 %v8792_v34, %v2573_v26 }
 0x39e   : > { %2500 = vmatpush.msrb.mxu0 %v8774_v21  ;;  %2328 = vmatmul.f32.vlgmr.msrb.gmra.mxu3 %v8638_v7 }
 0x39f   : > { %2442 = vmatpush.msra.mxu2 %v11770_v18  ;;  %2466 = vmatpush.msra.mxu3 %v8543_v61  ;;  %v2575_v61 = vand.u32 4294901760, %v2574_v43 }
 0x3a0   : > { %2502 = vmatpush.msrb.mxu0 %v8731_v27  ;;  %2558 = vmatpush.msrb.mxu1 %v2557_v53 }
 0x3a1   : > { %2446 = vmatpush.msra.mxu2 %v2323_v1  ;;  %2468 = vmatpush.msra.mxu3 %v8556_v25  ;;  %v11771_v25 = vand.u32 4294901760, %v8655_v52  ;;  %v8849_v1 = vpop.permute.xlu2 %2085 }
 0x3a2   : > { %2504 = vmatpush.msrb.mxu0 %v8750_v10  ;;  %2564 = vmatpush.msrb.mxu1 %v2563_v50  ;;  %v6914_v50 = vld [vmem:[%s11728_s3 + $0x10] sm:$0xff] }
 0x3a3   : > { %2591 = vmatpush.msrb.mxu2 %v8655_v52  ;;  %2470 = vmatpush.msra.mxu3 %v8585_v14  ;;  %v11772_v14 = vand.u32 4294901760, %v8647_v4  ;;  %v8856_v52 = vpop.permute.xlu0 %2097 }
 0x3a4   : > { %2506 = vmatpush.msrb.mxu0 %v8772_v45  ;;  %2570 = vmatpush.msrb.mxu1 %v2569_v57 }
 0x3a5   : > { %2368 = vmatmul.f32.vlgmr.msra.gmra.mxu0 %v8676_v48  ;;  %2594 = vmatpush.msrb.mxu2 %v8647_v4  ;;  %v2181_v4 = vsel %vm504_vm8, %v8608_v23, %v8826_v19 }
 0x3a6   : > { %2664 = vmatpush.msra.mxu0 %v11771_v25  ;;  %2472 = vmatpush.msra.mxu3 %v8601_v13  ;;  %v11773_v13 = vand.u32 4294901760, %v8641_v38 }
 0x3a7   : > { %2576 = vmatpush.msrb.mxu1 %v2575_v61  ;;  %2597 = vmatpush.msrb.mxu2 %v8641_v38 }
 0x3a8   : > { %2668 = vmatpush.msra.mxu0 %v11772_v14  ;;  %2400 = vmatmul.f32.vlgmr.msra.gmra.mxu1 %v8739_v63 }
 0x3a9   : > { %2474 = vmatpush.msra.mxu3 %v8625_v0  ;;  %2710 = vmatpush.msra.mxu1 %v8630_v51  ;;  %v2176_v0 = vsel %vm504_vm8, %v8550_v9, %v8820_v35  ;;  %v2171_v9 = vsel %vm504_vm8, %v8537_v39, %v8844_v24  ;;  %v2166_v39 = vsel %vm504_vm8, %v8687_v31, %v8856_v52 }
 0x3aa   : > { %2448 = vmatmul.f32.vlgmr.msra.gmra.mxu2 %v8638_v7  ;;  %2672 = vmatpush.msra.mxu0 %v11773_v13  ;;  %v8880_v23 = vand.u32 4294901760, %v2176_v0 }
 0x3ab   : > { %2600 = vmatpush.msrb.mxu2 %v8724_v30  ;;  %2476 = vmatpush.msra.mxu3 %v8606_v3  ;;  %v8873_v3 = vand.u32 4294901760, %v2181_v4 }
 0x3ac   : > { %2712 = vmatpush.msra.mxu1 %v8603_v15  ;;  %2478 = vmatmul.f32.vlgmr.msra.gmra.mxu3 %v8638_v7  ;;  %v8915_v31 = vsub.f32 %v2176_v0, %v8880_v23 }
 0x3ad   : > { %2603 = vmatpush.msrb.mxu2 %v8685_v56  ;;  %2630 = vmatpush.msrb.mxu3 %v8630_v51  ;;  %v8887_v51 = vpop.permute.xlu1 %2061  ;;  %v8895_v38 = vsub.f32 %v2181_v4, %v8873_v3  ;;  %v2161_v56 = vsel %vm504_vm8, %v8590_v60, %v8849_v1 }
 0x3ae   : > { %2676 = vmatpush.msra.mxu0 %v2543_v22  ;;  %2714 = vmatpush.msra.mxu1 %v8599_v42  ;;  %v8910_v22 = vpop.permute.xlu0 %2073  ;;  %v8925_v60 = vand.u32 4294901760, %v2161_v56 }
 0x3af   : > { %2606 = vmatpush.msrb.mxu2 %v8783_v16  ;;  %2632 = vmatpush.msrb.mxu3 %v8603_v15  ;;  %v8892_v15 = vpop.permute.xlu2 %2049  ;;  %v2775_v30 = vand.u32 4294901760, %v8895_v38 }
 0x3b0   : > { %2680 = vmatpush.msra.mxu0 %v2549_v28  ;;  %2716 = vmatpush.msra.mxu1 %v8709_v11  ;;  %v2146_v47 = vsel %vm504_vm8, %v8694_v32, %v8892_v15 }
 0x3b1   : > { %2609 = vmatpush.msrb.mxu2 %v8765_v20  ;;  %2634 = vmatpush.msrb.mxu3 %v8599_v42  ;;  %v8902_v42 = vand.u32 4294901760, %v2171_v9  ;;  %v2781_v20 = vand.u32 4294901760, %v8915_v31 }
 0x3b2   : > { %2684 = vmatpush.msra.mxu0 %v2555_v62  ;;  %2718 = vmatpush.msra.mxu1 %v8652_v29 }
 0x3b3   : > { %2612 = vmatpush.msrb.mxu2 %v8780_v6  ;;  %2636 = vmatpush.msrb.mxu3 %v8709_v11  ;;  %v8917_v11 = vand.u32 4294901760, %v2166_v39  ;;  %v8934_v28 = vsub.f32 %v2171_v9, %v8902_v42  ;;  %v2782_v32 = vsub.f32 %v8915_v31, %v2781_v20 }
 0x3b4   : > { %2688 = vmatpush.msra.mxu0 %v2561_v59  ;;  %2720 = vmatpush.msra.mxu1 %v8774_v21 }
 0x3b5   : > { %2615 = vmatpush.msrb.mxu2 %v8792_v34  ;;  %2638 = vmatpush.msrb.mxu3 %v8652_v29  ;;  %v2156_v29 = vsel %vm504_vm8, %v8756_v55, %v8910_v22  ;;  %v8942_v6 = vpop.permute.xlu1 %2135  ;;  %v8947_v55 = vsub.f32 %v2166_v39, %v8917_v11  ;;  %v2787_v33 = vand.u32 4294901760, %v8934_v28  ;;  %v2783_v44 = vand.u32 4294901760, %v2782_v32 }
 0x3b6   : > { %2692 = vmatpush.msra.mxu0 %v2567_v58  ;;  %2722 = vmatpush.msra.mxu1 %v8731_v27  ;;  %v8949_v12 = vand.u32 4294901760, %v2156_v29  ;;  %v2182_v34 = vsel %vm504_vm8, %v8826_v19, %v8942_v6  ;;  %v8983_v58 = vand.u32 4294901760, %v2146_v47 }
 0x3b7   : > { %2740 = vmatpush.msra.mxu2 %v8873_v3  ;;  %2640 = vmatpush.msrb.mxu3 %v8774_v21  ;;  %v2151_v21 = vsel %vm504_vm8, %v8678_v17, %v8887_v51  ;;  %v8951_v16 = vpop.permute.xlu2 %2123  ;;  %v2776_v17 = vsub.f32 %v8895_v38, %v2775_v30  ;;  %v2793_v62 = vand.u32 4294901760, %v8947_v55  ;;  %v8995_v36 = vand.u32 4294901760, %v2182_v34 }
 0x3b8   : > { %2696 = vmatpush.msra.mxu0 %v2573_v26  ;;  %2724 = vmatpush.msra.mxu1 %v8750_v10  ;;  %v8967_v59 = vand.u32 4294901760, %v2151_v21  ;;  %v8991_v8 = vsub.f32 %v2156_v29, %v8949_v12  ;;  %v2788_v2 = vsub.f32 %v8934_v28, %v2787_v33  ;;  %v9006_v26 = vand.u32 4294901760, %v2141_v49 }
 0x3b9   : > { %2512 = vmatmul.f32.vlgmr.msrb.gmra.mxu0 %v8788_v54  ;;  %2742 = vmatpush.msra.mxu2 %v8880_v23  ;;  %v2777_v46 = vand.u32 4294901760, %v2776_v17  ;;  %v2794_v43 = vsub.f32 %v8947_v55, %v2793_v62  ;;  %v9028_v61 = vsub.f32 %v2146_v47, %v8983_v58 }
 0x3ba   : > { %2841 = vmatpush.msrb.mxu0 %v8895_v38  ;;  %2642 = vmatpush.msrb.mxu3 %v8731_v27  ;;  %v8964_v27 = vsub.f32 %v2161_v56, %v8925_v60  ;;  %v2805_v25 = vand.u32 4294901760, %v8991_v8  ;;  %v2789_v14 = vand.u32 4294901760, %v2788_v2  ;;  %v9041_v4 = vsub.f32 %v2141_v49, %v9006_v26 }
 0x3bb   : > { %2618 = vmatmul.f32.vlgmr.msrb.gmra.mxu2 %v8676_v48  ;;  %2726 = vmatpush.msra.mxu1 %v8772_v45  ;;  %v2795_v29 = vand.u32 4294901760, %v2794_v43  ;;  %v2817_v47 = vand.u32 4294901760, %v9028_v61 }
 0x3bc   : > { %2744 = vmatpush.msra.mxu2 %v8902_v42  ;;  %2844 = vmatpush.msrb.mxu0 %v8915_v31  ;;  %v2799_v53 = vand.u32 4294901760, %v8964_v27  ;;  %v2823_v2 = vand.u32 4294901760, %v9041_v4 }
 0x3bd   : > { %2578 = vmatmul.f32.vlgmr.msrb.gmra.mxu1 %v8638_v7  ;;  %2644 = vmatpush.msrb.mxu3 %v8750_v10  ;;  %v2177_v10 = vsel %vm504_vm8, %v8820_v35, %v8951_v16  ;;  %v9010_v35 = vsub.f32 %v2151_v21, %v8967_v59  ;;  %v2806_v21 = vsub.f32 %v8991_v8, %v2805_v25 }
 0x3be   : > { %2880 = vmatpush.msrb.mxu1 %v8873_v3  ;;  %2746 = vmatpush.msra.mxu2 %v8917_v11  ;;  %v9012_v18 = vand.u32 4294901760, %v2177_v10  ;;  %v2800_v13 = vsub.f32 %v8964_v27, %v2799_v53  ;;  %v2818_v43 = vsub.f32 %v9028_v61, %v2817_v47 }
 0x3bf   : > { %2847 = vmatpush.msrb.mxu0 %v8934_v28  ;;  %2646 = vmatpush.msrb.mxu3 %v8772_v45  ;;  %v8993_v37 = vpop.permute.xlu0 %2111  ;;  %v9024_v57 = vpop.permute.xlu2 %2087  ;;  %v2811_v0 = vand.u32 4294901760, %v9010_v35 }
 0x3c0   : > { %2882 = vmatpush.msrb.mxu1 %v8880_v23  ;;  %2650 = vmatmul.f32.vlgmr.msrb.gmra.mxu3 %v8739_v63  ;;  %v2172_v45 = vsel %vm504_vm8, %v8844_v24, %v8993_v37  ;;  %v9032_v24 = vsub.f32 %v2182_v34, %v8995_v36  ;;  %v9045_v9 = vsub.f32 %v2177_v10, %v9012_v18  ;;  %v2801_v34 = vand.u32 4294901760, %v2800_v13 }
 0x3c1   : > { %2748 = vmatpush.msra.mxu2 %v8925_v60  ;;  %2778 = vmatpush.msra.mxu3 %v2777_v46  ;;  %v9019_v19 = vand.u32 4294901760, %v2172_v45  ;;  %v2162_v39 = vsel %vm504_vm8, %v8849_v1, %v9024_v57  ;;  %v2812_v10 = vsub.f32 %v9010_v35, %v2811_v0 }
 0x3c2   : > { %2850 = vmatpush.msrb.mxu0 %v8947_v55  ;;  %2884 = vmatpush.msrb.mxu1 %v8902_v42  ;;  %v3025_v1 = vand.u32 4294901760, %v9032_v24  ;;  %v9067_v49 = vand.u32 4294901760, %v2162_v39 }
 0x3c3   : > { %2750 = vmatpush.msra.mxu2 %v8949_v12  ;;  %2784 = vmatpush.msra.mxu3 %v2783_v44  ;;  %v9052_v56 = vsub.f32 %v2172_v45, %v9019_v19  ;;  %v3031_v45 = vand.u32 4294901760, %v9045_v9  ;;  %v2807_v44 = vand.u32 4294901760, %v2806_v21  ;;  %v2824_v21 = vsub.f32 %v9041_v4, %v2823_v2 }
 0x3c4   : > { %2853 = vmatpush.msrb.mxu0 %v8964_v27  ;;  %2886 = vmatpush.msrb.mxu1 %v8917_v11  ;;  %v9095_v13 = vsub.f32 %v2162_v39, %v9067_v49 }
 0x3c5   : > { %3489 = vperm.xlu1 %6974, %v6914_v50   ;;  %2752 = vmatpush.msra.mxu2 %v8967_v59 }
 0x3c6   : > { %2790 = vmatpush.msra.mxu3 %v2789_v14  ;;  %2856 = vmatpush.msrb.mxu0 %v8991_v8  ;;  %v3026_v14 = vsub.f32 %v9032_v24, %v3025_v1 }
 0x3c7   : > { %2888 = vmatpush.msrb.mxu1 %v8925_v60  ;;  %2754 = vmatpush.msra.mxu2 %v8983_v58  ;;  %v9059_v17 = vpop.permute.xlu1 %2099 }
 0x3c8   : > { %2796 = vmatpush.msra.mxu3 %v2795_v29  ;;  %2859 = vmatpush.msrb.mxu0 %v9010_v35  ;;  %v2167_v32 = vsel %vm504_vm8, %v8856_v52, %v9059_v17  ;;  %v3037_v52 = vand.u32 4294901760, %v9052_v56  ;;  %v2813_v29 = vand.u32 4294901760, %v2812_v10  ;;  %v3027_v31 = vand.u32 4294901760, %v3026_v14  ;;  %v2138_v35 = vpop.permute.xlu2 %2137 }
 0x3c9   : > { %2890 = vmatpush.msrb.mxu1 %v8949_v12  ;;  %2698 = vmatmul.f32.vlgmr.msra.gmra.mxu0 %v8638_v7  ;;  %v9074_v46 = vand.u32 4294901760, %v2167_v32  ;;  %v2825_v10 = vand.u32 4294901760, %v2824_v21 }
 0x3ca   : > { %2756 = vmatpush.msra.mxu2 %v9006_v26  ;;  %2802 = vmatpush.msra.mxu3 %v2801_v34  ;;  %v3038_v39 = vsub.f32 %v9052_v56, %v3037_v52  ;;  %v2819_v34 = vand.u32 4294901760, %v2818_v43 }
 0x3cb   : > { %2862 = vmatpush.msrb.mxu0 %v9028_v61  ;;  %2892 = vmatpush.msrb.mxu1 %v8967_v59  ;;  %v9083_v50 = vsub.f32 %v2167_v32, %v9074_v46 }
 0x3cc   : > { %2914 = vmatpush.msrb.mxu2 %v2775_v30  ;;  %2728 = vmatmul.f32.vlgmr.msra.gmra.mxu1 %v8638_v7  ;;  %v3032_v30 = vsub.f32 %v9045_v9, %v3031_v45 }
 0x3cd   : > { %2808 = vmatpush.msra.mxu3 %v2807_v44  ;;  %2865 = vmatpush.msrb.mxu0 %v9041_v4  ;;  %v3043_v38 = vand.u32 4294901760, %v9083_v50  ;;  %v3049_v44 = vand.u32 4294901760, %v9095_v13 }
 0x3ce   : > { %2894 = vmatpush.msrb.mxu1 %v8983_v58  ;;  %2918 = vmatpush.msrb.mxu2 %v2781_v20  ;;  %v3033_v43 = vand.u32 4294901760, %v3032_v30 }
 0x3cf   : > { %2990 = vmatpush.msra.mxu0 %v8995_v36  ;;  %2814 = vmatpush.msra.mxu3 %v2813_v29  ;;  %v9112_v32 = vpop.permute.xlu1 %2063  ;;  %v3044_v20 = vsub.f32 %v9083_v50, %v3043_v38  ;;  %v3039_v29 = vand.u32 4294901760, %v3038_v39  ;;  %v3050_v55 = vsub.f32 %v9095_v13, %v3049_v44 }
 0x3d0   : > { %2896 = vmatpush.msrb.mxu1 %v9006_v26  ;;  %2922 = vmatpush.msrb.mxu2 %v2787_v33  ;;  %v2152_v28 = vsel %vm504_vm8, %v8887_v51, %v9112_v32 }
 0x3d1   : > { %2992 = vmatpush.msra.mxu0 %v9012_v18  ;;  %2820 = vmatpush.msra.mxu3 %v2819_v34  ;;  %v3045_v33 = vand.u32 4294901760, %v3044_v20  ;;  %v3051_v27 = vand.u32 4294901760, %v3050_v55 }
 0x3d2   : > { %3028 = vmatpush.msra.mxu1 %v3027_v31  ;;  %2926 = vmatpush.msrb.mxu2 %v2793_v62  ;;  %v9137_v62 = vand.u32 4294901760, %v2152_v28 }
 0x3d3   : > { %2994 = vmatpush.msra.mxu0 %v9019_v19  ;;  %2826 = vmatpush.msra.mxu3 %v2825_v10 }
 0x3d4   : > { %3034 = vmatpush.msra.mxu1 %v3033_v43  ;;  %2930 = vmatpush.msrb.mxu2 %v2799_v53 }
 0x3d5   : > { %2960 = vmatpush.msrb.mxu3 %v8873_v3  ;;  %2996 = vmatpush.msra.mxu0 %v9074_v46 }
 0x3d6   : > { %3040 = vmatpush.msra.mxu1 %v3039_v29  ;;  %2934 = vmatpush.msrb.mxu2 %v2805_v25 }
 0x3d7   : > { %2962 = vmatpush.msrb.mxu3 %v8880_v23  ;;  %2998 = vmatpush.msra.mxu0 %v9067_v49  ;;  %v2126_v3 = vpop.permute.xlu1 %2125  ;;  %v2142_v23 = vsel %vm504_vm8, %v8437_v40, %v8480_v41 }
 0x3d8   : > { %2938 = vmatpush.msrb.mxu2 %v2811_v0  ;;  %3046 = vmatpush.msra.mxu1 %v3045_v33  ;;  %v9143_v51 = vpop.permute.xlu0 %2075 }
 0x3d9   : > { %2964 = vmatpush.msrb.mxu3 %v8902_v42  ;;  %2762 = vmatmul.f32.vlgmr.msra.gmra.mxu2 %v8788_v54  ;;  %v2157_v8 = vsel %vm504_vm8, %v8910_v22, %v9143_v51  ;;  %v9159_v42 = vsub.f32 %v2152_v28, %v9137_v62  ;;  %v9168_v22 = vand.u32 4294901760, %v2142_v23 }
 0x3da   : > { %2942 = vmatpush.msrb.mxu2 %v2817_v47  ;;  %2828 = vmatmul.f32.vlgmr.msra.gmra.mxu3 %v8638_v7  ;;  %v9156_v53 = vand.u32 4294901760, %v2157_v8 }
 0x3db   : > { %2966 = vmatpush.msrb.mxu3 %v8917_v11  ;;  %3052 = vmatpush.msra.mxu1 %v3051_v27  ;;  %v3061_v61 = vand.u32 4294901760, %v9159_v42 }
 0x3dc   : > { %2946 = vmatpush.msrb.mxu2 %v2823_v2  ;;  %3000 = vmatpush.msra.mxu0 %v9156_v53  ;;  %v9166_v40 = vsub.f32 %v2157_v8, %v9156_v53 }
 0x3dd   : > { %2968 = vmatpush.msrb.mxu3 %v8925_v60  ;;  %2868 = vmatmul.f32.vlgmr.msrb.gmra.mxu0 %v8676_v48  ;;  %v3062_v14 = vsub.f32 %v9159_v42, %v3061_v61 }
 0x3de   : > { %3091 = vmatpush.msra.mxu2 %v9032_v24  ;;  %2900 = vmatmul.f32.vlgmr.msrb.gmra.mxu1 %v8739_v63  ;;  %v3055_v11 = vand.u32 4294901760, %v9166_v40 }
 0x3df   : > { %2970 = vmatpush.msrb.mxu3 %v8949_v12  ;;  %3002 = vmatpush.msra.mxu0 %v9137_v62  ;;  %v9190_v12 = vsub.f32 %v2142_v23, %v9168_v22  ;;  %v2102_v0 = vpop.permute.xlu1 %2101 }
 0x3e0   : > { %3094 = vmatpush.msra.mxu2 %v9045_v9  ;;  %v9179_v25 = vpop.permute.xlu0 %2051  ;;  %v3056_v60 = vsub.f32 %v9166_v40, %v3055_v11  ;;  %v2168_v20 = vsel %vm504_vm8, %v9059_v17, %v2102_v0 }
 0x3e1   : > { %2972 = vmatpush.msrb.mxu3 %v8967_v59  ;;  %v2147_v4 = vsel %vm504_vm8, %v8892_v15, %v9179_v25  ;;  %2948 = vmatmul.f32.vlgmr.msrb.gmra.mxu2 %v8638_v7  ;;  %v2183_v59 = vsel %vm504_vm8, %v8942_v6, %v2138_v35  ;;  %v2178_v15 = vsel %vm504_vm8, %v8951_v16, %v2126_v3  ;;  %v3073_v30 = vand.u32 4294901760, %v9190_v12 }
 0x3e2   : > { %3097 = vmatpush.msra.mxu2 %v9052_v56  ;;  %v9193_v47 = vand.u32 4294901760, %v2147_v4  ;;  %v3057_v2 = vand.u32 4294901760, %v3056_v60  ;;  %v9211_v6 = vand.u32 4294901760, %v2183_v59  ;;  %v3063_v16 = vand.u32 4294901760, %v3062_v14 }
 0x3e3   : > { %2974 = vmatpush.msrb.mxu3 %v8983_v58  ;;  %v2090_v58 = vpop.permute.xlu2 %2089  ;;  %v9216_v34 = vand.u32 4294901760, %v2178_v15  ;;  %v3074_v24 = vsub.f32 %v9190_v12, %v3073_v30 }
 0x3e4   : > { %3100 = vmatpush.msra.mxu2 %v9083_v50  ;;  %3004 = vmatpush.msra.mxu0 %v9193_v47  ;;  %v9206_v21 = vsub.f32 %v2147_v4, %v9193_v47  ;;  %v2163_v17 = vsel %vm504_vm8, %v9024_v57, %v2090_v58 }
 0x3e5   : > { %3058 = vmatpush.msra.mxu1 %v3057_v2  ;;  %2976 = vmatpush.msrb.mxu3 %v9006_v26  ;;  %v9244_v28 = vsub.f32 %v2178_v15, %v9216_v34  ;;  %v3075_v57 = vand.u32 4294901760, %v3074_v24 }
 0x3e6   : > { %3103 = vmatpush.msra.mxu2 %v9095_v13  ;;  %2978 = vmatmul.f32.vlgmr.msrb.gmra.mxu3 %v8638_v7  ;;  %v3067_v39 = vand.u32 4294901760, %v9206_v21 }
 0x3e7   : > { %3006 = vmatpush.msra.mxu0 %v9168_v22  ;;  %3130 = vmatpush.msra.mxu3 %v8995_v36  ;;  %v2066_v33 = vpop.permute.xlu1 %2065 }
 0x3e8   : > { %3106 = vmatpush.msra.mxu2 %v9166_v40  ;;  %3064 = vmatpush.msra.mxu1 %v3063_v16  ;;  %v2114_v26 = vpop.permute.xlu0 %2113  ;;  %v3068_v31 = vsub.f32 %v9206_v21, %v3067_v39  ;;  %v2153_v56 = vsel %vm504_vm8, %v9112_v32, %v2066_v33 }
 0x3e9   : > { %3164 = vmatpush.msrb.mxu0 %v3025_v1  ;;  %3132 = vmatpush.msra.mxu3 %v9012_v18  ;;  %v2173_v10 = vsel %vm504_vm8, %v8993_v37, %v2114_v26  ;;  %v9235_v1 = vsub.f32 %v2183_v59, %v9211_v6  ;;  %v9248_v37 = vand.u32 4294901760, %v2168_v20 }
 0x3ea   : > { %3109 = vmatpush.msra.mxu2 %v9159_v42  ;;  %v9237_v43 = vand.u32 4294901760, %v2173_v10  ;;  %v3069_v29 = vand.u32 4294901760, %v3068_v31  ;;  %3012 = vmatmul.f32.vlgmr.msra.gmra.mxu0 %v8788_v54 }
 0x3eb   : > { %3168 = vmatpush.msrb.mxu0 %v3031_v45  ;;  %3134 = vmatpush.msra.mxu3 %v9019_v19  ;;  %v3275_v9 = vand.u32 4294901760, %v9235_v1  ;;  %v9258_v45 = vand.u32 4294901760, %v2163_v17  ;;  %v2054_v3 = vpop.permute.xlu2 %2053  ;;  %v9268_v27 = vsub.f32 %v2168_v20, %v9248_v37 }
 0x3ec   : > { %3112 = vmatpush.msra.mxu2 %v9206_v21  ;;  %v9251_v55 = vsub.f32 %v2173_v10, %v9237_v43  ;;  %3070 = vmatpush.msra.mxu1 %v3069_v29 }
 0x3ed   : > { %3172 = vmatpush.msrb.mxu0 %v3037_v52  ;;  %3136 = vmatpush.msra.mxu3 %v9074_v46  ;;  %v3281_v52 = vand.u32 4294901760, %v9244_v28  ;;  %v3276_v23 = vsub.f32 %v9235_v1, %v3275_v9  ;;  %v9284_v13 = vsub.f32 %v2163_v17, %v9258_v45 }
 0x3ee   : > { %3115 = vmatpush.msra.mxu2 %v9190_v12  ;;  %3076 = vmatpush.msra.mxu1 %v3075_v57  ;;  %v3287_v50 = vand.u32 4294901760, %v9251_v55 }
 0x3ef   : > { %3176 = vmatpush.msrb.mxu0 %v3043_v38  ;;  %3138 = vmatpush.msra.mxu3 %v9067_v49  ;;  %v2148_v38 = vsel %vm504_vm8, %v9179_v25, %v2054_v3  ;;  %v3277_v60 = vand.u32 4294901760, %v3276_v23  ;;  %v3299_v42 = vand.u32 4294901760, %v9284_v13 }
 0x3f0   : > { %3240 = vmatpush.msrb.mxu2 %v9211_v6  ;;  %v2078_v8 = vpop.permute.xlu0 %2077  ;;  %3210 = vmatpush.msrb.mxu1 %v8995_v36  ;;  %v3282_v36 = vsub.f32 %v9244_v28, %v3281_v52  ;;  %v3288_v40 = vsub.f32 %v9251_v55, %v3287_v50 }
 0x3f1   : > { %3180 = vmatpush.msrb.mxu0 %v3049_v44  ;;  %3140 = vmatpush.msra.mxu3 %v9156_v53  ;;  %v2158_v32 = vsel %vm504_vm8, %v9143_v51, %v2078_v8  ;;  %v9286_v44 = vand.u32 4294901760, %v2153_v56  ;;  %v9298_v51 = vand.u32 4294901760, %v2148_v38  ;;  %v3300_v21 = vsub.f32 %v9284_v13, %v3299_v42 }
 0x3f2   : > { %3242 = vmatpush.msrb.mxu2 %v9216_v34  ;;  %v9289_v35 = vand.u32 4294901760, %v2158_v32  ;;  %3212 = vmatpush.msrb.mxu1 %v9012_v18  ;;  %v3289_v0 = vand.u32 4294901760, %v3288_v40 }
 0x3f3   : > { %3184 = vmatpush.msrb.mxu0 %v3055_v11  ;;  %3142 = vmatpush.msra.mxu3 %v9137_v62  ;;  %v3293_v11 = vand.u32 4294901760, %v9268_v27  ;;  %v9313_v18 = vsub.f32 %v2153_v56, %v9286_v44  ;;  %v9323_v4 = vsub.f32 %v2148_v38, %v9298_v51  ;;  %v3301_v26 = vand.u32 4294901760, %v3300_v21 }
 0x3f4   : > { %3244 = vmatpush.msrb.mxu2 %v9237_v43  ;;  %v9302_v25 = vsub.f32 %v2158_v32, %v9289_v35  ;;  %3214 = vmatpush.msrb.mxu1 %v9019_v19  ;;  %v3283_v19 = vand.u32 4294901760, %v3282_v36 }
 0x3f5   : > { %3188 = vmatpush.msrb.mxu0 %v3061_v61  ;;  %3144 = vmatpush.msra.mxu3 %v9193_v47  ;;  %v3294_v2 = vsub.f32 %v9268_v27, %v3293_v11 }
 0x3f6   : > { %3246 = vmatpush.msrb.mxu2 %v9248_v37  ;;  %v3305_v61 = vand.u32 4294901760, %v9302_v25  ;;  %3216 = vmatpush.msrb.mxu1 %v9074_v46  ;;  %v3311_v46 = vand.u32 4294901760, %v9313_v18 }
 0x3f7   : > { %3192 = vmatpush.msrb.mxu0 %v3067_v39  ;;  %3146 = vmatpush.msra.mxu3 %v9168_v22  ;;  %v3317_v39 = vand.u32 4294901760, %v9323_v4 }
 0x3f8   : > { %3248 = vmatpush.msrb.mxu2 %v9258_v45  ;;  %v2042_v14 = vpop.permute.xlu0 %2041  ;;  %v3306_v58 = vsub.f32 %v9302_v25, %v3305_v61  ;;  %3150 = vmatmul.f32.vlgmr.msra.gmra.mxu3 %v8739_v63  ;;  %v3312_v12 = vsub.f32 %v9313_v18, %v3311_v46 }
 0x3f9   : > { %3118 = vmatmul.f32.vlgmr.msra.gmra.mxu2 %v8676_v48  ;;  %3278 = vmatpush.msrb.mxu3 %v3277_v60  ;;  %v2143_v59 = vsel %vm504_vm8, %v8480_v41, %v2042_v14  ;;  %v3295_v41 = vand.u32 4294901760, %v3294_v2 }
 0x3fa   : > { %3250 = vmatpush.msrb.mxu2 %v9289_v35  ;;  %v9334_v15 = vand.u32 4294901760, %v2143_v59  ;;  %3196 = vmatpush.msrb.mxu0 %v3073_v30  ;;  %v3307_v31 = vand.u32 4294901760, %v3306_v58  ;;  %v3313_v10 = vand.u32 4294901760, %v3312_v12  ;;  %v6979_v58 = vld [vmem:[%s7097_s30 + $0x10] sm:$0xff] }
 0x3fb   : > { %3284 = vmatpush.msrb.mxu3 %v3283_v19  ;;  %3218 = vmatpush.msrb.mxu1 %v9067_v49  ;;  %v3318_v49 = vsub.f32 %v9323_v4, %v3317_v39 }
 0x3fc   : > { %3252 = vmatpush.msrb.mxu2 %v9286_v44  ;;  %v3322_v16 = vsub.f32 %v2143_v59, %v9334_v15  ;;  %3078 = vmatmul.f32.vlgmr.msra.gmra.mxu1 %v8638_v7 }
 0x3fd   : > { %3290 = vmatpush.msrb.mxu3 %v3289_v0  ;;  %3341 = vmatpush.msra.mxu0 %v9235_v1 }
 0x3fe   : > { %3254 = vmatpush.msrb.mxu2 %v9298_v51  ;;  %v3323_v30 = vand.u32 4294901760, %v3322_v16  ;;  %3220 = vmatpush.msrb.mxu1 %v9156_v53  ;;  %v3319_v53 = vand.u32 4294901760, %v3318_v49 }
 0x3ff   : > { %3296 = vmatpush.msrb.mxu3 %v3295_v41  ;;  %3344 = vmatpush.msra.mxu0 %v9244_v28  ;;  %v6975_v28 = vld [vmem:[%s7097_s30] sm:$0xff] }
 0x400   : > { %3256 = vmatpush.msrb.mxu2 %v9334_v15  ;;  %v3324_v20 = vsub.f32 %v3322_v16, %v3323_v30  ;;  %3222 = vmatpush.msrb.mxu1 %v9137_v62  ;;  %v3527_v62 = vld [vmem:[#allocation2 + $0x30] sm:$0xff] }
 0x401   : > { %3302 = vmatpush.msrb.mxu3 %v3301_v26  ;;  %3347 = vmatpush.msra.mxu0 %v9251_v55 }
 0x402   : > { %3414 = vmatpush.msra.mxu2 %v3275_v9  ;;  %3224 = vmatpush.msrb.mxu1 %v9193_v47  ;;  %v3325_v24 = vand.u32 4294901760, %v3324_v20 }
 0x403   : > { %3308 = vmatpush.msrb.mxu3 %v3307_v31  ;;  %3198 = vmatmul.f32.vlgmr.msrb.gmra.mxu0 %v8638_v7  ;;  %v6980_v31 = vld [vmem:[%s11726_s1 + $0x10] sm:$0xff] }
 0x404   : > { %3350 = vmatpush.msra.mxu0 %v9268_v27  ;;  %3226 = vmatpush.msrb.mxu1 %v9168_v22  ;;  %v3538_v22 = vld [vmem:[#allocation2 + $0x28] sm:$0xff] }
 0x405   : > { %3314 = vmatpush.msrb.mxu3 %v3313_v10  ;;  %3418 = vmatpush.msra.mxu2 %v3281_v52  ;;  %v6976_v52 = vld [vmem:[%s11726_s1] sm:$0xff] }
 0x406   : > { %3228 = vmatmul.f32.vlgmr.msrb.gmra.mxu1 %v8638_v7  ;;  %3353 = vmatpush.msra.mxu0 %v9284_v13 }
 0x407   : > { %3320 = vmatpush.msrb.mxu3 %v3319_v53  ;;  %3380 = vmatpush.msra.mxu1 %v9211_v6 }
 0x408   : > { %3422 = vmatpush.msra.mxu2 %v3287_v50  ;;  %3356 = vmatpush.msra.mxu0 %v9302_v25 }
 0x409   : > { %3326 = vmatpush.msrb.mxu3 %v3325_v24  ;;  %3382 = vmatpush.msra.mxu1 %v9216_v34 }
 0x40a   : > { %3426 = vmatpush.msra.mxu2 %v3293_v11  ;;  %3359 = vmatpush.msra.mxu0 %v9313_v18  ;;  %v6978_v18 = vld [vmem:[%s11726_s1 + $0x8] sm:$0xff] }
 0x40b   : > { %3460 = vmatpush.msra.mxu3 %v9211_v6  ;;  %3384 = vmatpush.msra.mxu1 %v9237_v43 }
 0x40c   : > { %3430 = vmatpush.msra.mxu2 %v3299_v42  ;;  %3362 = vmatpush.msra.mxu0 %v9323_v4 }
 0x40d   : > { %3462 = vmatpush.msra.mxu3 %v9216_v34  ;;  %3386 = vmatpush.msra.mxu1 %v9248_v37 }
 0x40e   : > { %3434 = vmatpush.msra.mxu2 %v3305_v61  ;;  %3365 = vmatpush.msra.mxu0 %v3322_v16 }
 0x40f   : > { %3464 = vmatpush.msra.mxu3 %v9237_v43  ;;  %3388 = vmatpush.msra.mxu1 %v9258_v45 }
 0x410   : > { %3438 = vmatpush.msra.mxu2 %v3311_v46  ;;  %3328 = vmatmul.f32.vlgmr.msrb.gmra.mxu3 %v8638_v7  ;;  %v1866_v46 = vmul.f32 %v6979_v58, %v8342_v5 }
 0x411   : > { %3466 = vmatpush.msra.mxu3 %v9248_v37  ;;  %3390 = vmatpush.msra.mxu1 %v9289_v35  ;;  %v1864_v37 = vmul.f32 %v6975_v28, %v8342_v5 }
 0x412   : > { %3262 = vmatmul.f32.vlgmr.msrb.gmra.mxu2 %v8788_v54  ;;  %3368 = vmatmul.f32.vlgmr.msra.gmra.mxu0 %v8676_v48 }
 0x413   : > { %3442 = vmatpush.msra.mxu2 %v3317_v39  ;;  %3468 = vmatpush.msra.mxu3 %v9258_v45 }
 0x414   : > { %3392 = vmatpush.msra.mxu1 %v9286_v44  ;;  %3545 = vrot.lane.b32.xlu2 %v3527_v62, %s7026_s7 }
 0x415   : > { %3446 = vmatpush.msra.mxu2 %v3323_v30  ;;  %3470 = vmatpush.msra.mxu3 %v9289_v35  ;;  %v6977_v35 = vld [vmem:[%s7097_s30 + $0x8] sm:$0xff] }
 0x416   : > { %3394 = vmatpush.msra.mxu1 %v9298_v51  ;;  %3681 = vrot.lane.b32.xlu0 %v3538_v22, %s7035_s13  ;;  %v1865_v36 = vmul.f32 %v6977_v35, %v8342_v5 }
 0x417   : > { %3472 = vmatpush.msra.mxu3 %v9286_v44  ;;  %3645 = vrot.lane.b32.xlu1 %v3538_v22, %s7036_s14 }
 0x418   : > { %3396 = vmatpush.msra.mxu1 %v9334_v15 }
 0x419   : > { %3474 = vmatpush.msra.mxu3 %v9298_v51  ;;  %3400 = vmatmul.f32.vlgmr.msra.gmra.mxu1 %v8739_v63 }
 0x41a   : > { %3448 = vmatmul.f32.vlgmr.msra.gmra.mxu2 %v8638_v7 }
 0x41b   : > { %3476 = vmatpush.msra.mxu3 %v9334_v15 }
 0x41c   : > { %3478 = vmatmul.f32.vlgmr.msra.gmra.mxu3 %v8638_v7  ;;  %3562 = vrot.lane.b32.xlu2 %v3527_v62, %s7037_s26 }
 0x41e   : > { %3627 = vrot.lane.b32.xlu0 %v3538_v22, %s7038_s27 }
 0x41f   : > { %v2263_v48 = vpop.f32.mrf.mxu2 }
 0x421   : > { %v2329_v54 = vpop.f32.mrf.mxu3 }
 0x422   : > { %v2330_v47 = vadd.f32 %v2329_v54, %v2263_v48  ;;  %v2369_v63 = vpop.f32.mrf.mxu0 }
 0x424   : > { %v2370_v6 = vadd.f32 %v2369_v63, %v2330_v47  ;;  %3580 = vrot.lane.b32.xlu2 %v3527_v62, %s7030_s11  ;;  %v6981_v47 = vld [vmem:[%s7097_s30 + $0x18] sm:$0xff] }
 0x425   : > { %v2401_v34 = vpop.f32.mrf.mxu1  ;;  %v1867_v63 = vmul.f32 %v6981_v47, %v8342_v5 }
 0x426   : > { %v2402_v1 = vadd.f32 %v2401_v34, %v2370_v6 }
 0x42c   : > { %3663 = vrot.lane.b32.xlu2 %v3538_v22, %s7039_s28 }
 0x42d   : > { %v2449_v43 = vpop.f32.mrf.mxu2 }
 0x42e   : > { %v2450_v29 = vadd.f32 %v2449_v43, %v2402_v1 }
 0x42f   : > { %v2479_v7 = vpop.f32.mrf.mxu3 }
 0x430   : > { %v2480_v17 = vadd.f32 %v2479_v7, %v2450_v29  ;;  %v6982_v29 = vld [vmem:[%s11726_s1 + $0x18] sm:$0xff] }
 0x432   : > { %v3482_v33 = vadd.f32 %v2480_v17, %v1864_v37 }
 0x434   : > { %3694 = vrot.lane.b32.xlu2 %v3527_v62, %s7040_s29 }
 0x436   : > { %v2513_v45 = vpop.f32.mrf.mxu0 }
 0x437   : > { %v9414_v55 = vpop.permute.xlu1 %3489 }
 0x438   : > { %v3492_v57 = vadd.f32 %v9414_v55, %v3482_v33 }
 0x43a   : > { %v3497_v9 = vmax.f32 %v3492_v57, 0.0  ;;  %v2579_v56 = vpop.f32.mrf.mxu1 }
 0x43b   : > { %v2580_v27 = vadd.f32 %v2579_v56, %v2513_v45 }
 0x43c   : > { %v3502_v3 = vmul.f32 %v6976_v52, %v3497_v9 }
 0x43e   : > { %3507 = vst [vmem:[%s7099_s5] sm:$0xff] %v3502_v3  ;;  %3597 = vrot.lane.b32.xlu2 %v3502_v3, %s7031_s12  ;;  %3547 = vrot.lane.b32.xlu0 %v3502_v3, %s7026_s7  ;;  %v2619_v8 = vpop.f32.mrf.mxu2 }
 0x43f   : > { %v2620_v50 = vadd.f32 %v2619_v8, %v2580_v27 }
 0x443   : > { %v2651_v38 = vpop.f32.mrf.mxu3 }
 0x444   : > { %v2652_v32 = vadd.f32 %v2651_v38, %v2620_v50  ;;  %v6983_v38 = vld [vmem:[%s7097_s30 + $0x20] sm:$0xff]  ;;  %s6930_s30 = smul.u32 (%p7088_p4), 40, %s7077_s18 }
 0x446   : > { %v2699_v23 = vpop.f32.mrf.mxu0  ;;  %3564 = vrot.lane.b32.xlu0 %v3502_v3, %s7037_s26  ;;  %s6819_s17 = scalar_lea.vmem (%p7088_p4), %s11729_s4, %s6930_s30 }
 0x447   : > { %v2700_v13 = vadd.f32 %v2699_v23, %v2652_v32  ;;  %v1868_v32 = vmul.f32 %v6983_v38, %v8342_v5  ;;  %v6984_v5 = vld [vmem:[%s11726_s1 + $0x20] sm:$0xff] }
 0x449   : > { %v2729_v44 = vpop.f32.mrf.mxu1 }
 0x44a   : > { %v2730_v51 = vadd.f32 %v2729_v44, %v2700_v13 }
 0x44c   : > { %v3483_v25 = vadd.f32 %v2730_v51, %v1865_v36 }
 0x44e   : > { %v3493_v40 = vadd.f32 %v9414_v55, %v3483_v25  ;;  %3671 = vrot.lane.b32.xlu0 %v3502_v3, %s7035_s13 }
 0x450   : > { %v3498_v11 = vmax.f32 %v3493_v40, 0.0 }
 0x452   : > { %v3503_v60 = vmul.f32 %v6978_v18, %v3498_v11 }
 0x454   : > { %3508 = vst [vmem:[%s7099_s5 + $0x8] sm:$0xff] %v3503_v60  ;;  %3549 = vrot.lane.b32.xlu1 %v3503_v60, %s7026_s7 }
 0x456   : > { %3653 = vrot.lane.b32.xlu0 %v3502_v3, %s7039_s28 }
 0x45a   : > { %v2869_v4 = vpop.f32.mrf.mxu0 }
 0x45b   : > { %v2901_v0 = vpop.f32.mrf.mxu1 }
 0x45c   : > { %v2763_v42 = vpop.f32.mrf.mxu2  ;;  %3566 = vrot.lane.b32.xlu1 %v3503_v60, %s7037_s26 }
 0x45d   : > { %v2829_v61 = vpop.f32.mrf.mxu3 }
 0x45e   : > { %v2830_v19 = vadd.f32 %v2829_v61, %v2763_v42  ;;  %3635 = vrot.lane.b32.xlu0 %v3502_v3, %s7036_s14 }
 0x460   : > { %v2870_v2 = vadd.f32 %v2869_v4, %v2830_v19 }
 0x462   : > { %v2902_v14 = vadd.f32 %v2901_v0, %v2870_v2 }
 0x464   : > { %3673 = vrot.lane.b32.xlu1 %v3503_v60, %s7035_s13  ;;  %v2949_v59 = vpop.f32.mrf.mxu2 }
 0x465   : > { %v2950_v15 = vadd.f32 %v2949_v59, %v2902_v14 }
 0x466   : > { %3617 = vrot.lane.b32.xlu0 %v3502_v3, %s7038_s27 }
 0x467   : > { %v3013_v30 = vpop.f32.mrf.mxu0 }
 0x469   : > { %v2979_v21 = vpop.f32.mrf.mxu3 }
 0x46a   : > { %v2980_v41 = vadd.f32 %v2979_v21, %v2950_v15 }
 0x46c   : > { %v3484_v16 = vadd.f32 %v2980_v41, %v1866_v46  ;;  %3655 = vrot.lane.b32.xlu1 %v3503_v60, %s7039_s28 }
 0x46e   : > { %v3494_v39 = vadd.f32 %v9414_v55, %v3484_v16  ;;  %3582 = vrot.lane.b32.xlu0 %v3502_v3, %s7030_s11  ;;  %v9469_v17 = vpop.permute.xlu2 %3545 }
 0x470   : > { %v3499_v26 = vmax.f32 %v3494_v39, 0.0 }
 0x472   : > { %v3504_v12 = vmul.f32 %v6980_v31, %v3499_v26 }
 0x474   : > { %3509 = vst [vmem:[%s7099_s5 + $0x10] sm:$0xff] %v3504_v12  ;;  %3551 = vrot.lane.b32.xlu2 %v3504_v12, %s7026_s7  ;;  %3637 = vrot.lane.b32.xlu1 %v3503_v60, %s7036_s14 }
 0x476   : > { %3696 = vrot.lane.b32.xlu0 %v3502_v3, %s7040_s29  ;;  %v3563_v8 = vpop.permute.xlu2 %3562 }
 0x479   : > { %v3079_v49 = vpop.f32.mrf.mxu1 }
 0x47a   : > { %v3080_v10 = vadd.f32 %v3079_v49, %v3013_v30 }
 0x47b   : > { %v3151_v24 = vpop.f32.mrf.mxu3 }
 0x47c   : > { %v3119_v20 = vpop.f32.mrf.mxu2  ;;  %3568 = vrot.lane.b32.xlu2 %v3504_v12, %s7037_s26  ;;  %3619 = vrot.lane.b32.xlu1 %v3503_v60, %s7038_s27 }
 0x47d   : > { %v3120_v53 = vadd.f32 %v3119_v20, %v3080_v10 }
 0x47e   : > { %3599 = vrot.lane.b32.xlu0 %v3503_v60, %s7031_s12  ;;  %v3581_v25 = vpop.permute.xlu2 %3580 }
 0x47f   : > { %v3152_v62 = vadd.f32 %v3151_v24, %v3120_v53 }
 0x480   : > { %v3199_v22 = vpop.f32.mrf.mxu0 }
 0x481   : > { %v3200_v48 = vadd.f32 %v3199_v22, %v3152_v62 }
 0x483   : > { %v3229_v54 = vpop.f32.mrf.mxu1 }
 0x484   : > { %v3230_v6 = vadd.f32 %v3229_v54, %v3200_v48  ;;  %3675 = vrot.lane.b32.xlu2 %v3504_v12, %s7035_s13  ;;  %3584 = vrot.lane.b32.xlu1 %v3503_v60, %s7030_s11 }
 0x486   : > { %v3485_v34 = vadd.f32 %v3230_v6, %v1867_v63  ;;  %3698 = vrot.lane.b32.xlu0 %v3503_v60, %s7040_s29  ;;  %v9508_v40 = vpop.permute.xlu2 %3663 }
 0x488   : > { %v3495_v1 = vadd.f32 %v9414_v55, %v3485_v34  ;;  %v9478_v3 = vpop.permute.xlu0 %3681 }
 0x489   : > { %v9522_v60 = vpop.permute.xlu1 %3645 }
 0x48a   : > { %v3500_v43 = vmax.f32 %v3495_v1, 0.0 }
 0x48c   : > { %v9462_v7 = vmul.f32 %v6982_v29, %v3500_v43  ;;  %3657 = vrot.lane.b32.xlu2 %v3504_v12, %s7039_s28  ;;  %3621 = vrot.lane.b32.xlu1 %v3504_v12, %s7038_s27 }
 0x48e   : > { %3510 = vst [vmem:[%s7099_s5 + $0x18] sm:$0xff] %v9462_v7  ;;  %3586 = vrot.lane.b32.xlu0 %v3504_v12, %s7030_s11  ;;  %v9516_v18 = vpop.permute.xlu2 %3694 }
 0x48f   : > { %v3369_v33 = vpop.f32.mrf.mxu0 }
 0x490   : > { %v9491_v36 = vpop.permute.xlu0 %3627 }
 0x493   : > { %v3329_v37 = vpop.f32.mrf.mxu3 }
 0x494   : > { %3639 = vrot.lane.b32.xlu2 %v3504_v12, %s7036_s14  ;;  %3700 = vrot.lane.b32.xlu1 %v3504_v12, %s7040_s29 }
 0x495   : > { %v3263_v28 = vpop.f32.mrf.mxu2 }
 0x496   : > { %3553 = vrot.lane.b32.xlu0 %v9462_v7, %s7026_s7  ;;  %v3330_v57 = vadd.f32 %v3329_v37, %v3263_v28  ;;  %v3401_v9 = vpop.f32.mrf.mxu1 }
 0x498   : > { %v3370_v45 = vadd.f32 %v3369_v33, %v3330_v57  ;;  %v3598_v61 = vpop.permute.xlu2 %3597 }
 0x49a   : > { %v3402_v56 = vadd.f32 %v3401_v9, %v3370_v45 }
 0x49c   : > { %3601 = vrot.lane.b32.xlu2 %v3504_v12, %s7031_s12  ;;  %3677 = vrot.lane.b32.xlu1 %v9462_v7, %s7035_s13 }
 0x49d   : > { %v3449_v52 = vpop.f32.mrf.mxu2 }
 0x49e   : > { %v3450_v27 = vadd.f32 %v3449_v52, %v3402_v56  ;;  %3641 = vrot.lane.b32.xlu0 %v9462_v7, %s7036_s14 }
 0x49f   : > { %v3479_v50 = vpop.f32.mrf.mxu3 }
 0x4a0   : > { %v3480_v23 = vadd.f32 %v3479_v50, %v3450_v27 }
 0x4a2   : > { %v3486_v13 = vadd.f32 %v3480_v23, %v1868_v32 }
 0x4a4   : > { %v3496_v44 = vadd.f32 %v9414_v55, %v3486_v13  ;;  %3659 = vrot.lane.b32.xlu2 %v9462_v7, %s7039_s28  ;;  %3623 = vrot.lane.b32.xlu1 %v9462_v7, %s7038_s27 }
 0x4a6   : > { %v3501_v35 = vmax.f32 %v3496_v44, 0.0  ;;  %3570 = vrot.lane.b32.xlu0 %v9462_v7, %s7037_s26 }
 0x4a8   : > { %v9496_v51 = vmul.f32 %v6984_v5, %v3501_v35 }
 0x4aa   : > { %3511 = vst [vmem:[%s7099_s5 + $0x20] sm:$0xff] %v9496_v51 }
 0x4ac   : > { %3603 = vrot.lane.b32.xlu2 %v9462_v7, %s7031_s12  ;;  %3588 = vrot.lane.b32.xlu1 %v9462_v7, %s7030_s11 }
 0x4ae   : > { %3643 = vrot.lane.b32.xlu0 %v9496_v51, %s7036_s14 }
 0x4b0   : > { %v9506_v55 = vpop.permute.xlu0 %3547 }
 0x4b1   : > { %v3557_v22 = vsel %vm274_vm6, %v9469_v17, %v9506_v55 }
 0x4b4   : > { %3661 = vrot.lane.b32.xlu2 %v9496_v51, %s7039_s28  ;;  %3555 = vrot.lane.b32.xlu1 %v9496_v51, %s7026_s7 }
 0x4b8   : > { %v9514_v11 = vpop.permute.xlu0 %3564 }
 0x4b9   : > { %v3575_v49 = vsel %vm3574_vm12, %v3563_v8, %v9514_v11 }
 0x4bc   : > { %3625 = vrot.lane.b32.xlu2 %v9496_v51, %s7038_s27  ;;  %3679 = vrot.lane.b32.xlu1 %v9496_v51, %s7035_s13 }
 0x4c0   : > { %v3672_v42 = vpop.permute.xlu0 %3671 }
 0x4c4   : > { %3605 = vrot.lane.b32.xlu2 %v9496_v51, %s7031_s12 }
 0x4c6   : > { %v9526_v4 = vpop.permute.xlu1 %3549 }
 0x4c7   : > { %v3558_v50 = vsel %vm274_vm6, %v9506_v55, %v9526_v4 }
 0x4c8   : > { %v3654_v19 = vpop.permute.xlu0 %3653 }
 0x4cc   : > { %3590 = vrot.lane.b32.xlu2 %v9496_v51, %s7030_s11 }
 0x4ce   : > { %v9530_v0 = vpop.permute.xlu2 %3551  ;;  %v9532_v2 = vpop.permute.xlu1 %3566 }
 0x4cf   : > { %v3576_v9 = vsel %vm3574_vm12, %v9514_v11, %v9532_v2  ;;  %v3559_v45 = vsel %vm274_vm6, %v9526_v4, %v9530_v0 }
 0x4d0   : > { %v3636_v14 = vpop.permute.xlu0 %3635 }
 0x4d4   : > { %3572 = vrot.lane.b32.xlu2 %v9496_v51, %s7037_s26 }
 0x4d6   : > { %v9536_v59 = vpop.permute.xlu2 %3568  ;;  %v3674_v15 = vpop.permute.xlu1 %3673 }
 0x4d7   : > { %v3684_v16 = vsel %vm3683_vm10, %v3672_v42, %v3674_v15  ;;  %v3577_v55 = vsel %vm3574_vm12, %v9532_v2, %v9536_v59 }
 0x4d8   : > { %v3618_v21 = vpop.permute.xlu0 %3617 }
 0x4d9   : > { %3754 = vrot.lane.b32.xlu0 %v3618_v21, %s7040_s29 }
 0x4dc   : > { %3742 = vrot.lane.b32.xlu2 %v3598_v61, %s7040_s29 }
 0x4de   : > { %v9540_v58 = vpop.permute.xlu2 %3675  ;;  %v3656_v46 = vpop.permute.xlu1 %3655 }
 0x4df   : > { %v3666_v30 = vsel %vm3665_vm11, %v3654_v19, %v3656_v46  ;;  %v3685_v54 = vsel %vm3683_vm10, %v3674_v15, %v9540_v58 }
 0x4e0   : > { %v3583_v41 = vpop.permute.xlu0 %3582 }
 0x4e1   : > { %3790 = vrot.lane.b32.xlu0 %v3684_v16, %s7040_s29  ;;  %v3592_v39 = vsel %vm349_vm2, %v3581_v25, %v3583_v41 }
 0x4e4   : > { %3730 = vrot.lane.b32.xlu2 %v3592_v39, %s7040_s29 }
 0x4e6   : > { %v9546_v26 = vpop.permute.xlu2 %3657  ;;  %v3638_v31 = vpop.permute.xlu1 %3637 }
 0x4e7   : > { %v3648_v62 = vsel %vm3647_vm14, %v3636_v14, %v3638_v31  ;;  %v3667_v1 = vsel %vm3665_vm11, %v3656_v46, %v9546_v26 }
 0x4e8   : > { %v9548_v12 = vpop.permute.xlu0 %3696 }
 0x4e9   : > { %3778 = vrot.lane.b32.xlu0 %v3666_v30, %s7040_s29 }
 0x4ec   : > { %3718 = vrot.lane.b32.xlu2 %v3575_v49, %s7040_s29 }
 0x4ee   : > { %v3620_v20 = vpop.permute.xlu1 %3619  ;;  %v9556_v53 = vpop.permute.xlu2 %3639 }
 0x4ef   : > { %v3630_v10 = vsel %vm3629_vm13, %v3618_v21, %v3620_v20  ;;  %v3649_v33 = vsel %vm3647_vm14, %v3638_v31, %v9556_v53 }
 0x4f0   : > { %3756 = vrot.lane.b32.xlu1 %v3630_v10, %s7040_s29  ;;  %v3600_v24 = vpop.permute.xlu0 %3599 }
 0x4f1   : > { %3766 = vrot.lane.b32.xlu0 %v3648_v62, %s7040_s29  ;;  %v3607_v63 = vsel %vm385_vm0, %v3598_v61, %v3600_v24 }
 0x4f4   : > { %3706 = vrot.lane.b32.xlu2 %v3557_v22, %s7040_s29 }
 0x4f6   : > { %v3585_v48 = vpop.permute.xlu1 %3584  ;;  %v3602_v6 = vpop.permute.xlu2 %3601 }
 0x4f7   : > { %v3593_v29 = vsel %vm349_vm2, %v3583_v41, %v3585_v48  ;;  %v3608_v23 = vsel %vm385_vm0, %v3600_v24, %v3602_v6 }
 0x4f8   : > { %3792 = vrot.lane.b32.xlu1 %v3685_v54, %s7040_s29  ;;  %v9568_v47 = vpop.permute.xlu0 %3698 }
 0x4f9   : > { %3744 = vrot.lane.b32.xlu0 %v3607_v63, %s7040_s29 }
 0x4fe   : > { %v9572_v34 = vpop.permute.xlu1 %3621  ;;  %v3660_v28 = vpop.permute.xlu2 %3659 }
 0x4ff   : > { %v3631_v27 = vsel %vm3629_vm13, %v3620_v20, %v9572_v34  ;;  %v3668_v21 = vsel %vm3665_vm11, %v9546_v26, %v3660_v28 }
 0x500   : > { %3780 = vrot.lane.b32.xlu1 %v3667_v1, %s7040_s29  ;;  %v9577_v43 = vpop.permute.xlu0 %3586 }
 0x501   : > { %3732 = vrot.lane.b32.xlu0 %v3593_v29, %s7040_s29  ;;  %v3594_v17 = vsel %vm349_vm2, %v3585_v48, %v9577_v43  ;;  %v6915_v29 = vld [vmem:[%s11727_s2 + $0x10] sm:$0xff] }
 0x502   : > { %3734 = vrot.lane.b32.xlu2 %v3594_v17, %s7040_s29 }
 0x506   : > { %v9584_v37 = vpop.permute.xlu1 %3700  ;;  %v3604_v56 = vpop.permute.xlu2 %3603 }
 0x507   : > { %v3609_v38 = vsel %vm385_vm0, %v3602_v6, %v3604_v56 }
 0x508   : > { %3768 = vrot.lane.b32.xlu1 %v3649_v33, %s7040_s29  ;;  %v3554_v57 = vpop.permute.xlu0 %3553 }
 0x509   : > { %3720 = vrot.lane.b32.xlu0 %v3576_v9, %s7040_s29  ;;  %v3560_v35 = vsel %vm274_vm6, %v9530_v0, %v3554_v57  ;;  %v3894_v9 = vsel %vm595_vm9, %v6915_v29, 0 }
 0x50a   : > { %3710 = vrot.lane.b32.xlu2 %v3559_v45, %s7040_s29 }
 0x50e   : > { %v3678_v52 = vpop.permute.xlu1 %3677  ;;  %v3662_v5 = vpop.permute.xlu2 %3661 }
 0x50f   : > { %v3669_v61 = vsel %vm3665_vm11, %v3660_v28, %v3662_v5  ;;  %v3686_v0 = vsel %vm3683_vm10, %v9540_v58, %v3678_v52  ;;  %v3670_v2 = vsel %vm3665_vm11, %v3662_v5, %v9508_v40 }
 0x510   : > { %3758 = vrot.lane.b32.xlu1 %v3631_v27, %s7040_s29  ;;  %v3642_v8 = vpop.permute.xlu0 %3641 }
 0x511   : > { %3708 = vrot.lane.b32.xlu0 %v3558_v50, %s7040_s29  ;;  %v3650_v46 = vsel %vm3647_vm14, %v9556_v53, %v3642_v8  ;;  %v9719_v50 = vand.u32 4294901760, %v3894_v9 }
 0x512   : > { %3748 = vrot.lane.b32.xlu2 %v3609_v38, %s7040_s29 }
 0x516   : > { %v3624_v32 = vpop.permute.xlu1 %3623  ;;  %v3626_v4 = vpop.permute.xlu2 %3625 }
 0x517   : > { %v3633_v41 = vsel %vm3629_vm13, %v3624_v32, %v3626_v4  ;;  %v3632_v26 = vsel %vm3629_vm13, %v9572_v34, %v3624_v32 }
 0x518   : > { %3746 = vrot.lane.b32.xlu1 %v3608_v23, %s7040_s29  ;;  %v3571_v13 = vpop.permute.xlu0 %3570 }
 0x519   : > { %v3578_v44 = vsel %vm3574_vm12, %v9536_v59, %v3571_v13 }
 0x51a   : > { %3724 = vrot.lane.b32.xlu0 %v3578_v44, %s7040_s29  ;;  %3712 = vrot.lane.b32.xlu2 %v3560_v35, %s7040_s29 }
 0x51e   : > { %v3589_v25 = vpop.permute.xlu1 %3588  ;;  %v3606_v14 = vpop.permute.xlu2 %3605 }
 0x51f   : > { %v3610_v58 = vsel %vm385_vm0, %v3604_v56, %v3606_v14  ;;  %v3595_v30 = vsel %vm349_vm2, %v9577_v43, %v3589_v25 }
 0x520   : > { %3722 = vrot.lane.b32.xlu1 %v3577_v55, %s7040_s29  ;;  %v3644_v11 = vpop.permute.xlu0 %3643  ;;  %v9740_v55 = vsub.f32 %v3894_v9, %v9719_v50 }
 0x521   : > { %v3651_v42 = vsel %vm3647_vm14, %v3642_v8, %v3644_v11  ;;  %v3652_v10 = vsel %vm3647_vm14, %v3644_v11, %v9522_v60  ;;  %v3803_v11 = vsel %vm3802_vm15, %v9516_v18, %v9548_v12 }
 0x522   : > { %3772 = vrot.lane.b32.xlu0 %v3651_v42, %s7040_s29  ;;  %3784 = vrot.lane.b32.xlu2 %v3669_v61, %s7040_s29 }
 0x526   : > { %v3556_v19 = vpop.permute.xlu1 %3555  ;;  %v3591_v39 = vpop.permute.xlu2 %3590 }
 0x527   : > { %v3561_v16 = vsel %vm274_vm6, %v3554_v57, %v3556_v19  ;;  %v3596_v31 = vsel %vm349_vm2, %v3589_v25, %v3591_v39 }
 0x528   : > { %3794 = vrot.lane.b32.xlu1 %v3686_v0, %s7040_s29 }
 0x52a   : > { %3786 = vrot.lane.b32.xlu2 %v3670_v2, %s7040_s29 }
 0x52e   : > { %v3680_v59 = vpop.permute.xlu1 %3679  ;;  %v3573_v53 = vpop.permute.xlu2 %3572 }
 0x52f   : > { %v3688_v15 = vsel %vm3683_vm10, %v3680_v59, %v9478_v3  ;;  %v3687_v20 = vsel %vm3683_vm10, %v3678_v52, %v3680_v59  ;;  %v3579_v62 = vsel %vm3574_vm12, %v3571_v13, %v3573_v53 }
 0x530   : > { %3798 = vrot.lane.b32.xlu0 %v3688_v15, %s7040_s29  ;;  %3782 = vrot.lane.b32.xlu1 %v3668_v21, %s7040_s29  ;;  %v6917_v15 = vld [vmem:[%s11728_s3 + $0x18] sm:$0xff] }
 0x532   : > { %3750 = vrot.lane.b32.xlu2 %v3610_v58, %s7040_s29  ;;  %v9769_v58 = vand.u32 4294901760, %v3803_v11 }
 0x536   : > { %v3743_v48 = vpop.permute.xlu2 %3742 }
 0x538   : > { %3770 = vrot.lane.b32.xlu1 %v3650_v46, %s7040_s29  ;;  %3762 = vrot.lane.b32.xlu0 %v3633_v41, %s7040_s29  ;;  %v9773_v46 = vand.u32 4294901760, %v9740_v55 }
 0x53a   : > { %3714 = vrot.lane.b32.xlu2 %v3561_v16, %s7040_s29 }
 0x53e   : > { %v3731_v1 = vpop.permute.xlu2 %3730 }
 0x540   : > { %3760 = vrot.lane.b32.xlu1 %v3632_v26, %s7040_s29  ;;  %3738 = vrot.lane.b32.xlu0 %v3596_v31, %s7040_s29 }
 0x542   : > { %3788 = vrot.lane.b32.xlu2 %v9508_v40, %s7040_s29 }
 0x546   : > { %v3719_v13 = vpop.permute.xlu2 %3718 }
 0x548   : > { %3736 = vrot.lane.b32.xlu1 %v3595_v30, %s7040_s29  ;;  %3702 = vrot.lane.b32.xlu0 %v9462_v7, %s7040_s29  ;;  %v6918_v7 = vld [vmem:[%s11728_s3 + $0x20] sm:$0xff] }
 0x54a   : > { %3752 = vrot.lane.b32.xlu2 %v3606_v14, %s7040_s29 }
 0x54b   : > { %v3755_v49 = vpop.permute.xlu0 %3754 }
 0x550   : > { %3796 = vrot.lane.b32.xlu1 %v3687_v20, %s7040_s29  ;;  %3776 = vrot.lane.b32.xlu0 %v9522_v60, %s7040_s29  ;;  %v3707_v20 = vpop.permute.xlu2 %3706 }
 0x552   : > { %3716 = vrot.lane.b32.xlu2 %v3556_v19, %s7040_s29 }
 0x553   : > { %v3791_v40 = vpop.permute.xlu0 %3790 }
 0x558   : > { %3774 = vrot.lane.b32.xlu1 %v3652_v10, %s7040_s29  ;;  %3740 = vrot.lane.b32.xlu0 %v3591_v39, %s7040_s29  ;;  %v3924_v10 = vsub.f32 %v9740_v55, %v9773_v46 }
 0x55a   : > { %5158 = vperm.xlu2 %6972, %v6918_v7   ;;  %v9798_v7 = vsub.f32 %v3803_v11, %v9769_v58 }
 0x55b   : > { %v3779_v24 = vpop.permute.xlu0 %3778 }
 0x560   : > { %3704 = vrot.lane.b32.xlu0 %v9496_v51, %s7040_s29  ;;  %3726 = vrot.lane.b32.xlu1 %v3579_v62, %s7040_s29 }
 0x562   : > { %v9672_v22 = vpop.permute.xlu1 %3756 }
 0x563   : > { %v3767_v60 = vpop.permute.xlu0 %3766  ;;  %v3828_v33 = vsel %vm3802_vm15, %v3755_v49, %v9672_v22 }
 0x564   : > { %v9713_v27 = vand.u32 4294901760, %v3828_v33 }
 0x566   : > { %v9737_v25 = vsub.f32 %v3828_v33, %v9713_v27 }
 0x568   : > { %3800 = vrot.lane.b32.xlu1 %v9478_v3, %s7040_s29  ;;  %v3634_v3 = vsel %vm3629_vm13, %v3626_v4, %v9491_v36  ;;  %v3957_v21 = vand.u32 4294901760, %v9737_v25 }
 0x56a   : > { %v9676_v54 = vpop.permute.xlu1 %3792  ;;  %v3958_v30 = vsub.f32 %v9737_v25, %v3957_v21 }
 0x56b   : > { %v3843_v63 = vsel %vm3802_vm15, %v3791_v40, %v9676_v54  ;;  %v9680_v6 = vpop.permute.xlu0 %3744 }
 0x56c   : > { %v9682_v34 = vand.u32 4294901760, %v3843_v63  ;;  %v3823_v52 = vsel %vm3802_vm15, %v3743_v48, %v9680_v6 }
 0x56d   : > { %v9724_v32 = vand.u32 4294901760, %v3823_v52 }
 0x56e   : > { %v9685_v51 = vsub.f32 %v3843_v63, %v9682_v34  ;;  %3904 = vmatpush.msrb.mxu0 %v9682_v34  ;;  %4044 = vmatpush.msrb.mxu3 %v9682_v34  ;;  %v3959_v63 = vand.u32 4294901760, %v3958_v30 }
 0x56f   : > { %v9750_v4 = vsub.f32 %v3823_v52, %v9724_v32 }
 0x570   : > { %v3939_v43 = vand.u32 4294901760, %v9685_v51  ;;  %4005 = vmatpush.msrb.mxu2 %v9685_v51  ;;  %3764 = vrot.lane.b32.xlu1 %v3634_v3, %s7040_s29 }
 0x571   : > { %v3963_v39 = vand.u32 4294901760, %v9750_v4 }
 0x572   : > { %v9697_v17 = vpop.permute.xlu1 %3780  ;;  %v3940_v28 = vsub.f32 %v9685_v51, %v3939_v43  ;;  %v9841_v51 = vpop.permute.xlu2 %3734 }
 0x573   : > { %v3838_v36 = vsel %vm3802_vm15, %v3779_v24, %v9697_v17  ;;  %v9706_v57 = vpop.permute.xlu0 %3732  ;;  %v3964_v62 = vsub.f32 %v9750_v4, %v3963_v39 }
 0x574   : > { %v9709_v45 = vand.u32 4294901760, %v3838_v36  ;;  %v3941_v56 = vand.u32 4294901760, %v3940_v28  ;;  %v3818_v38 = vsel %vm3802_vm15, %v3731_v1, %v9706_v57  ;;  %v9817_v28 = vand.u32 4294901760, %v3924_v10 }
 0x575   : > { %v9729_v44 = vand.u32 4294901760, %v3818_v38  ;;  %v3965_v29 = vand.u32 4294901760, %v3964_v62  ;;  %v3804_v10 = vsel %vm3802_vm15, %v9548_v12, %v9568_v47 }
 0x576   : > { %3906 = vmatpush.msrb.mxu0 %v9709_v45  ;;  %3942 = vmatpush.msrb.mxu1 %v3941_v56  ;;  %v9717_v8 = vsub.f32 %v3838_v36, %v9709_v45  ;;  %v3987_v36 = vand.u32 4294901760, %v9798_v7 }
 0x577   : > { %4046 = vmatpush.msrb.mxu3 %v9709_v45  ;;  %v9759_v59 = vsub.f32 %v3818_v38, %v9729_v44 }
 0x578   : > { %4008 = vmatpush.msrb.mxu2 %v9717_v8  ;;  %3728 = vrot.lane.b32.xlu1 %v3573_v53, %s7040_s29  ;;  %v3945_v23 = vand.u32 4294901760, %v9717_v8 }
 0x579   : > { %v3969_v49 = vand.u32 4294901760, %v9759_v59 }
 0x57a   : > { %v9731_v35 = vpop.permute.xlu1 %3768  ;;  %v3946_v5 = vsub.f32 %v9717_v8, %v3945_v23 }
 0x57b   : > { %v3833_v42 = vsel %vm3802_vm15, %v3767_v60, %v9731_v35  ;;  %v9747_v61 = vpop.permute.xlu0 %3720  ;;  %v3970_v1 = vsub.f32 %v9759_v59, %v3969_v49 }
 0x57c   : > { %v9752_v19 = vand.u32 4294901760, %v3833_v42  ;;  %v3813_v0 = vsel %vm3802_vm15, %v3719_v13, %v9747_v61  ;;  %v3947_v2 = vand.u32 4294901760, %v3946_v5  ;;  %v3988_v5 = vsub.f32 %v9798_v7, %v3987_v36 }
 0x57d   : > { %v9756_v14 = vand.u32 4294901760, %v3813_v0  ;;  %v3971_v52 = vand.u32 4294901760, %v3970_v1 }
 0x57e   : > { %3908 = vmatpush.msrb.mxu0 %v9752_v19  ;;  %3948 = vmatpush.msrb.mxu1 %v3947_v2  ;;  %v9763_v18 = vsub.f32 %v3833_v42, %v9752_v19  ;;  %v3989_v42 = vand.u32 4294901760, %v3988_v5 }
 0x57f   : > { %4048 = vmatpush.msrb.mxu3 %v9752_v19  ;;  %v9776_v41 = vsub.f32 %v3813_v0, %v9756_v14 }
 0x580   : > { %3910 = vmatpush.msrb.mxu0 %v9713_v27  ;;  %4011 = vmatpush.msrb.mxu2 %v9763_v18  ;;  %v3951_v16 = vand.u32 4294901760, %v9763_v18 }
 0x581   : > { %4050 = vmatpush.msrb.mxu3 %v9713_v27  ;;  %3691 = vperm.xlu1 %6974, %v6917_v15   ;;  %v3975_v60 = vand.u32 4294901760, %v9776_v41  ;;  %v9904_v15 = vld [vmem:[#allocation2 + $0x28] sm:$0xff] }
 0x582   : > { %4014 = vmatpush.msrb.mxu2 %v9737_v25  ;;  %v9784_v26 = vpop.permute.xlu1 %3758  ;;  %3912 = vmatpush.msrb.mxu0 %v9724_v32  ;;  %v3952_v31 = vsub.f32 %v9763_v18, %v3951_v16 }
 0x583   : > { %4052 = vmatpush.msrb.mxu3 %v9724_v32  ;;  %v9793_v40 = vpop.permute.xlu0 %3708  ;;  %v3976_v33 = vsub.f32 %v9776_v41, %v3975_v60  ;;  %5321 = vrot.lane.b32.xlu2 %v9904_v15, %s7035_s13 }
 0x584   : > { %v3808_v53 = vsel %vm3802_vm15, %v3707_v20, %v9793_v40  ;;  %3914 = vmatpush.msrb.mxu0 %v9729_v44  ;;  %4017 = vmatpush.msrb.mxu2 %v9750_v4  ;;  %v3953_v24 = vand.u32 4294901760, %v3952_v31 }
 0x585   : > { %v9808_v48 = vand.u32 4294901760, %v3808_v53  ;;  %4054 = vmatpush.msrb.mxu3 %v9729_v44  ;;  %v3977_v13 = vand.u32 4294901760, %v3976_v33 }
 0x586   : > { %3916 = vmatpush.msrb.mxu0 %v9756_v14  ;;  %3954 = vmatpush.msrb.mxu1 %v3953_v24  ;;  %v9948_v24 = vand.u32 4294901760, %v3804_v10 }
 0x587   : > { %v3980_v3 = vsub.f32 %v3808_v53, %v9808_v48  ;;  %4020 = vmatpush.msrb.mxu2 %v9759_v59  ;;  %4056 = vmatpush.msrb.mxu3 %v9756_v14 }
 0x588   : > { %3918 = vmatpush.msrb.mxu0 %v9808_v48  ;;  %3960 = vmatpush.msrb.mxu1 %v3959_v63 }
 0x589   : > { %4023 = vmatpush.msrb.mxu2 %v9776_v41  ;;  %4058 = vmatpush.msrb.mxu3 %v9808_v48  ;;  %v3981_v9 = vand.u32 4294901760, %v3980_v3 }
 0x58a   : > { %v9823_v56 = vpop.permute.xlu1 %3746  ;;  %3920 = vmatpush.msrb.mxu0 %v9769_v58  ;;  %3966 = vmatpush.msrb.mxu1 %v3965_v29 }
 0x58b   : > { %4026 = vmatpush.msrb.mxu2 %v3980_v3  ;;  %4060 = vmatpush.msrb.mxu3 %v9769_v58  ;;  %v3982_v38 = vsub.f32 %v3980_v3, %v3981_v9  ;;  %v3824_v2 = vsel %vm3802_vm15, %v9680_v6, %v9823_v56 }
 0x58c   : > { %3926 = vmatmul.f32.vlgmr.msrb.gmra.mxu0 %v9817_v28  ;;  %3972 = vmatpush.msrb.mxu1 %v3971_v52  ;;  %v9899_v18 = vand.u32 4294901760, %v3824_v2 }
 0x58d   : > { %4078 = vmatpush.msra.mxu0 %v3939_v43  ;;  %4029 = vmatpush.msrb.mxu2 %v9798_v7  ;;  %v3983_v11 = vand.u32 4294901760, %v3982_v38  ;;  %v9985_v38 = vsub.f32 %v3804_v10, %v9948_v24 }
 0x58e   : > { %3978 = vmatpush.msrb.mxu1 %v3977_v13  ;;  %4032 = vmatmul.f32.vlgmr.msrb.gmra.mxu2 %v9740_v55  ;;  %v9928_v31 = vsub.f32 %v3824_v2, %v9899_v18 }
 0x58f   : > { %4082 = vmatpush.msra.mxu0 %v3945_v23  ;;  %4064 = vmatmul.f32.vlgmr.msrb.gmra.mxu3 %v9773_v46 }
 0x590   : > { %3984 = vmatpush.msrb.mxu1 %v3983_v11  ;;  %5304 = vrot.lane.b32.xlu2 %v9904_v15, %s7039_s28 }
 0x591   : > { %4086 = vmatpush.msra.mxu0 %v3951_v16 }
 0x592   : > { %v9836_v0 = vpop.permute.xlu1 %3722  ;;  %3990 = vmatpush.msrb.mxu1 %v3989_v42 }
 0x593   : > { %4090 = vmatpush.msra.mxu0 %v3957_v21  ;;  %3992 = vmatmul.f32.vlgmr.msrb.gmra.mxu1 %v9719_v50  ;;  %v3814_v21 = vsel %vm3802_vm15, %v9747_v61, %v9836_v0 }
 0x594   : > { %4124 = vmatpush.msra.mxu1 %v9682_v34  ;;  %v9857_v34 = vpop.permute.xlu2 %3710  ;;  %v9930_v30 = vand.u32 4294901760, %v3814_v21 }
 0x595   : > { %4094 = vmatpush.msra.mxu0 %v3963_v39  ;;  %v3809_v39 = vsel %vm3802_vm15, %v9793_v40, %v9857_v34 }
 0x596   : > { %4126 = vmatpush.msra.mxu1 %v9709_v45  ;;  %v9940_v40 = vand.u32 4294901760, %v3809_v39  ;;  %v9951_v62 = vsub.f32 %v3814_v21, %v9930_v30 }
 0x597   : > { %4098 = vmatpush.msra.mxu0 %v3969_v49 }
 0x598   : > { %4128 = vmatpush.msra.mxu1 %v9752_v19  ;;  %v9963_v63 = vsub.f32 %v3809_v39, %v9940_v40  ;;  %v4225_v13 = vand.u32 4294901760, %v9951_v62  ;;  %5287 = vrot.lane.b32.xlu2 %v9904_v15, %s7036_s14 }
 0x599   : > { %4102 = vmatpush.msra.mxu0 %v3975_v60  ;;  %v4213_v60 = vand.u32 4294901760, %v9928_v31 }
 0x59a   : > { %4130 = vmatpush.msra.mxu1 %v9713_v27  ;;  %v9849_v43 = vpop.permute.xlu1 %3794  ;;  %v4231_v42 = vand.u32 4294901760, %v9963_v63 }
 0x59b   : > { %4106 = vmatpush.msra.mxu0 %v3981_v9  ;;  %v3844_v8 = vsel %vm3802_vm15, %v9676_v54, %v9849_v43  ;;  %v4214_v52 = vsub.f32 %v9928_v31, %v4213_v60 }
 0x59c   : > { %v9854_v23 = vand.u32 4294901760, %v3844_v8  ;;  %4132 = vmatpush.msra.mxu1 %v9724_v32  ;;  %v4232_v2 = vsub.f32 %v9963_v63, %v4231_v42 }
 0x59d   : > { %4110 = vmatpush.msra.mxu0 %v3987_v36  ;;  %v9977_v36 = vpop.permute.xlu0 %3724 }
 0x59e   : > { %v9860_v45 = vsub.f32 %v3844_v8, %v9854_v23  ;;  %4112 = vmatmul.f32.vlgmr.msra.gmra.mxu0 %v9719_v50  ;;  %4134 = vmatpush.msra.mxu1 %v9729_v44  ;;  %v3829_v44 = vsel %vm3802_vm15, %v9672_v22, %v9784_v26  ;;  %v3819_v22 = vsel %vm3802_vm15, %v9706_v57, %v9841_v51  ;;  %v4215_v8 = vand.u32 4294901760, %v4214_v52 }
 0x59f   : > { %4154 = vmatpush.msra.mxu2 %v9854_v23  ;;  %v9911_v57 = vand.u32 4294901760, %v3819_v22 }
 0x5a0   : > { %v4189_v27 = vand.u32 4294901760, %v9860_v45  ;;  %4136 = vmatpush.msra.mxu1 %v9756_v14  ;;  %4255 = vmatpush.msrb.mxu0 %v9860_v45  ;;  %v9887_v14 = vand.u32 4294901760, %v3829_v44 }
 0x5a1   : > { %v9938_v7 = vsub.f32 %v3819_v22, %v9911_v57 }
 0x5a2   : > { %v4190_v54 = vsub.f32 %v9860_v45, %v4189_v27  ;;  %4138 = vmatpush.msra.mxu1 %v9808_v48  ;;  %v9872_v32 = vpop.permute.xlu1 %3782 }
 0x5a3   : > { %v3839_v25 = vsel %vm3802_vm15, %v9697_v17, %v9872_v32  ;;  %v9897_v17 = vpop.permute.xlu2 %3748  ;;  %v4219_v33 = vand.u32 4294901760, %v9938_v7 }
 0x5a4   : > { %v9880_v4 = vand.u32 4294901760, %v3839_v25  ;;  %4140 = vmatpush.msra.mxu1 %v9769_v58  ;;  %v4191_v19 = vand.u32 4294901760, %v4190_v54  ;;  %v9914_v58 = vsub.f32 %v3829_v44, %v9887_v14  ;;  %v4226_v54 = vsub.f32 %v9951_v62, %v4225_v13 }
 0x5a5   : > { %4142 = vmatmul.f32.vlgmr.msra.gmra.mxu1 %v9719_v50  ;;  %v4220_v11 = vsub.f32 %v9938_v7, %v4219_v33  ;;  %v4237_v44 = vand.u32 4294901760, %v9985_v38 }
 0x5a6   : > { %v9890_v59 = vsub.f32 %v3839_v25, %v9880_v4  ;;  %4294 = vmatpush.msrb.mxu1 %v9854_v23  ;;  %4156 = vmatpush.msra.mxu2 %v9880_v4  ;;  %v4227_v21 = vand.u32 4294901760, %v4226_v54 }
 0x5a7   : > { %4192 = vmatpush.msra.mxu3 %v4191_v19  ;;  %v4221_v19 = vand.u32 4294901760, %v4220_v11 }
 0x5a8   : > { %4296 = vmatpush.msrb.mxu1 %v9880_v4  ;;  %4258 = vmatpush.msrb.mxu0 %v9890_v59  ;;  %v4195_v6 = vand.u32 4294901760, %v9890_v59 }
 0x5aa   : > { %v9916_v41 = vpop.permute.xlu1 %3770  ;;  %v4196_v16 = vsub.f32 %v9890_v59, %v4195_v6 }
 0x5ab   : > { %v3834_v61 = vsel %vm3802_vm15, %v9731_v35, %v9916_v41  ;;  %v4207_v35 = vand.u32 4294901760, %v9914_v58  ;;  %v9960_v48 = vpop.permute.xlu2 %3712 }
 0x5ac   : > { %v9932_v49 = vand.u32 4294901760, %v3834_v61  ;;  %v4197_v20 = vand.u32 4294901760, %v4196_v16  ;;  %v4238_v16 = vsub.f32 %v9985_v38, %v4237_v44 }
 0x5ad   : > { %v4208_v29 = vsub.f32 %v9914_v58, %v4207_v35 }
 0x5ae   : > { %v9943_v53 = vsub.f32 %v3834_v61, %v9932_v49  ;;  %4158 = vmatpush.msra.mxu2 %v9932_v49  ;;  %4198 = vmatpush.msra.mxu3 %v4197_v20  ;;  %v10023_v61 = vpop.permute.xlu0 %3772  ;;  %v4233_v20 = vand.u32 4294901760, %v4232_v2  ;;  %v4239_v45 = vand.u32 4294901760, %v4238_v16 }
 0x5af   : > { %4298 = vmatpush.msrb.mxu1 %v9932_v49  ;;  %v4209_v5 = vand.u32 4294901760, %v4208_v29  ;;  %v3835_v10 = vsel %vm3802_vm15, %v9916_v41, %v10023_v61 }
 0x5b0   : > { %4160 = vmatpush.msra.mxu2 %v9887_v14  ;;  %4261 = vmatpush.msrb.mxu0 %v9943_v53  ;;  %v4201_v12 = vand.u32 4294901760, %v9943_v53  ;;  %v10041_v41 = vand.u32 4294901760, %v3835_v10 }
 0x5b1   : > { %4300 = vmatpush.msrb.mxu1 %v9887_v14 }
 0x5b2   : > { %v9965_v1 = vpop.permute.xlu1 %3760  ;;  %4162 = vmatpush.msra.mxu2 %v9899_v18  ;;  %4264 = vmatpush.msrb.mxu0 %v9914_v58  ;;  %v4202_v3 = vsub.f32 %v9943_v53, %v4201_v12 }
 0x5b3   : > { %4302 = vmatpush.msrb.mxu1 %v9899_v18  ;;  %v10011_v22 = vpop.permute.xlu2 %3784 }
 0x5b4   : > { %4164 = vmatpush.msra.mxu2 %v9911_v57  ;;  %4267 = vmatpush.msrb.mxu0 %v9928_v31  ;;  %v4203_v9 = vand.u32 4294901760, %v4202_v3  ;;  %v3840_v39 = vsel %vm3802_vm15, %v9872_v32, %v10011_v22 }
 0x5b5   : > { %4304 = vmatpush.msrb.mxu1 %v9911_v57  ;;  %v10032_v32 = vand.u32 4294901760, %v3840_v39 }
 0x5b6   : > { %4166 = vmatpush.msra.mxu2 %v9930_v30  ;;  %4204 = vmatpush.msra.mxu3 %v4203_v9  ;;  %v10083_v31 = vpop.permute.xlu0 %3798 }
 0x5b7   : > { %4270 = vmatpush.msrb.mxu0 %v9938_v7  ;;  %4306 = vmatpush.msrb.mxu1 %v9930_v30 }
 0x5b8   : > { %4168 = vmatpush.msra.mxu2 %v9940_v40  ;;  %4210 = vmatpush.msra.mxu3 %v4209_v5 }
 0x5b9   : > { %4273 = vmatpush.msrb.mxu0 %v9951_v62  ;;  %4308 = vmatpush.msrb.mxu1 %v9940_v40  ;;  %v3805_v62 = vsel %vm3802_vm15, %v9568_v47, %v9584_v37 }
 0x5ba   : > { %v10003_v25 = vpop.permute.xlu1 %3736  ;;  %4170 = vmatpush.msra.mxu2 %v9948_v24  ;;  %4216 = vmatpush.msra.mxu3 %v4215_v8  ;;  %v10136_v11 = vand.u32 4294901760, %v3805_v62 }
 0x5bb   : > { %4276 = vmatpush.msrb.mxu0 %v9963_v63  ;;  %4310 = vmatpush.msrb.mxu1 %v9948_v24 }
 0x5bc   : > { %4176 = vmatmul.f32.vlgmr.msra.gmra.mxu2 %v9817_v28  ;;  %4222 = vmatpush.msra.mxu3 %v4221_v19 }
 0x5bd   : > { %4328 = vmatpush.msrb.mxu2 %v4189_v27  ;;  %4279 = vmatpush.msrb.mxu0 %v9985_v38  ;;  %v3830_v27 = vsel %vm3802_vm15, %v9784_v26, %v9965_v1  ;;  %v10055_v26 = vsub.f32 %v3840_v39, %v10032_v32  ;;  %v10167_v39 = vsub.f32 %v3805_v62, %v10136_v11 }
 0x5be   : > { %4228 = vmatpush.msra.mxu3 %v4227_v21  ;;  %4282 = vmatmul.f32.vlgmr.msrb.gmra.mxu0 %v9740_v55  ;;  %v10057_v53 = vand.u32 4294901760, %v3830_v27 }
 0x5bf   : > { %4332 = vmatpush.msrb.mxu2 %v4195_v6  ;;  %4314 = vmatmul.f32.vlgmr.msrb.gmra.mxu1 %v9773_v46  ;;  %v3825_v6 = vsel %vm3802_vm15, %v9823_v56, %v9897_v17  ;;  %v3820_v56 = vsel %vm3802_vm15, %v9841_v51, %v10003_v25  ;;  %v3815_v51 = vsel %vm3802_vm15, %v9836_v0, %v9977_v36 }
 0x5c0   : > { %4234 = vmatpush.msra.mxu3 %v4233_v20  ;;  %v10067_v58 = vand.u32 4294901760, %v3825_v6  ;;  %v10090_v29 = vand.u32 4294901760, %v3820_v56  ;;  %v10101_v7 = vand.u32 4294901760, %v3815_v51 }
 0x5c1   : > { %4336 = vmatpush.msrb.mxu2 %v4201_v12 }
 0x5c2   : > { %v10043_v59 = vpop.permute.xlu1 %3796  ;;  %4240 = vmatpush.msra.mxu3 %v4239_v45  ;;  %v10099_v0 = vsub.f32 %v3825_v6, %v10067_v58  ;;  %v10117_v52 = vsub.f32 %v3820_v56, %v10090_v29  ;;  %v10128_v47 = vsub.f32 %v3815_v51, %v10101_v7 }
 0x5c3   : > { %4340 = vmatpush.msrb.mxu2 %v4207_v35  ;;  %v3845_v3 = vsel %vm3802_vm15, %v9849_v43, %v10043_v59  ;;  %4242 = vmatmul.f32.vlgmr.msra.gmra.mxu3 %v9719_v50  ;;  %v10070_v43 = vsub.f32 %v3835_v10, %v10041_v41  ;;  %v3846_v20 = vsel %vm3802_vm15, %v10043_v59, %v10083_v31 }
 0x5c4   : > { %v10059_v12 = vand.u32 4294901760, %v3845_v3  ;;  %4374 = vmatpush.msrb.mxu3 %v9854_v23  ;;  %v3810_v23 = vsel %vm3802_vm15, %v9857_v34, %v9960_v48  ;;  %v4445_v34 = vand.u32 4294901760, %v10055_v26  ;;  %v4463_v63 = vand.u32 4294901760, %v10099_v0 }
 0x5c5   : > { %4344 = vmatpush.msrb.mxu2 %v4213_v60  ;;  %v10088_v60 = vsub.f32 %v3830_v27, %v10057_v53  ;;  %v10112_v9 = vand.u32 4294901760, %v3810_v23  ;;  %v4469_v54 = vand.u32 4294901760, %v10117_v52  ;;  %v4475_v2 = vand.u32 4294901760, %v10128_v47 }
 0x5c6   : > { %v10073_v35 = vsub.f32 %v3845_v3, %v10059_v12  ;;  %4376 = vmatpush.msrb.mxu3 %v9880_v4  ;;  %4404 = vmatpush.msra.mxu0 %v10059_v12  ;;  %v4487_v3 = vand.u32 4294901760, %v10167_v39 }
 0x5c7   : > { %4348 = vmatpush.msrb.mxu2 %v4219_v33  ;;  %v4457_v5 = vand.u32 4294901760, %v10088_v60  ;;  %v10143_v38 = vsub.f32 %v3810_v23, %v10112_v9  ;;  %v4470_v16 = vsub.f32 %v10117_v52, %v4469_v54  ;;  %v4476_v10 = vsub.f32 %v10128_v47, %v4475_v2 }
 0x5c8   : > { %v4439_v4 = vand.u32 4294901760, %v10073_v35  ;;  %4378 = vmatpush.msrb.mxu3 %v9932_v49  ;;  %4406 = vmatpush.msra.mxu0 %v10032_v32  ;;  %v4451_v49 = vand.u32 4294901760, %v10070_v43  ;;  %v10192_v23 = vand.u32 4294901760, %v3846_v20 }
 0x5c9   : > { %4352 = vmatpush.msrb.mxu2 %v4225_v13  ;;  %v4446_v13 = vsub.f32 %v10055_v26, %v4445_v34  ;;  %v4458_v8 = vsub.f32 %v10088_v60, %v4457_v5  ;;  %v4471_v59 = vand.u32 4294901760, %v4470_v16  ;;  %v4477_v51 = vand.u32 4294901760, %v4476_v10 }
 0x5ca   : > { %v4440_v33 = vsub.f32 %v10073_v35, %v4439_v4  ;;  %4380 = vmatpush.msrb.mxu3 %v9887_v14  ;;  %4408 = vmatpush.msra.mxu0 %v10041_v41  ;;  %v10178_v45 = vpop.permute.xlu1 %3774 }
 0x5cb   : > { %4356 = vmatpush.msrb.mxu2 %v4231_v42  ;;  %v10138_v42 = vpop.permute.xlu2 %3786  ;;  %v4459_v21 = vand.u32 4294901760, %v4458_v8 }
 0x5cc   : > { %4382 = vmatpush.msrb.mxu3 %v9899_v18  ;;  %4410 = vmatpush.msra.mxu0 %v10057_v53  ;;  %v4441_v14 = vand.u32 4294901760, %v4440_v33  ;;  %v4452_v18 = vsub.f32 %v10070_v43, %v4451_v49  ;;  %v3841_v27 = vsel %vm3802_vm15, %v10011_v22, %v10138_v42  ;;  %v3836_v22 = vsel %vm3802_vm15, %v10023_v61, %v10178_v45 }
 0x5cd   : > { %4360 = vmatpush.msrb.mxu2 %v4237_v44  ;;  %v10150_v44 = vpop.permute.xlu0 %3762  ;;  %v10200_v33 = vand.u32 4294901760, %v3841_v27 }
 0x5ce   : > { %4362 = vmatmul.f32.vlgmr.msrb.gmra.mxu2 %v9719_v50  ;;  %4384 = vmatpush.msrb.mxu3 %v9911_v57  ;;  %v4447_v57 = vand.u32 4294901760, %v4446_v13  ;;  %v4453_v19 = vand.u32 4294901760, %v4452_v18  ;;  %v4488_v13 = vsub.f32 %v10167_v39, %v4487_v3  ;;  %v10215_v18 = vsub.f32 %v3846_v20, %v10192_v23 }
 0x5cf   : > { %4505 = vmatpush.msra.mxu2 %v10073_v35  ;;  %4412 = vmatpush.msra.mxu0 %v10067_v58 }
 0x5d0   : > { %4442 = vmatpush.msra.mxu1 %v4441_v14  ;;  %4386 = vmatpush.msrb.mxu3 %v9930_v30  ;;  %v4464_v30 = vsub.f32 %v10099_v0, %v4463_v63  ;;  %v3831_v14 = vsel %vm3802_vm15, %v9965_v1, %v10150_v44  ;;  %v10224_v1 = vsub.f32 %v3841_v27, %v10200_v33  ;;  %v4689_v8 = vand.u32 4294901760, %v10215_v18 }
 0x5d1   : > { %4508 = vmatpush.msra.mxu2 %v10055_v26  ;;  %4414 = vmatpush.msra.mxu0 %v10090_v29  ;;  %v4489_v26 = vand.u32 4294901760, %v4488_v13 }
 0x5d2   : > { %4448 = vmatpush.msra.mxu1 %v4447_v57  ;;  %4388 = vmatpush.msrb.mxu3 %v9940_v40  ;;  %v4481_v40 = vand.u32 4294901760, %v10143_v38  ;;  %v10217_v57 = vand.u32 4294901760, %v3836_v22  ;;  %v4690_v16 = vsub.f32 %v10215_v18, %v4689_v8 }
 0x5d3   : > { %4511 = vmatpush.msra.mxu2 %v10070_v43  ;;  %4416 = vmatpush.msra.mxu0 %v10101_v7  ;;  %v10190_v56 = vpop.permute.xlu2 %3750 }
 0x5d4   : > { %4454 = vmatpush.msra.mxu1 %v4453_v19  ;;  %4390 = vmatpush.msrb.mxu3 %v9948_v24  ;;  %v4465_v24 = vand.u32 4294901760, %v4464_v30  ;;  %v4482_v6 = vsub.f32 %v10143_v38, %v4481_v40  ;;  %v3826_v35 = vsel %vm3802_vm15, %v9897_v17, %v10190_v56  ;;  %v10241_v17 = vsub.f32 %v3836_v22, %v10217_v57  ;;  %v10243_v19 = vpop.permute.xlu1 %3726 }
 0x5d5   : > { %4514 = vmatpush.msra.mxu2 %v10088_v60  ;;  %4392 = vmatmul.f32.vlgmr.msrb.gmra.mxu3 %v9719_v50  ;;  %v10202_v62 = vpop.permute.xlu0 %3738  ;;  %v10248_v43 = vand.u32 4294901760, %v3826_v35  ;;  %v4695_v60 = vand.u32 4294901760, %v10224_v1  ;;  %v3816_v30 = vsel %vm3802_vm15, %v9977_v36, %v10243_v19 }
 0x5d6   : > { %4418 = vmatpush.msra.mxu0 %v10112_v9  ;;  %4460 = vmatpush.msra.mxu1 %v4459_v21  ;;  %v4483_v61 = vand.u32 4294901760, %v4482_v6 }
 0x5d7   : > { %4517 = vmatpush.msra.mxu2 %v10099_v0  ;;  %4544 = vmatpush.msra.mxu3 %v10059_v12  ;;  %v4701_v0 = vand.u32 4294901760, %v10241_v17 }
 0x5d8   : > { %4420 = vmatpush.msra.mxu0 %v10136_v11  ;;  %4466 = vmatpush.msra.mxu1 %v4465_v24 }
 0x5d9   : > { %4520 = vmatpush.msra.mxu2 %v10117_v52  ;;  %4546 = vmatpush.msra.mxu3 %v10032_v32  ;;  %v4696_v52 = vsub.f32 %v10224_v1, %v4695_v60 }
 0x5da   : > { %4426 = vmatmul.f32.vlgmr.msra.gmra.mxu0 %v9817_v28  ;;  %4472 = vmatpush.msra.mxu1 %v4471_v59 }
 0x5db   : > { %4578 = vmatpush.msrb.mxu0 %v4439_v4  ;;  %4523 = vmatpush.msra.mxu2 %v10128_v47  ;;  %v10229_v4 = vand.u32 4294901760, %v3831_v14  ;;  %v4691_v47 = vand.u32 4294901760, %v4690_v16 }
 0x5dc   : > { %4548 = vmatpush.msra.mxu3 %v10041_v41  ;;  %4478 = vmatpush.msra.mxu1 %v4477_v51  ;;  %v3801_v27 = vpop.permute.xlu1 %3800 }
 0x5dd   : > { %4582 = vmatpush.msrb.mxu0 %v4445_v34  ;;  %4526 = vmatpush.msra.mxu2 %v10143_v38  ;;  %v3821_v34 = vsel %vm3802_vm15, %v10003_v25, %v10202_v62  ;;  %v10254_v25 = vsub.f32 %v3831_v14, %v10229_v4  ;;  %v10267_v21 = vpop.permute.xlu0 %3702  ;;  %v4697_v38 = vand.u32 4294901760, %v4696_v52 }
 0x5de   : > { %4550 = vmatpush.msra.mxu3 %v10057_v53  ;;  %4484 = vmatpush.msra.mxu1 %v4483_v61 }
 0x5df   : > { %4586 = vmatpush.msrb.mxu0 %v4451_v49  ;;  %4529 = vmatpush.msra.mxu2 %v10167_v39  ;;  %v10251_v49 = vpop.permute.xlu2 %3714 }
 0x5e0   : > { %4552 = vmatpush.msra.mxu3 %v10067_v58  ;;  %4532 = vmatmul.f32.vlgmr.msra.gmra.mxu2 %v9740_v55  ;;  %v3811_v36 = vsel %vm3802_vm15, %v9960_v48, %v10251_v49  ;;  %v3806_v48 = vsel %vm3802_vm15, %v9584_v37, %v10267_v21 }
 0x5e1   : > { %4590 = vmatpush.msrb.mxu0 %v4457_v5  ;;  %4654 = vmatpush.msrb.mxu2 %v10192_v23  ;;  %v10260_v5 = vand.u32 4294901760, %v3821_v34 }
 0x5e2   : > { %4490 = vmatpush.msra.mxu1 %v4489_v26  ;;  %4554 = vmatpush.msra.mxu3 %v10090_v29  ;;  %v3847_v26 = vsel %vm3802_vm15, %v10083_v31, %v3801_v27 }
 0x5e3   : > { %4492 = vmatmul.f32.vlgmr.msra.gmra.mxu1 %v9719_v50  ;;  %4594 = vmatpush.msrb.mxu0 %v4463_v63  ;;  %v10277_v63 = vsub.f32 %v3826_v35, %v10248_v43  ;;  %v10294_v20 = vsub.f32 %v3821_v34, %v10260_v5  ;;  %v10375_v16 = vand.u32 4294901760, %v3847_v26 }
 0x5e4   : > { %4624 = vmatpush.msrb.mxu1 %v10059_v12  ;;  %4656 = vmatpush.msrb.mxu2 %v10200_v33  ;;  %v10284_v12 = vand.u32 4294901760, %v3816_v30  ;;  %v3765_v34 = vpop.permute.xlu1 %3764 }
 0x5e5   : > { %4556 = vmatpush.msra.mxu3 %v10101_v7  ;;  %4598 = vmatpush.msrb.mxu0 %v4469_v54  ;;  %v4707_v54 = vand.u32 4294901760, %v10254_v25  ;;  %v4713_v37 = vand.u32 4294901760, %v10277_v63  ;;  %v3777_v14 = vpop.permute.xlu0 %3776  ;;  %v3832_v52 = vsel %vm3802_vm15, %v10150_v44, %v3765_v34 }
 0x5e6   : > { %4626 = vmatpush.msrb.mxu1 %v10032_v32  ;;  %4658 = vmatpush.msrb.mxu2 %v10217_v57  ;;  %v10301_v32 = vand.u32 4294901760, %v3811_v36  ;;  %v10315_v24 = vsub.f32 %v3816_v30, %v10284_v12 }
 0x5e7   : > { %4558 = vmatpush.msra.mxu3 %v10112_v9  ;;  %4602 = vmatpush.msrb.mxu0 %v4475_v2  ;;  %v4702_v2 = vsub.f32 %v10241_v17, %v4701_v0  ;;  %v4714_v39 = vsub.f32 %v10277_v63, %v4713_v37  ;;  %v3789_v6 = vpop.permute.xlu2 %3788 }
 0x5e8   : > { %4628 = vmatpush.msrb.mxu1 %v10041_v41  ;;  %4660 = vmatpush.msrb.mxu2 %v10229_v4  ;;  %v10312_v41 = vand.u32 4294901760, %v3806_v48  ;;  %v10326_v10 = vsub.f32 %v3811_v36, %v10301_v32  ;;  %v4725_v22 = vand.u32 4294901760, %v10315_v24  ;;  %v3837_v36 = vsel %vm3802_vm15, %v10178_v45, %v3777_v14 }
 0x5e9   : > { %4560 = vmatpush.msra.mxu3 %v10136_v11  ;;  %4606 = vmatpush.msrb.mxu0 %v4481_v40  ;;  %v4708_v40 = vsub.f32 %v10254_v25, %v4707_v54  ;;  %v4703_v59 = vand.u32 4294901760, %v4702_v2  ;;  %v4715_v61 = vand.u32 4294901760, %v4714_v39  ;;  %v10394_v45 = vsub.f32 %v3847_v26, %v10375_v16 }
 0x5ea   : > { %4564 = vmatmul.f32.vlgmr.msra.gmra.mxu3 %v9773_v46  ;;  %4630 = vmatpush.msrb.mxu1 %v10057_v53  ;;  %v4719_v53 = vand.u32 4294901760, %v10294_v20  ;;  %v4731_v51 = vand.u32 4294901760, %v10326_v10 }
 0x5eb   : > { %4662 = vmatpush.msrb.mxu2 %v10248_v43  ;;  %4692 = vmatpush.msrb.mxu3 %v4691_v47 }
 0x5ec   : > { %4610 = vmatpush.msrb.mxu0 %v4487_v3  ;;  %4632 = vmatpush.msrb.mxu1 %v10067_v58  ;;  %v10335_v58 = vsub.f32 %v3806_v48, %v10312_v41  ;;  %v4709_v3 = vand.u32 4294901760, %v4708_v40 }
 0x5ed   : > { %4664 = vmatpush.msrb.mxu2 %v10260_v5  ;;  %4698 = vmatpush.msrb.mxu3 %v4697_v38 }
 0x5ee   : > { %4755 = vmatpush.msra.mxu0 %v10215_v18  ;;  %4634 = vmatpush.msrb.mxu1 %v10090_v29  ;;  %v4720_v29 = vsub.f32 %v10294_v20, %v4719_v53  ;;  %v4737_v13 = vand.u32 4294901760, %v10335_v58 }
 0x5ef   : > { %4666 = vmatpush.msrb.mxu2 %v10284_v12  ;;  %4704 = vmatpush.msrb.mxu3 %v4703_v59 }
 0x5f0   : > { %4758 = vmatpush.msra.mxu0 %v10224_v1  ;;  %4636 = vmatpush.msrb.mxu1 %v10101_v7  ;;  %v4726_v7 = vsub.f32 %v10315_v24, %v4725_v22  ;;  %v4721_v35 = vand.u32 4294901760, %v4720_v29  ;;  %v4738_v18 = vsub.f32 %v10335_v58, %v4737_v13 }
 0x5f1   : > { %4668 = vmatpush.msrb.mxu2 %v10301_v32  ;;  %4710 = vmatpush.msrb.mxu3 %v4709_v3 }
 0x5f2   : > { %4761 = vmatpush.msra.mxu0 %v10241_v17  ;;  %4638 = vmatpush.msrb.mxu1 %v10112_v9  ;;  %v4732_v9 = vsub.f32 %v10326_v10, %v4731_v51  ;;  %v4727_v30 = vand.u32 4294901760, %v4726_v7  ;;  %v4739_v1 = vand.u32 4294901760, %v4738_v18  ;;  %v10391_v17 = vand.u32 4294901760, %v3837_v36 }
 0x5f3   : > { %4612 = vmatmul.f32.vlgmr.msrb.gmra.mxu0 %v9719_v50  ;;  %4670 = vmatpush.msrb.mxu2 %v10312_v41 }
 0x5f4   : > { %4716 = vmatpush.msrb.mxu3 %v4715_v61  ;;  %4676 = vmatmul.f32.vlgmr.msrb.gmra.mxu2 %v9817_v28  ;;  %v4733_v31 = vand.u32 4294901760, %v4732_v9 }
 0x5f5   : > { %4764 = vmatpush.msra.mxu0 %v10254_v25  ;;  %4828 = vmatpush.msra.mxu2 %v4689_v8  ;;  %v3753_v8 = vpop.permute.xlu2 %3752 }
 0x5f6   : > { %4640 = vmatpush.msrb.mxu1 %v10136_v11  ;;  %4722 = vmatpush.msrb.mxu3 %v4721_v35  ;;  %v3842_v11 = vsel %vm3802_vm15, %v10138_v42, %v3789_v6  ;;  %v3827_v44 = vsel %vm3802_vm15, %v10190_v56, %v3753_v8  ;;  %v4939_v56 = vand.u32 4294901760, %v10394_v45 }
 0x5f7   : > { %4642 = vmatmul.f32.vlgmr.msrb.gmra.mxu1 %v9719_v50  ;;  %4767 = vmatpush.msra.mxu0 %v10277_v63  ;;  %v10383_v42 = vand.u32 4294901760, %v3842_v11  ;;  %v10421_v48 = vand.u32 4294901760, %v3827_v44 }
 0x5f8   : > { %4794 = vmatpush.msra.mxu1 %v10192_v23  ;;  %4832 = vmatpush.msra.mxu2 %v4695_v60  ;;  %v3741_v60 = vpop.permute.xlu0 %3740 }
 0x5f9   : > { %4728 = vmatpush.msrb.mxu3 %v4727_v30  ;;  %4770 = vmatpush.msra.mxu0 %v10294_v20  ;;  %v10402_v25 = vsub.f32 %v3842_v11, %v10383_v42  ;;  %v3822_v63 = vsel %vm3802_vm15, %v10202_v62, %v3741_v60  ;;  %v10448_v38 = vsub.f32 %v3827_v44, %v10421_v48 }
 0x5fa   : > { %4796 = vmatpush.msra.mxu1 %v10200_v33  ;;  %4836 = vmatpush.msra.mxu2 %v4701_v0  ;;  %v10406_v0 = vand.u32 4294901760, %v3832_v52  ;;  %v10434_v2 = vand.u32 4294901760, %v3822_v63 }
 0x5fb   : > { %4734 = vmatpush.msrb.mxu3 %v4733_v31  ;;  %4773 = vmatpush.msra.mxu0 %v10315_v24  ;;  %v4945_v20 = vand.u32 4294901760, %v10402_v25 }
 0x5fc   : > { %4798 = vmatpush.msra.mxu1 %v10217_v57  ;;  %4840 = vmatpush.msra.mxu2 %v4707_v54  ;;  %v3729_v54 = vpop.permute.xlu1 %3728 }
 0x5fd   : > { %4740 = vmatpush.msrb.mxu3 %v4739_v1  ;;  %4776 = vmatpush.msra.mxu0 %v10326_v10  ;;  %v3717_v47 = vpop.permute.xlu2 %3716  ;;  %v3817_v62 = vsel %vm3802_vm15, %v10243_v19, %v3729_v54  ;;  %v4940_v19 = vsub.f32 %v10394_v45, %v4939_v56  ;;  %v10464_v10 = vsub.f32 %v3822_v63, %v10434_v2 }
 0x5fe   : > { %4742 = vmatmul.f32.vlgmr.msrb.gmra.mxu3 %v9719_v50  ;;  %4800 = vmatpush.msra.mxu1 %v10229_v4  ;;  %v10450_v40 = vand.u32 4294901760, %v3817_v62 }
 0x5ff   : > { %4844 = vmatpush.msra.mxu2 %v4713_v37  ;;  %4874 = vmatpush.msra.mxu3 %v10192_v23  ;;  %v10414_v23 = vsub.f32 %v3837_v36, %v10391_v17 }
 0x600   : > { %4779 = vmatpush.msra.mxu0 %v10335_v58  ;;  %4802 = vmatpush.msra.mxu1 %v10248_v43  ;;  %v3705_v37 = vpop.permute.xlu0 %3704  ;;  %v10476_v39 = vsub.f32 %v3817_v62, %v10450_v40 }
 0x601   : > { %4848 = vmatpush.msra.mxu2 %v4719_v53  ;;  %4876 = vmatpush.msra.mxu3 %v10200_v33  ;;  %v10427_v33 = vsub.f32 %v3832_v52, %v10406_v0  ;;  %v4951_v24 = vand.u32 4294901760, %v10414_v23  ;;  %v3807_v27 = vsel %vm3802_vm15, %v10267_v21, %v3705_v37  ;;  %v4963_v21 = vand.u32 4294901760, %v10448_v38 }
 0x602   : > { %4904 = vmatpush.msrb.mxu0 %v10375_v16  ;;  %4804 = vmatpush.msra.mxu1 %v10260_v5  ;;  %v10481_v6 = vand.u32 4294901760, %v3807_v27  ;;  %v4975_v14 = vand.u32 4294901760, %v10476_v39 }
 0x603   : > { %4852 = vmatpush.msra.mxu2 %v4725_v22  ;;  %4878 = vmatpush.msra.mxu3 %v10217_v57  ;;  %v3812_v57 = vsel %vm3802_vm15, %v10251_v49, %v3717_v47  ;;  %v4957_v49 = vand.u32 4294901760, %v10427_v33  ;;  %v4952_v59 = vsub.f32 %v10414_v23, %v4951_v24  ;;  %v4969_v22 = vand.u32 4294901760, %v10464_v10 }
 0x604   : > { %4906 = vmatpush.msrb.mxu0 %v10383_v42  ;;  %4806 = vmatpush.msra.mxu1 %v10284_v12  ;;  %v10461_v53 = vand.u32 4294901760, %v3812_v57  ;;  %v10516_v26 = vpop.permute.xlu1 %3691 }
 0x605   : > { %4856 = vmatpush.msra.mxu2 %v4731_v51  ;;  %4880 = vmatpush.msra.mxu3 %v10229_v4  ;;  %v4946_v4 = vsub.f32 %v10402_v25, %v4945_v20  ;;  %v4958_v58 = vsub.f32 %v10427_v33, %v4957_v49  ;;  %v4953_v29 = vand.u32 4294901760, %v4952_v59  ;;  %v4964_v51 = vsub.f32 %v10448_v38, %v4963_v21 }
 0x606   : > { %4908 = vmatpush.msrb.mxu0 %v10391_v17  ;;  %4808 = vmatpush.msra.mxu1 %v10301_v32  ;;  %v10488_v3 = vsub.f32 %v3812_v57, %v10461_v53  ;;  %v4970_v7 = vsub.f32 %v10464_v10, %v4969_v22 }
 0x607   : > { %4782 = vmatmul.f32.vlgmr.msra.gmra.mxu0 %v9740_v55  ;;  %4860 = vmatpush.msra.mxu2 %v4737_v13  ;;  %v4959_v61 = vand.u32 4294901760, %v4958_v58  ;;  %v4965_v9 = vand.u32 4294901760, %v4964_v51 }
 0x608   : > { %4882 = vmatpush.msra.mxu3 %v10248_v43  ;;  %4862 = vmatmul.f32.vlgmr.msra.gmra.mxu2 %v9719_v50  ;;  %v4941_v43 = vand.u32 4294901760, %v4940_v19  ;;  %v4981_v13 = vand.u32 4294901760, %v10488_v3  ;;  %v4971_v11 = vand.u32 4294901760, %v4970_v7 }
 0x609   : > { %4910 = vmatpush.msrb.mxu0 %v10406_v0  ;;  %5005 = vmatpush.msrb.mxu2 %v10394_v45  ;;  %v3927_v35 = vpop.f32.mrf.mxu0 }
 0x60a   : > { %4810 = vmatpush.msra.mxu1 %v10312_v41  ;;  %4884 = vmatpush.msra.mxu3 %v10260_v5  ;;  %v4947_v5 = vand.u32 4294901760, %v4946_v4  ;;  %v3928_v18 = vadd.f32 %v3927_v35, %v10516_v26  ;;  %v4982_v8 = vsub.f32 %v10488_v3, %v4981_v13 }
 0x60b   : > { %4814 = vmatmul.f32.vlgmr.msra.gmra.mxu1 %v9773_v46  ;;  %4912 = vmatpush.msrb.mxu0 %v10421_v48 }
 0x60c   : > { %4942 = vmatpush.msrb.mxu1 %v4941_v43  ;;  %5008 = vmatpush.msrb.mxu2 %v10402_v25  ;;  %v4983_v52 = vand.u32 4294901760, %v4982_v8  ;;  %v6988_v8 = vld [vmem:[%s11726_s1 + $0x18] sm:$0xff] }
 0x60d   : > { %4886 = vmatpush.msra.mxu3 %v10284_v12  ;;  %4914 = vmatpush.msrb.mxu0 %v10434_v2  ;;  %v10501_v12 = vsub.f32 %v3807_v27, %v10481_v6 }
 0x60e   : > { %4948 = vmatpush.msrb.mxu1 %v4947_v5  ;;  %5011 = vmatpush.msrb.mxu2 %v10414_v23 }
 0x60f   : > { %4888 = vmatpush.msra.mxu3 %v10301_v32  ;;  %4916 = vmatpush.msrb.mxu0 %v10450_v40  ;;  %v5171_v32 = vld [vmem:[#allocation2 + $0x30] sm:$0xff]  ;;  %v4987_v30 = vand.u32 4294901760, %v10501_v12 }
 0x610   : > { %4954 = vmatpush.msrb.mxu1 %v4953_v29  ;;  %5014 = vmatpush.msrb.mxu2 %v10427_v33  ;;  %v3993_v34 = vpop.f32.mrf.mxu1 }
 0x611   : > { %4890 = vmatpush.msra.mxu3 %v10312_v41  ;;  %4918 = vmatpush.msrb.mxu0 %v10461_v53  ;;  %v4976_v41 = vsub.f32 %v10476_v39, %v4975_v14  ;;  %v3994_v36 = vadd.f32 %v3993_v34, %v3928_v18  ;;  %v4988_v1 = vsub.f32 %v10501_v12, %v4987_v30  ;;  %v4033_v60 = vpop.f32.mrf.mxu2 }
 0x612   : > { %4892 = vmatmul.f32.vlgmr.msra.gmra.mxu3 %v9719_v50  ;;  %4960 = vmatpush.msrb.mxu1 %v4959_v61  ;;  %v4065_v44 = vpop.f32.mrf.mxu3 }
 0x613   : > { %5017 = vmatpush.msrb.mxu2 %v10448_v38  ;;  %5044 = vmatpush.msrb.mxu3 %v10375_v16  ;;  %v4977_v31 = vand.u32 4294901760, %v4976_v41  ;;  %v4989_v45 = vand.u32 4294901760, %v4988_v1  ;;  %v6986_v38 = vld [vmem:[%s11726_s1 + $0x8] sm:$0xff] }
 0x614   : > { %5223 = vrot.lane.b32.xlu1 %v5171_v32, %s7030_s11  ;;  %4920 = vmatpush.msrb.mxu0 %v10481_v6 }
 0x615   : > { %4966 = vmatpush.msrb.mxu1 %v4965_v9  ;;  %5020 = vmatpush.msrb.mxu2 %v10464_v10 }
 0x616   : > { %5046 = vmatpush.msrb.mxu3 %v10383_v42  ;;  %4926 = vmatmul.f32.vlgmr.msrb.gmra.mxu0 %v9817_v28  ;;  %v4034_v28 = vadd.f32 %v4033_v60, %v3994_v36 }
 0x617   : > { %5078 = vmatpush.msra.mxu0 %v4939_v56  ;;  %4972 = vmatpush.msrb.mxu1 %v4971_v11 }
 0x618   : > { %5023 = vmatpush.msrb.mxu2 %v10476_v39  ;;  %5048 = vmatpush.msrb.mxu3 %v10391_v17  ;;  %v4066_v54 = vadd.f32 %v4065_v44, %v4034_v28 }
 0x619   : > { %5082 = vmatpush.msra.mxu0 %v4945_v20  ;;  %4978 = vmatpush.msrb.mxu1 %v4977_v31 }
 0x61a   : > { %5026 = vmatpush.msrb.mxu2 %v10488_v3  ;;  %5050 = vmatpush.msrb.mxu3 %v10406_v0 }
 0x61b   : > { %5086 = vmatpush.msra.mxu0 %v4951_v24  ;;  %4984 = vmatpush.msrb.mxu1 %v4983_v52  ;;  %v4113_v25 = vpop.f32.mrf.mxu0 }
 0x61c   : > { %5029 = vmatpush.msrb.mxu2 %v10501_v12  ;;  %5052 = vmatpush.msrb.mxu3 %v10421_v48  ;;  %v4114_v23 = vadd.f32 %v4113_v25, %v4066_v54 }
 0x61d   : > { %5206 = vrot.lane.b32.xlu1 %v5171_v32, %s7037_s26  ;;  %5032 = vmatmul.f32.vlgmr.msrb.gmra.mxu2 %v9740_v55 }
 0x61e   : > { %5090 = vmatpush.msra.mxu0 %v4957_v49  ;;  %4990 = vmatpush.msrb.mxu1 %v4989_v45 }
 0x61f   : > { %5054 = vmatpush.msrb.mxu3 %v10434_v2  ;;  %4992 = vmatmul.f32.vlgmr.msrb.gmra.mxu1 %v9719_v50 }
 0x620   : > { %5094 = vmatpush.msra.mxu0 %v4963_v21  ;;  %5124 = vmatpush.msra.mxu1 %v10375_v16 }
 0x621   : > { %5056 = vmatpush.msrb.mxu3 %v10450_v40  ;;  %5328 = vrot.lane.b32.xlu0 %v5171_v32, %s7040_s29 }
 0x622   : > { %5098 = vmatpush.msra.mxu0 %v4969_v22  ;;  %5126 = vmatpush.msra.mxu1 %v10383_v42  ;;  %v4143_v55 = vpop.f32.mrf.mxu1  ;;  %v6985_v42 = vld [vmem:[%s11726_s1] sm:$0xff]  ;;  %v6987_v22 = vld [vmem:[%s11726_s1 + $0x10] sm:$0xff] }
 0x623   : > { %5058 = vmatpush.msrb.mxu3 %v10461_v53  ;;  %v4144_v63 = vadd.f32 %v4143_v55, %v4114_v23 }
 0x624   : > { %5102 = vmatpush.msra.mxu0 %v4975_v14  ;;  %5128 = vmatpush.msra.mxu1 %v10391_v17  ;;  %v10570_v17 = vpop.permute.xlu2 %5158 }
 0x625   : > { %5060 = vmatpush.msrb.mxu3 %v10481_v6  ;;  %5189 = vrot.lane.b32.xlu1 %v5171_v32, %s7026_s7  ;;  %v5146_v16 = vmax.f32 %v4144_v63, 0.0 }
 0x626   : > { %5064 = vmatmul.f32.vlgmr.msrb.gmra.mxu3 %v9773_v46  ;;  %5106 = vmatpush.msra.mxu0 %v4981_v13 }
 0x627   : > { %5130 = vmatpush.msra.mxu1 %v10406_v0  ;;  %v5151_v56 = vmul.f32 %v6985_v42, %v5146_v16 }
 0x628   : > { %5110 = vmatpush.msra.mxu0 %v4987_v30 }
 0x629   : > { %5132 = vmatpush.msra.mxu1 %v10421_v48  ;;  %5112 = vmatmul.f32.vlgmr.msra.gmra.mxu0 %v9719_v50 }
 0x62a   : > { %5311 = vrot.lane.b32.xlu0 %v5151_v56, %s7035_s13  ;;  %5240 = vrot.lane.b32.xlu2 %v5151_v56, %s7031_s12 }
 0x62b   : > { %5134 = vmatpush.msra.mxu1 %v10434_v2 }
 0x62c   : > { %v10581_v46 = vpop.permute.xlu2 %5321 }
 0x62d   : > { %5136 = vmatpush.msra.mxu1 %v10450_v40  ;;  %5270 = vrot.lane.b32.xlu1 %v9904_v15, %s7038_s27 }
 0x62f   : > { %5138 = vmatpush.msra.mxu1 %v10461_v53 }
 0x631   : > { %5140 = vmatpush.msra.mxu1 %v10481_v6 }
 0x632   : > { %5142 = vmatmul.f32.vlgmr.msra.gmra.mxu1 %v9719_v50  ;;  %5294 = vrot.lane.b32.xlu0 %v5151_v56, %s7039_s28 }
 0x633   : > { %5225 = vrot.lane.b32.xlu2 %v5151_v56, %s7030_s11 }
 0x634   : > { %v10632_v1 = vpop.permute.xlu2 %5304 }
 0x635   : > { %5434 = vrot.lane.b32.xlu1 %v10581_v46, %s7040_s29 }
 0x63a   : > { %5277 = vrot.lane.b32.xlu0 %v5151_v56, %s7036_s14 }
 0x63b   : > { %5208 = vrot.lane.b32.xlu2 %v5151_v56, %s7037_s26  ;;  %v4283_v47 = vpop.f32.mrf.mxu0 }
 0x63c   : > { %v4315_v62 = vpop.f32.mrf.mxu1  ;;  %v10641_v23 = vpop.permute.xlu2 %5287 }
 0x63d   : > { %5330 = vrot.lane.b32.xlu1 %v5151_v56, %s7040_s29 }
 0x63f   : > { %v4177_v50 = vpop.f32.mrf.mxu2 }
 0x640   : > { %v4178_v0 = vadd.f32 %v4177_v50, %v10516_v26 }
 0x642   : > { %5260 = vrot.lane.b32.xlu0 %v5151_v56, %s7038_s27 }
 0x643   : > { %5191 = vrot.lane.b32.xlu2 %v5151_v56, %s7026_s7 }
 0x646   : > { %v4243_v15 = vpop.f32.mrf.mxu3 }
 0x647   : > { %v4244_v48 = vadd.f32 %v4243_v15, %v4178_v0 }
 0x649   : > { %v4284_v33 = vadd.f32 %v4283_v47, %v4244_v48 }
 0x64b   : > { %v4316_v2 = vadd.f32 %v4315_v62, %v4284_v33  ;;  %v6989_v33 = vld [vmem:[%s11726_s1 + $0x20] sm:$0xff] }
 0x651   : > { %v4363_v20 = vpop.f32.mrf.mxu2 }
 0x652   : > { %v4364_v57 = vadd.f32 %v4363_v20, %v4316_v2 }
 0x657   : > { %v4427_v4 = vpop.f32.mrf.mxu0 }
 0x658   : > { %v4393_v37 = vpop.f32.mrf.mxu3  ;;  %v4428_v53 = vadd.f32 %v4427_v4, %v10516_v26 }
 0x659   : > { %v4394_v19 = vadd.f32 %v4393_v37, %v4364_v57 }
 0x65b   : > { %v5147_v24 = vmax.f32 %v4394_v19, 0.0 }
 0x65d   : > { %v5152_v40 = vmul.f32 %v6986_v38, %v5147_v24 }
 0x65f   : > { %5242 = vrot.lane.b32.xlu0 %v5152_v40, %s7031_s12  ;;  %5313 = vrot.lane.b32.xlu1 %v5152_v40, %s7035_s13 }
 0x660   : > { %v4493_v49 = vpop.f32.mrf.mxu1 }
 0x661   : > { %v4494_v27 = vadd.f32 %v4493_v49, %v4428_v53 }
 0x663   : > { %v4533_v10 = vpop.f32.mrf.mxu2 }
 0x664   : > { %v4534_v43 = vadd.f32 %v4533_v10, %v4494_v27 }
 0x667   : > { %5227 = vrot.lane.b32.xlu0 %v5152_v40, %s7030_s11  ;;  %5296 = vrot.lane.b32.xlu1 %v5152_v40, %s7039_s28 }
 0x66d   : > { %v4565_v59 = vpop.f32.mrf.mxu3 }
 0x66e   : > { %v4566_v39 = vadd.f32 %v4565_v59, %v4534_v43 }
 0x66f   : > { %5210 = vrot.lane.b32.xlu0 %v5152_v40, %s7037_s26  ;;  %5279 = vrot.lane.b32.xlu1 %v5152_v40, %s7036_s14 }
 0x670   : > { %v4613_v21 = vpop.f32.mrf.mxu0 }
 0x671   : > { %v4614_v6 = vadd.f32 %v4613_v21, %v4566_v39 }
 0x674   : > { %v4643_v5 = vpop.f32.mrf.mxu1 }
 0x675   : > { %v4644_v58 = vadd.f32 %v4643_v5, %v4614_v6 }
 0x677   : > { %v5148_v3 = vmax.f32 %v4644_v58, 0.0  ;;  %5193 = vrot.lane.b32.xlu0 %v5152_v40, %s7026_s7  ;;  %5262 = vrot.lane.b32.xlu1 %v5152_v40, %s7038_s27  ;;  %v4677_v51 = vpop.f32.mrf.mxu2 }
 0x678   : > { %v4678_v12 = vadd.f32 %v4677_v51, %v10516_v26 }
 0x679   : > { %v5153_v29 = vmul.f32 %v6987_v22, %v5148_v3 }
 0x67b   : > { %5315 = vrot.lane.b32.xlu2 %v5153_v29, %s7035_s13 }
 0x67f   : > { %5332 = vrot.lane.b32.xlu0 %v5152_v40, %s7040_s29  ;;  %5264 = vrot.lane.b32.xlu1 %v5153_v29, %s7038_s27 }
 0x681   : > { %v4743_v14 = vpop.f32.mrf.mxu3 }
 0x682   : > { %v4744_v61 = vadd.f32 %v4743_v14, %v4678_v12 }
 0x683   : > { %5298 = vrot.lane.b32.xlu2 %v5153_v29, %s7039_s28 }
 0x684   : > { %v4783_v32 = vpop.f32.mrf.mxu0  ;;  %v5241_v48 = vpop.permute.xlu2 %5240 }
 0x685   : > { %v4784_v7 = vadd.f32 %v4783_v32, %v4744_v61 }
 0x686   : > { %v5224_v18 = vpop.permute.xlu1 %5223 }
 0x687   : > { %5244 = vrot.lane.b32.xlu0 %v5153_v29, %s7031_s12  ;;  %5212 = vrot.lane.b32.xlu1 %v5153_v29, %s7037_s26 }
 0x688   : > { %v4815_v13 = vpop.f32.mrf.mxu1 }
 0x689   : > { %v4816_v9 = vadd.f32 %v4815_v13, %v4784_v7 }
 0x68b   : > { %5281 = vrot.lane.b32.xlu2 %v5153_v29, %s7036_s14  ;;  %v4863_v35 = vpop.f32.mrf.mxu2 }
 0x68c   : > { %v4864_v41 = vadd.f32 %v4863_v35, %v4816_v9 }
 0x68d   : > { %v5226_v57 = vpop.permute.xlu2 %5225 }
 0x68e   : > { %v5235_v53 = vsel %vm349_vm2, %v5224_v18, %v5226_v57 }
 0x68f   : > { %5195 = vrot.lane.b32.xlu0 %v5153_v29, %s7026_s7  ;;  %5334 = vrot.lane.b32.xlu1 %v5153_v29, %s7040_s29  ;;  %v5207_v60 = vpop.permute.xlu1 %5206 }
 0x693   : > { %5229 = vrot.lane.b32.xlu2 %v5153_v29, %s7030_s11  ;;  %v10628_v36 = vpop.permute.xlu0 %5328  ;;  %v4927_v52 = vpop.f32.mrf.mxu0 }
 0x694   : > { %v4928_v45 = vadd.f32 %v4927_v52, %v10516_v26 }
 0x695   : > { %v4893_v34 = vpop.f32.mrf.mxu3  ;;  %v5209_v24 = vpop.permute.xlu2 %5208 }
 0x696   : > { %v4894_v30 = vadd.f32 %v4893_v34, %v4864_v41  ;;  %v5218_v39 = vsel %vm3574_vm12, %v5207_v60, %v5209_v24 }
 0x697   : > { %v5190_v56 = vpop.permute.xlu1 %5189 }
 0x698   : > { %v5149_v11 = vmax.f32 %v4894_v30, 0.0 }
 0x69a   : > { %v10622_v31 = vmul.f32 %v6988_v8, %v5149_v11 }
 0x69c   : > { %5300 = vrot.lane.b32.xlu2 %v10622_v31, %s7039_s28  ;;  %5283 = vrot.lane.b32.xlu0 %v10622_v31, %s7036_s14  ;;  %v4993_v28 = vpop.f32.mrf.mxu1  ;;  %v5312_v54 = vpop.permute.xlu0 %5311 }
 0x69d   : > { %5317 = vrot.lane.b32.xlu1 %v10622_v31, %s7035_s13  ;;  %v4994_v25 = vadd.f32 %v4993_v28, %v4928_v45  ;;  %v5192_v40 = vpop.permute.xlu2 %5191 }
 0x69e   : > { %v5201_v3 = vsel %vm274_vm6, %v5190_v56, %v5192_v40 }
 0x69f   : > { %v10652_v20 = vpop.permute.xlu1 %5270 }
 0x6a0   : > { %v5033_v44 = vpop.f32.mrf.mxu2 }
 0x6a1   : > { %v5034_v55 = vadd.f32 %v5033_v44, %v4994_v25 }
 0x6a4   : > { %5266 = vrot.lane.b32.xlu2 %v10622_v31, %s7038_s27  ;;  %5214 = vrot.lane.b32.xlu0 %v10622_v31, %s7037_s26  ;;  %v5295_v0 = vpop.permute.xlu0 %5294 }
 0x6a5   : > { %5246 = vrot.lane.b32.xlu1 %v10622_v31, %s7031_s12 }
 0x6a6   : > { %v5113_v16 = vpop.f32.mrf.mxu0 }
 0x6a7   : > { %v10664_v37 = vpop.permute.xlu1 %5434 }
 0x6a9   : > { %v5065_v63 = vpop.f32.mrf.mxu3 }
 0x6aa   : > { %v5066_v42 = vadd.f32 %v5065_v63, %v5034_v55 }
 0x6ac   : > { %v5114_v26 = vadd.f32 %v5113_v16, %v5066_v42  ;;  %5231 = vrot.lane.b32.xlu2 %v10622_v31, %s7030_s11  ;;  %v5278_v2 = vpop.permute.xlu0 %5277 }
 0x6ad   : > { %5197 = vrot.lane.b32.xlu1 %v10622_v31, %s7026_s7 }
 0x6af   : > { %v5143_v50 = vpop.f32.mrf.mxu1  ;;  %v10669_v38 = vpop.permute.xlu1 %5330 }
 0x6b0   : > { %v5144_v15 = vadd.f32 %v5143_v50, %v5114_v26 }
 0x6b2   : > { %v5150_v47 = vmax.f32 %v5144_v15, 0.0 }
 0x6b4   : > { %v10650_v62 = vmul.f32 %v6989_v33, %v5150_v47  ;;  %v5261_v19 = vpop.permute.xlu0 %5260 }
 0x6b6   : > { %5285 = vrot.lane.b32.xlu0 %v10650_v62, %s7036_s14  ;;  %5319 = vrot.lane.b32.xlu2 %v10650_v62, %s7035_s13 }
 0x6b7   : > { %5302 = vrot.lane.b32.xlu1 %v10650_v62, %s7039_s28 }
 0x6be   : > { %5199 = vrot.lane.b32.xlu0 %v10650_v62, %s7026_s7  ;;  %5268 = vrot.lane.b32.xlu2 %v10650_v62, %s7038_s27 }
 0x6c6   : > { %5388 = vrot.lane.b32.xlu0 %v5261_v19, %s7040_s29  ;;  %5248 = vrot.lane.b32.xlu2 %v10650_v62, %s7031_s12 }
 0x6ce   : > { %5376 = vrot.lane.b32.xlu0 %v5241_v48, %s7040_s29  ;;  %5233 = vrot.lane.b32.xlu2 %v10650_v62, %s7030_s11 }
 0x6d1   : > { %v10674_v4 = vpop.permute.xlu0 %5242  ;;  %v5314_v49 = vpop.permute.xlu1 %5313 }
 0x6d2   : > { %v5323_v21 = vsel %vm3683_vm10, %v5312_v54, %v5314_v49  ;;  %v5250_v7 = vsel %vm385_vm0, %v5241_v48, %v10674_v4 }
 0x6d5   : > { %v5316_v10 = vpop.permute.xlu2 %5315 }
 0x6d6   : > { %5364 = vrot.lane.b32.xlu0 %v5235_v53, %s7040_s29  ;;  %5216 = vrot.lane.b32.xlu2 %v10650_v62, %s7037_s26  ;;  %v5324_v35 = vsel %vm3683_vm10, %v5314_v49, %v5316_v10 }
 0x6d9   : > { %v5228_v27 = vpop.permute.xlu0 %5227  ;;  %v5297_v43 = vpop.permute.xlu1 %5296 }
 0x6da   : > { %v5306_v59 = vsel %vm3665_vm11, %v5295_v0, %v5297_v43  ;;  %v5236_v30 = vsel %vm349_vm2, %v5226_v57, %v5228_v27 }
 0x6db   : > { %5412 = vrot.lane.b32.xlu1 %v5306_v59, %s7040_s29 }
 0x6dd   : > { %v5299_v58 = vpop.permute.xlu2 %5298 }
 0x6de   : > { %5352 = vrot.lane.b32.xlu0 %v5218_v39, %s7040_s29  ;;  %5424 = vrot.lane.b32.xlu2 %v5323_v21, %s7040_s29  ;;  %v5307_v22 = vsel %vm3665_vm11, %v5297_v43, %v5299_v58 }
 0x6e1   : > { %v5211_v6 = vpop.permute.xlu0 %5210  ;;  %v5280_v5 = vpop.permute.xlu1 %5279 }
 0x6e2   : > { %v5289_v14 = vsel %vm3647_vm14, %v5278_v2, %v5280_v5  ;;  %v5219_v52 = vsel %vm3574_vm12, %v5209_v24, %v5211_v6 }
 0x6e5   : > { %v5282_v61 = vpop.permute.xlu2 %5281 }
 0x6e6   : > { %5340 = vrot.lane.b32.xlu0 %v5201_v3, %s7040_s29  ;;  %5414 = vrot.lane.b32.xlu2 %v5307_v22, %s7040_s29  ;;  %v5290_v42 = vsel %vm3647_vm14, %v5280_v5, %v5282_v61 }
 0x6e9   : > { %v5263_v29 = vpop.permute.xlu1 %5262  ;;  %v5194_v12 = vpop.permute.xlu0 %5193 }
 0x6ea   : > { %v5272_v51 = vsel %vm3629_vm13, %v5261_v19, %v5263_v29  ;;  %v5202_v25 = vsel %vm274_vm6, %v5192_v40, %v5194_v12 }
 0x6eb   : > { %5390 = vrot.lane.b32.xlu1 %v5272_v51, %s7040_s29 }
 0x6ed   : > { %v5230_v41 = vpop.permute.xlu2 %5229 }
 0x6ee   : > { %5400 = vrot.lane.b32.xlu0 %v5289_v14, %s7040_s29  ;;  %v5237_v11 = vsel %vm349_vm2, %v5228_v27, %v5230_v41 }
 0x6f1   : > { %v5265_v32 = vpop.permute.xlu1 %5264  ;;  %v10700_v9 = vpop.permute.xlu0 %5332 }
 0x6f2   : > { %v5273_v13 = vsel %vm3629_vm13, %v5263_v29, %v5265_v32 }
 0x6f3   : > { %5378 = vrot.lane.b32.xlu1 %v5250_v7, %s7040_s29  ;;  %5392 = vrot.lane.b32.xlu2 %v5273_v13, %s7040_s29 }
 0x6f6   : > { %5426 = vrot.lane.b32.xlu0 %v5324_v35, %s7040_s29  ;;  %v5301_v60 = vpop.permute.xlu2 %5300 }
 0x6f7   : > { %v5308_v28 = vsel %vm3665_vm11, %v5299_v58, %v5301_v60 }
 0x6f9   : > { %v5213_v34 = vpop.permute.xlu1 %5212  ;;  %v5245_v8 = vpop.permute.xlu0 %5244 }
 0x6fa   : > { %v5220_v18 = vsel %vm3574_vm12, %v5211_v6, %v5213_v34  ;;  %v5251_v0 = vsel %vm385_vm0, %v10674_v4, %v5245_v8 }
 0x6fb   : > { %5366 = vrot.lane.b32.xlu1 %v5236_v30, %s7040_s29  ;;  %5356 = vrot.lane.b32.xlu2 %v5220_v18, %s7040_s29 }
 0x6fe   : > { %5368 = vrot.lane.b32.xlu0 %v5237_v11, %s7040_s29  ;;  %v5267_v54 = vpop.permute.xlu2 %5266 }
 0x6ff   : > { %v5274_v55 = vsel %vm3629_vm13, %v5265_v32, %v5267_v54 }
 0x701   : > { %v10712_v45 = vpop.permute.xlu1 %5334  ;;  %v5196_v44 = vpop.permute.xlu0 %5195 }
 0x702   : > { %v5203_v19 = vsel %vm274_vm6, %v5194_v12, %v5196_v44 }
 0x703   : > { %5354 = vrot.lane.b32.xlu1 %v5219_v52, %s7040_s29 }
 0x706   : > { %5416 = vrot.lane.b32.xlu0 %v5308_v28, %s7040_s29  ;;  %v5232_v26 = vpop.permute.xlu2 %5231 }
 0x707   : > { %v5238_v43 = vsel %vm349_vm2, %v5230_v41, %v5232_v26 }
 0x70b   : > { %5342 = vrot.lane.b32.xlu1 %v5202_v25, %s7040_s29 }
 0x70e   : > { %5394 = vrot.lane.b32.xlu0 %v5274_v55, %s7040_s29  ;;  %v5284_v56 = vpop.permute.xlu0 %5283 }
 0x70f   : > { %v5318_v63 = vpop.permute.xlu1 %5317  ;;  %v5291_v49 = vsel %vm3647_vm14, %v5282_v61, %v5284_v56 }
 0x710   : > { %v5325_v16 = vsel %vm3683_vm10, %v5316_v10, %v5318_v63  ;;  %v5320_v47 = vpop.permute.xlu2 %5319 }
 0x711   : > { %5428 = vrot.lane.b32.xlu2 %v5325_v16, %s7040_s29  ;;  %v5326_v24 = vsel %vm3683_vm10, %v5318_v63, %v5320_v47  ;;  %v5327_v39 = vsel %vm3683_vm10, %v5320_v47, %v10581_v46 }
 0x713   : > { %5402 = vrot.lane.b32.xlu1 %v5290_v42, %s7040_s29 }
 0x716   : > { %v5215_v48 = vpop.permute.xlu0 %5214 }
 0x717   : > { %v5247_v50 = vpop.permute.xlu1 %5246  ;;  %v5221_v2 = vsel %vm3574_vm12, %v5213_v34, %v5215_v48 }
 0x718   : > { %v5252_v15 = vsel %vm385_vm0, %v5245_v8, %v5247_v50  ;;  %v5269_v4 = vpop.permute.xlu2 %5268 }
 0x719   : > { %5382 = vrot.lane.b32.xlu2 %v5252_v15, %s7040_s29  ;;  %v5275_v3 = vsel %vm3629_vm13, %v5267_v54, %v5269_v4 }
 0x71b   : > { %5380 = vrot.lane.b32.xlu1 %v5251_v0, %s7040_s29 }
 0x71f   : > { %v5198_v33 = vpop.permute.xlu1 %5197 }
 0x720   : > { %v5204_v57 = vsel %vm274_vm6, %v5196_v44, %v5198_v33  ;;  %v5249_v59 = vpop.permute.xlu2 %5248 }
 0x721   : > { %5358 = vrot.lane.b32.xlu2 %v5221_v2, %s7040_s29  ;;  %5346 = vrot.lane.b32.xlu0 %v5204_v57, %s7040_s29  ;;  %v5253_v22 = vsel %vm385_vm0, %v5247_v50, %v5249_v59  ;;  %v6916_v2 = vld [vmem:[%s11727_s2 + $0x18] sm:$0xff] }
 0x723   : > { %5344 = vrot.lane.b32.xlu1 %v5203_v19, %s7040_s29 }
 0x728   : > { %v5286_v40 = vpop.permute.xlu0 %5285  ;;  %v5234_v58 = vpop.permute.xlu2 %5233 }
 0x729   : > { %5410 = vrot.lane.b32.xlu2 %v10641_v23, %s7040_s29  ;;  %5430 = vrot.lane.b32.xlu0 %v5326_v24, %s7040_s29  ;;  %v5303_v53 = vpop.permute.xlu1 %5302  ;;  %v5292_v5 = vsel %vm3647_vm14, %v5284_v56, %v5286_v40  ;;  %v5293_v46 = vsel %vm3647_vm14, %v5286_v40, %v10641_v23  ;;  %v5239_v51 = vsel %vm349_vm2, %v5232_v26, %v5234_v58 }
 0x72a   : > { %v5309_v10 = vsel %vm3665_vm11, %v5301_v60, %v5303_v53  ;;  %v5310_v21 = vsel %vm3665_vm11, %v5303_v53, %v10632_v1  ;;  %v5276_v23 = vsel %vm3629_vm13, %v5269_v4, %v10652_v20 }
 0x72b   : > { %5404 = vrot.lane.b32.xlu1 %v5291_v49, %s7040_s29  ;;  %v5527_v49 = vsel %vm595_vm9, %v6916_v2, 0 }
 0x730   : > { %v5200_v27 = vpop.permute.xlu0 %5199 }
 0x731   : > { %5418 = vrot.lane.b32.xlu2 %v5309_v10, %s7040_s29  ;;  %5422 = vrot.lane.b32.xlu0 %v10632_v1, %s7040_s29  ;;  %v5217_v1 = vpop.permute.xlu2 %5216  ;;  %v5205_v61 = vsel %vm274_vm6, %v5198_v33, %v5200_v27 }
 0x732   : > { %v5222_v12 = vsel %vm3574_vm12, %v5215_v48, %v5217_v1 }
 0x733   : > { %5370 = vrot.lane.b32.xlu1 %v5238_v43, %s7040_s29 }
 0x738   : > { %v10750_v6 = vpop.permute.xlu0 %5388 }
 0x739   : > { %5432 = vrot.lane.b32.xlu2 %v5327_v39, %s7040_s29  ;;  %5420 = vrot.lane.b32.xlu0 %v5310_v21, %s7040_s29  ;;  %v5425_v13 = vpop.permute.xlu2 %5424 }
 0x73b   : > { %5406 = vrot.lane.b32.xlu1 %v5292_v5, %s7040_s29 }
 0x740   : > { %v5377_v29 = vpop.permute.xlu0 %5376 }
 0x741   : > { %5396 = vrot.lane.b32.xlu2 %v5275_v3, %s7040_s29  ;;  %5384 = vrot.lane.b32.xlu0 %v5253_v22, %s7040_s29  ;;  %v5415_v34 = vpop.permute.xlu2 %5414  ;;  %v10868_v3 = vand.u32 4294901760, %v5527_v49 }
 0x743   : > { %5408 = vrot.lane.b32.xlu1 %v5293_v46, %s7040_s29  ;;  %v5436_v46 = vsel %vm3802_vm15, %v10628_v36, %v10669_v38 }
 0x748   : > { %v5365_v14 = vpop.permute.xlu0 %5364 }
 0x749   : > { %5386 = vrot.lane.b32.xlu0 %v5249_v59, %s7040_s29  ;;  %5372 = vrot.lane.b32.xlu2 %v5239_v51, %s7040_s29 }
 0x74b   : > { %5360 = vrot.lane.b32.xlu1 %v5222_v12, %s7040_s29 }
 0x74d   : > { %v5413_v7 = vpop.permute.xlu1 %5412  ;;  %v10802_v25 = vpop.permute.xlu2 %5392 }
 0x74e   : > { %v5471_v20 = vsel %vm3802_vm15, %v5413_v7, %v5415_v34  ;;  %v10898_v7 = vand.u32 4294901760, %v5436_v46 }
 0x74f   : > { %v10786_v18 = vand.u32 4294901760, %v5471_v20 }
 0x750   : > { %v5353_v32 = vpop.permute.xlu0 %5352 }
 0x751   : > { %5348 = vrot.lane.b32.xlu0 %v5205_v61, %s7040_s29  ;;  %5336 = vrot.lane.b32.xlu2 %v10622_v31, %s7040_s29  ;;  %v6919_v31 = vld [vmem:[%s11728_s3 + $0x28] sm:$0xff]  ;;  %v10791_v8 = vsub.f32 %v5471_v20, %v10786_v18 }
 0x753   : > { %5398 = vrot.lane.b32.xlu1 %v5276_v23, %s7040_s29  ;;  %v10896_v23 = vsub.f32 %v5527_v49, %v10868_v3 }
 0x755   : > { %v10819_v50 = vpop.permute.xlu2 %5356 }
 0x758   : > { %v5341_v35 = vpop.permute.xlu0 %5340 }
 0x759   : > { %5350 = vrot.lane.b32.xlu0 %v5200_v27, %s7040_s29  ;;  %5362 = vrot.lane.b32.xlu2 %v5217_v1, %s7040_s29 }
 0x75b   : > { %5374 = vrot.lane.b32.xlu1 %v5234_v58, %s7040_s29 }
 0x75d   : > { %v10778_v41 = vpop.permute.xlu1 %5390 }
 0x75e   : > { %v5461_v48 = vsel %vm3802_vm15, %v10750_v6, %v10778_v41 }
 0x75f   : > { %v10835_v57 = vand.u32 4294901760, %v5461_v48 }
 0x760   : > { %v5401_v30 = vpop.permute.xlu0 %5400 }
 0x761   : > { %6786 = vperm.xlu2 %6972, %v6919_v31   ;;  %v10847_v53 = vsub.f32 %v5461_v48, %v10835_v57 }
 0x763   : > { %5338 = vrot.lane.b32.xlu1 %v10650_v62, %s7040_s29  ;;  %v5578_v62 = vand.u32 4294901760, %v10791_v8 }
 0x765   : > { %v10788_v11 = vpop.permute.xlu1 %5378  ;;  %v5579_v16 = vsub.f32 %v10791_v8, %v5578_v62 }
 0x766   : > { %v5456_v33 = vsel %vm3802_vm15, %v5377_v29, %v10788_v11 }
 0x767   : > { %v5580_v56 = vand.u32 4294901760, %v5579_v16  ;;  %v10841_v40 = vand.u32 4294901760, %v5456_v33 }
 0x768   : > { %v5427_v60 = vpop.permute.xlu0 %5426 }
 0x769   : > { %v5476_v52 = vsel %vm3802_vm15, %v5425_v13, %v5427_v60  ;;  %v10862_v6 = vsub.f32 %v5456_v33, %v10841_v40  ;;  %v10935_v33 = vand.u32 4294901760, %v10896_v23 }
 0x76a   : > { %v10794_v28 = vand.u32 4294901760, %v5476_v52 }
 0x76b   : > { %v10828_v47 = vpop.permute.xlu2 %5428 }
 0x76c   : > { %v10797_v44 = vsub.f32 %v5476_v52, %v10794_v28  ;;  %5537 = vmatpush.msra.mxu2 %v10794_v28  ;;  %5677 = vmatpush.msrb.mxu1 %v10794_v28  ;;  %v5477_v19 = vsel %vm3802_vm15, %v5427_v60, %v10828_v47 }
 0x76d   : > { %v10804_v54 = vpop.permute.xlu1 %5366  ;;  %v10849_v10 = vand.u32 4294901760, %v5477_v19 }
 0x76e   : > { %v5572_v55 = vand.u32 4294901760, %v10797_v44  ;;  %5539 = vmatpush.msra.mxu2 %v10786_v18  ;;  %5638 = vmatpush.msrb.mxu0 %v10797_v44  ;;  %v5451_v4 = vsel %vm3802_vm15, %v5365_v14, %v10804_v54  ;;  %v5590_v14 = vand.u32 4294901760, %v10847_v53 }
 0x76f   : > { %5679 = vmatpush.msrb.mxu1 %v10786_v18  ;;  %v10857_v39 = vand.u32 4294901760, %v5451_v4  ;;  %v10878_v1 = vsub.f32 %v5477_v19, %v10849_v10 }
 0x770   : > { %v5573_v63 = vsub.f32 %v10797_v44, %v5572_v55  ;;  %5641 = vmatpush.msrb.mxu0 %v10791_v8  ;;  %v10821_v15 = vpop.permute.xlu0 %5368  ;;  %v5591_v20 = vsub.f32 %v10847_v53, %v5590_v14 }
 0x771   : > { %v10887_v12 = vsub.f32 %v5451_v4, %v10857_v39  ;;  %v11751_v31 = vand.u32 4294901760, %v10878_v1 }
 0x772   : > { %v5574_v42 = vand.u32 4294901760, %v5573_v63  ;;  %v5592_v19 = vand.u32 4294901760, %v5591_v20 }
 0x773   : > { %v5602_v52 = vand.u32 4294901760, %v10887_v12  ;;  %v5823_v2 = vsub.f32 %v10878_v1, %v11751_v31  ;;  %v10941_v4 = vpop.permute.xlu2 %5382 }
 0x774   : > { %5575 = vmatpush.msra.mxu3 %v5574_v42  ;;  %v10929_v42 = vsub.f32 %v5436_v46, %v10898_v7 }
 0x775   : > { %v10817_v26 = vpop.permute.xlu1 %5354  ;;  %v5603_v49 = vsub.f32 %v10887_v12, %v5602_v52 }
 0x776   : > { %5581 = vmatpush.msra.mxu3 %v5580_v56  ;;  %v5446_v43 = vsel %vm3802_vm15, %v5353_v32, %v10817_v26  ;;  %v5596_v32 = vand.u32 4294901760, %v10862_v6  ;;  %v5620_v46 = vand.u32 4294901760, %v10929_v42 }
 0x777   : > { %v10872_v29 = vand.u32 4294901760, %v5446_v43 }
 0x778   : > { %v10839_v24 = vpop.permute.xlu0 %5416  ;;  %v5597_v16 = vsub.f32 %v10862_v6, %v5596_v32 }
 0x779   : > { %v5472_v27 = vsel %vm3802_vm15, %v5415_v34, %v10839_v24 }
 0x77a   : > { %v10870_v22 = vand.u32 4294901760, %v5472_v27 }
 0x77c   : > { %v10901_v13 = vsub.f32 %v5472_v27, %v10870_v22 }
 0x77d   : > { %v10823_v0 = vpop.permute.xlu1 %5342 }
 0x77e   : > { %v5441_v5 = vsel %vm3802_vm15, %v5341_v35, %v10823_v0  ;;  %v10904_v35 = vsub.f32 %v5446_v43, %v10872_v29  ;;  %v11750_v56 = vand.u32 4294901760, %v10901_v13  ;;  %v5598_v43 = vand.u32 4294901760, %v5597_v16 }
 0x77f   : > { %v10889_v61 = vand.u32 4294901760, %v5441_v5  ;;  %v5824_v16 = vand.u32 4294901760, %v5823_v2 }
 0x780   : > { %v11752_v48 = vand.u32 4294901760, %v10904_v35  ;;  %v10961_v20 = vpop.permute.xlu0 %5394 }
 0x781   : > { %v10919_v60 = vsub.f32 %v5441_v5, %v10889_v61 }
 0x782   : > { %v5609_v5 = vsub.f32 %v10904_v35, %v11752_v48 }
 0x783   : > { %v11753_v27 = vand.u32 4294901760, %v10919_v60 }
 0x785   : > { %v10855_v59 = vpop.permute.xlu1 %5402  ;;  %v5615_v31 = vsub.f32 %v10919_v60, %v11753_v27 }
 0x786   : > { %v5466_v21 = vsel %vm3802_vm15, %v5401_v30, %v10855_v59 }
 0x787   : > { %v10866_v58 = vand.u32 4294901760, %v5466_v21  ;;  %v5616_v44 = vand.u32 4294901760, %v5615_v31 }
 0x789   : > { %v10881_v51 = vsub.f32 %v5466_v21, %v10866_v58  ;;  %5541 = vmatpush.msra.mxu2 %v10866_v58  ;;  %5681 = vmatpush.msrb.mxu1 %v10866_v58  ;;  %v5829_v21 = vsub.f32 %v10901_v13, %v11750_v56  ;;  %v5604_v56 = vand.u32 4294901760, %v5603_v49 }
 0x78b   : > { %5543 = vmatpush.msra.mxu2 %v10835_v57  ;;  %5644 = vmatpush.msrb.mxu0 %v10881_v51  ;;  %v5584_v36 = vand.u32 4294901760, %v10881_v51  ;;  %v5830_v2 = vand.u32 4294901760, %v5829_v21 }
 0x78c   : > { %5683 = vmatpush.msrb.mxu1 %v10835_v57 }
 0x78d   : > { %v10908_v34 = vpop.permute.xlu1 %5380  ;;  %5545 = vmatpush.msra.mxu2 %v10841_v40  ;;  %5647 = vmatpush.msrb.mxu0 %v10847_v53  ;;  %v5585_v30 = vsub.f32 %v10881_v51, %v5584_v36 }
 0x78e   : > { %5685 = vmatpush.msrb.mxu1 %v10841_v40  ;;  %v5457_v27 = vsel %vm3802_vm15, %v10788_v11, %v10908_v34 }
 0x78f   : > { %5547 = vmatpush.msra.mxu2 %v10857_v39  ;;  %5650 = vmatpush.msrb.mxu0 %v10862_v6  ;;  %v5586_v63 = vand.u32 4294901760, %v5585_v30  ;;  %v5557_v30 = vsub.f32 %v10896_v23, %v10935_v33  ;;  %v10998_v11 = vand.u32 4294901760, %v5457_v27  ;;  %v5437_v6 = vsel %vm3802_vm15, %v10669_v38, %v10700_v9 }
 0x790   : > { %5687 = vmatpush.msrb.mxu1 %v10857_v39 }
 0x791   : > { %5549 = vmatpush.msra.mxu2 %v10872_v29  ;;  %5587 = vmatpush.msra.mxu3 %v5586_v63  ;;  %v10980_v48 = vand.u32 4294901760, %v5557_v30  ;;  %v11026_v53 = vsub.f32 %v5457_v27, %v10998_v11  ;;  %v11774_v27 = vand.u32 4294901760, %v10904_v35  ;;  %v11775_v30 = vand.u32 4294901760, %v10919_v60 }
 0x792   : > { %5653 = vmatpush.msrb.mxu0 %v10887_v12  ;;  %5689 = vmatpush.msrb.mxu1 %v10872_v29 }
 0x793   : > { %5551 = vmatpush.msra.mxu2 %v10889_v61  ;;  %5593 = vmatpush.msra.mxu3 %v5592_v19  ;;  %v5462_v19 = vsel %vm3802_vm15, %v10778_v41, %v10802_v25  ;;  %v5621_v41 = vsub.f32 %v10929_v42, %v5620_v46  ;;  %v11004_v31 = vpop.permute.xlu0 %5346  ;;  %v5846_v12 = vand.u32 4294901760, %v11026_v53 }
 0x794   : > { %5656 = vmatpush.msrb.mxu0 %v10904_v35  ;;  %5691 = vmatpush.msrb.mxu1 %v10889_v61  ;;  %v10982_v49 = vand.u32 4294901760, %v5462_v19 }
 0x795   : > { %v10963_v63 = vpop.permute.xlu1 %5344  ;;  %5553 = vmatpush.msra.mxu2 %v10898_v7  ;;  %5599 = vmatpush.msra.mxu3 %v5598_v43  ;;  %v5610_v43 = vand.u32 4294901760, %v5609_v5  ;;  %v5622_v8 = vand.u32 4294901760, %v5621_v41  ;;  %v5847_v41 = vsub.f32 %v11026_v53, %v5846_v12 }
 0x796   : > { %5659 = vmatpush.msrb.mxu0 %v10919_v60  ;;  %5693 = vmatpush.msrb.mxu1 %v10898_v7 }
 0x797   : > { %5711 = vmatpush.msrb.mxu2 %v5572_v55  ;;  %5605 = vmatpush.msra.mxu3 %v5604_v56  ;;  %v5452_v55 = vsel %vm3802_vm15, %v10804_v54, %v10821_v15  ;;  %v10996_v56 = vpop.permute.xlu2 %5358  ;;  %v5447_v54 = vsel %vm3802_vm15, %v10817_v26, %v10819_v50  ;;  %v5442_v26 = vsel %vm3802_vm15, %v10823_v0, %v10963_v63 }
 0x798   : > { %5825 = vmatpush.msra.mxu1 %v5824_v16  ;;  %5662 = vmatpush.msrb.mxu0 %v10929_v42  ;;  %v11018_v21 = vand.u32 4294901760, %v5452_v55 }
 0x799   : > { %5715 = vmatpush.msrb.mxu2 %v5578_v62  ;;  %5611 = vmatpush.msra.mxu3 %v5610_v43  ;;  %v11002_v62 = vsub.f32 %v5462_v19, %v10982_v49 }
 0x79a   : > { %5787 = vmatpush.msra.mxu0 %v10849_v10  ;;  %5831 = vmatpush.msra.mxu1 %v5830_v2  ;;  %v11046_v0 = vsub.f32 %v5452_v55, %v11018_v21 }
 0x79b   : > { %5719 = vmatpush.msrb.mxu2 %v5584_v36  ;;  %5617 = vmatpush.msra.mxu3 %v5616_v44  ;;  %v11074_v2 = vpop.permute.xlu0 %5430 }
 0x79c   : > { %5789 = vmatpush.msra.mxu0 %v10870_v22  ;;  %5559 = vmatmul.f32.vlgmr.msra.gmra.mxu2 %v10980_v48  ;;  %v5852_v60 = vand.u32 4294901760, %v11046_v0 }
 0x79d   : > { %5723 = vmatpush.msrb.mxu2 %v5590_v14  ;;  %v11008_v51 = vpop.permute.xlu1 %5404  ;;  %5665 = vmatmul.f32.vlgmr.msrb.gmra.mxu0 %v10896_v23 }
 0x79e   : > { %v5467_v36 = vsel %vm3802_vm15, %v10855_v59, %v11008_v51  ;;  %5623 = vmatpush.msra.mxu3 %v5622_v8  ;;  %5697 = vmatmul.f32.vlgmr.msrb.gmra.mxu1 %v10935_v33  ;;  %v11032_v59 = vand.u32 4294901760, %v5447_v54 }
 0x79f   : > { %v11020_v5 = vand.u32 4294901760, %v5467_v36  ;;  %5727 = vmatpush.msrb.mxu2 %v5596_v32  ;;  %5625 = vmatmul.f32.vlgmr.msra.gmra.mxu3 %v10868_v3  ;;  %v11048_v32 = vand.u32 4294901760, %v5442_v26  ;;  %v11068_v16 = vpop.permute.xlu2 %5410 }
 0x7a0   : > { %5757 = vmatpush.msrb.mxu3 %v10794_v28  ;;  %v5840_v28 = vand.u32 4294901760, %v11002_v62  ;;  %v11059_v38 = vsub.f32 %v5447_v54, %v11032_v59 }
 0x7a1   : > { %v11035_v14 = vsub.f32 %v5467_v36, %v11020_v5  ;;  %5731 = vmatpush.msrb.mxu2 %v5602_v52  ;;  %5791 = vmatpush.msra.mxu0 %v11020_v5  ;;  %v11056_v52 = vand.u32 4294901760, %v5437_v6  ;;  %v11072_v19 = vsub.f32 %v5442_v26, %v11048_v32  ;;  %v5478_v26 = vsel %vm3802_vm15, %v10828_v47, %v11074_v2 }
 0x7a2   : > { %5759 = vmatpush.msrb.mxu3 %v10786_v18  ;;  %v5858_v42 = vand.u32 4294901760, %v11059_v38  ;;  %v11777_v47 = vand.u32 4294901760, %v10901_v13 }
 0x7a3   : > { %5735 = vmatpush.msrb.mxu2 %v11774_v27  ;;  %v5834_v18 = vand.u32 4294901760, %v11035_v14  ;;  %5793 = vmatpush.msra.mxu0 %v10982_v49  ;;  %v11088_v44 = vsub.f32 %v5437_v6, %v11056_v52  ;;  %v5864_v55 = vand.u32 4294901760, %v11072_v19  ;;  %v11121_v6 = vpop.permute.xlu0 %5422 }
 0x7a4   : > { %5761 = vmatpush.msrb.mxu3 %v10866_v58  ;;  %v5841_v58 = vsub.f32 %v11002_v62, %v5840_v28 }
 0x7a5   : > { %5739 = vmatpush.msrb.mxu2 %v11775_v30  ;;  %v5835_v35 = vsub.f32 %v11035_v14, %v5834_v18  ;;  %5795 = vmatpush.msra.mxu0 %v10998_v11  ;;  %v11080_v43 = vpop.permute.xlu1 %5370  ;;  %v5870_v8 = vand.u32 4294901760, %v11088_v44 }
 0x7a6   : > { %5763 = vmatpush.msrb.mxu3 %v10835_v57 }
 0x7a7   : > { %5743 = vmatpush.msrb.mxu2 %v5620_v46  ;;  %v5836_v57 = vand.u32 4294901760, %v5835_v35  ;;  %5797 = vmatpush.msra.mxu0 %v11018_v21  ;;  %v5853_v46 = vsub.f32 %v11046_v0, %v5852_v60  ;;  %v11113_v36 = vpop.permute.xlu2 %5418  ;;  %v5871_v27 = vsub.f32 %v11088_v44, %v5870_v8  ;;  %v11135_v35 = vand.u32 4294901760, %v5478_v26 }
 0x7a8   : > { %5765 = vmatpush.msrb.mxu3 %v10841_v40  ;;  %v5842_v40 = vand.u32 4294901760, %v5841_v58  ;;  %5745 = vmatmul.f32.vlgmr.msrb.gmra.mxu2 %v10868_v3 }
 0x7a9   : > { %5888 = vmatpush.msra.mxu2 %v10878_v1  ;;  %5837 = vmatpush.msra.mxu1 %v5836_v57  ;;  %v5854_v54 = vand.u32 4294901760, %v5853_v46 }
 0x7aa   : > { %5767 = vmatpush.msrb.mxu3 %v10857_v39  ;;  %5799 = vmatpush.msra.mxu0 %v11032_v59  ;;  %v5848_v39 = vand.u32 4294901760, %v5847_v41 }
 0x7ab   : > { %5891 = vmatpush.msra.mxu2 %v10901_v13  ;;  %5843 = vmatpush.msra.mxu1 %v5842_v40  ;;  %v5872_v13 = vand.u32 4294901760, %v5871_v27 }
 0x7ac   : > { %5769 = vmatpush.msrb.mxu3 %v10872_v29  ;;  %5801 = vmatpush.msra.mxu0 %v11048_v32  ;;  %v5859_v29 = vsub.f32 %v11059_v38, %v5858_v42 }
 0x7ad   : > { %5894 = vmatpush.msra.mxu2 %v11035_v14  ;;  %5849 = vmatpush.msra.mxu1 %v5848_v39  ;;  %v11776_v14 = vand.u32 4294901760, %v10878_v1  ;;  %v11127_v30 = vpop.permute.xlu1 %5406  ;;  %v5473_v1 = vsel %vm3802_vm15, %v10839_v24, %v11113_v36  ;;  %v5463_v24 = vsel %vm3802_vm15, %v10802_v25, %v10961_v20 }
 0x7ae   : > { %5771 = vmatpush.msrb.mxu3 %v10889_v61  ;;  %5803 = vmatpush.msra.mxu0 %v11056_v52  ;;  %v5865_v61 = vsub.f32 %v11072_v19, %v5864_v55  ;;  %v5468_v57 = vsel %vm3802_vm15, %v11008_v51, %v11127_v30  ;;  %v11143_v41 = vand.u32 4294901760, %v5473_v1  ;;  %v11165_v25 = vand.u32 4294901760, %v5463_v24 }
 0x7af   : > { %5897 = vmatpush.msra.mxu2 %v11002_v62  ;;  %5855 = vmatpush.msra.mxu1 %v5854_v54  ;;  %v11155_v51 = vand.u32 4294901760, %v5468_v57  ;;  %v5458_v62 = vsel %vm3802_vm15, %v10908_v34, %v10941_v4  ;;  %v5453_v34 = vsel %vm3802_vm15, %v10821_v15, %v11080_v43  ;;  %v5448_v15 = vsel %vm3802_vm15, %v10819_v50, %v10996_v56 }
 0x7b0   : > { %5773 = vmatpush.msrb.mxu3 %v10898_v7  ;;  %5961 = vmatpush.msrb.mxu0 %v11776_v14  ;;  %v5860_v7 = vand.u32 4294901760, %v5859_v29  ;;  %v5866_v58 = vand.u32 4294901760, %v5865_v61  ;;  %v5443_v50 = vsel %vm3802_vm15, %v10963_v63, %v11004_v31  ;;  %v11219_v46 = vand.u32 4294901760, %v5448_v15 }
 0x7b1   : > { %5775 = vmatmul.f32.vlgmr.msrb.gmra.mxu3 %v10868_v3  ;;  %5900 = vmatpush.msra.mxu2 %v11026_v53  ;;  %v11184_v40 = vsub.f32 %v5468_v57, %v11155_v51  ;;  %v11233_v39 = vand.u32 4294901760, %v5443_v50 }
 0x7b2   : > { %5927 = vmatpush.msra.mxu3 %v10849_v10  ;;  %5965 = vmatpush.msrb.mxu0 %v11777_v47  ;;  %v11249_v54 = vsub.f32 %v5448_v15, %v11219_v46 }
 0x7b3   : > { %5861 = vmatpush.msra.mxu1 %v5860_v7  ;;  %5903 = vmatpush.msra.mxu2 %v11046_v0  ;;  %v11189_v0 = vpop.permute.xlu2 %5432  ;;  %v11260_v14 = vsub.f32 %v5443_v50, %v11233_v39 }
 0x7b4   : > { %5929 = vmatpush.msra.mxu3 %v10870_v22  ;;  %5969 = vmatpush.msrb.mxu0 %v5834_v18  ;;  %v11152_v18 = vsub.f32 %v5478_v26, %v11135_v35 }
 0x7b5   : > { %5867 = vmatpush.msra.mxu1 %v5866_v58  ;;  %5906 = vmatpush.msra.mxu2 %v11059_v38 }
 0x7b6   : > { %5931 = vmatpush.msra.mxu3 %v11020_v5  ;;  %5973 = vmatpush.msrb.mxu0 %v5840_v28  ;;  %v11168_v28 = vsub.f32 %v5473_v1, %v11143_v41  ;;  %v6072_v53 = vand.u32 4294901760, %v11152_v18 }
 0x7b7   : > { %5873 = vmatpush.msra.mxu1 %v5872_v13  ;;  %5909 = vmatpush.msra.mxu2 %v11072_v19  ;;  %v6084_v19 = vand.u32 4294901760, %v11184_v40  ;;  %v5479_v13 = vsel %vm3802_vm15, %v11074_v2, %v11189_v0 }
 0x7b8   : > { %5933 = vmatpush.msra.mxu3 %v10982_v49  ;;  %5977 = vmatpush.msrb.mxu0 %v5846_v12  ;;  %v11174_v12 = vpop.permute.xlu0 %5420  ;;  %v6078_v38 = vand.u32 4294901760, %v11168_v28  ;;  %v11296_v15 = vand.u32 4294901760, %v5479_v13 }
 0x7b9   : > { %6007 = vmatpush.msrb.mxu1 %v10849_v10  ;;  %5912 = vmatpush.msra.mxu2 %v11088_v44  ;;  %v11178_v10 = vand.u32 4294901760, %v5458_v62 }
 0x7ba   : > { %5935 = vmatpush.msra.mxu3 %v10998_v11  ;;  %5981 = vmatpush.msrb.mxu0 %v5852_v60  ;;  %v11206_v60 = vand.u32 4294901760, %v5453_v34  ;;  %v6079_v63 = vsub.f32 %v11168_v28, %v6078_v38 }
 0x7bb   : > { %6009 = vmatpush.msrb.mxu1 %v10870_v22  ;;  %6037 = vmatpush.msrb.mxu2 %v11135_v35  ;;  %v11194_v22 = vsub.f32 %v5463_v24, %v11165_v25  ;;  %v11262_v7 = vpop.permute.xlu2 %5396  ;;  %v6114_v24 = vand.u32 4294901760, %v11260_v14 }
 0x7bc   : > { %5937 = vmatpush.msra.mxu3 %v11018_v21  ;;  %5985 = vmatpush.msrb.mxu0 %v5858_v42  ;;  %v11211_v42 = vsub.f32 %v5458_v62, %v11178_v10  ;;  %v11236_v44 = vsub.f32 %v5453_v34, %v11206_v60  ;;  %v11288_v34 = vpop.permute.xlu1 %5408 }
 0x7bd   : > { %6011 = vmatpush.msrb.mxu1 %v11020_v5  ;;  %6039 = vmatpush.msrb.mxu2 %v11143_v41  ;;  %v6073_v5 = vsub.f32 %v11152_v18, %v6072_v53 }
 0x7be   : > { %5939 = vmatpush.msra.mxu3 %v11032_v59  ;;  %5989 = vmatpush.msrb.mxu0 %v5864_v55  ;;  %v6090_v55 = vand.u32 4294901760, %v11194_v22  ;;  %v6096_v29 = vand.u32 4294901760, %v11211_v42  ;;  %v6102_v27 = vand.u32 4294901760, %v11236_v44 }
 0x7bf   : > { %6013 = vmatpush.msrb.mxu1 %v10982_v49  ;;  %6041 = vmatpush.msrb.mxu2 %v11155_v51  ;;  %v5438_v49 = vsel %vm3802_vm15, %v10700_v9, %v10712_v45  ;;  %v6074_v9 = vand.u32 4294901760, %v6073_v5  ;;  %v5474_v5 = vsel %vm3802_vm15, %v11113_v36, %v11174_v12 }
 0x7c0   : > { %5941 = vmatpush.msra.mxu3 %v11048_v32  ;;  %5915 = vmatmul.f32.vlgmr.msra.gmra.mxu2 %v10896_v23  ;;  %v11251_v61 = vpop.permute.xlu0 %5384  ;;  %v6091_v26 = vsub.f32 %v11194_v22, %v6090_v55  ;;  %v6097_v1 = vsub.f32 %v11211_v42, %v6096_v29 }
 0x7c1   : > { %5993 = vmatpush.msrb.mxu0 %v5870_v8  ;;  %6015 = vmatpush.msrb.mxu1 %v10998_v11  ;;  %v6085_v11 = vsub.f32 %v11184_v40, %v6084_v19  ;;  %v11246_v8 = vand.u32 4294901760, %v5438_v49 }
 0x7c2   : > { %6043 = vmatpush.msrb.mxu2 %v11165_v25  ;;  %5809 = vmatmul.f32.vlgmr.msra.gmra.mxu0 %v10980_v48  ;;  %v6092_v57 = vand.u32 4294901760, %v6091_v26  ;;  %v6098_v62 = vand.u32 4294901760, %v6097_v1  ;;  %v5459_v1 = vsel %vm3802_vm15, %v10941_v4, %v11251_v61 }
 0x7c3   : > { %5943 = vmatpush.msra.mxu3 %v11056_v52  ;;  %6138 = vmatpush.msra.mxu0 %v11152_v18  ;;  %v6086_v47 = vand.u32 4294901760, %v6085_v11  ;;  %v11272_v58 = vsub.f32 %v5438_v49, %v11246_v8  ;;  %v11315_v36 = vpop.permute.xlu2 %5372  ;;  %v11317_v11 = vand.u32 4294901760, %v5474_v5 }
 0x7c4   : > { %5947 = vmatmul.f32.vlgmr.msra.gmra.mxu3 %v10935_v33  ;;  %6017 = vmatpush.msrb.mxu1 %v11018_v21  ;;  %v6080_v21 = vand.u32 4294901760, %v6079_v63  ;;  %v6115_v63 = vsub.f32 %v11260_v14, %v6114_v24  ;;  %v5454_v4 = vsel %vm3802_vm15, %v11080_v43, %v11315_v36 }
 0x7c5   : > { %6045 = vmatpush.msrb.mxu2 %v11178_v10  ;;  %6075 = vmatpush.msrb.mxu3 %v6074_v9  ;;  %v6120_v2 = vand.u32 4294901760, %v11272_v58  ;;  %v5469_v9 = vsel %vm3802_vm15, %v11127_v30, %v11288_v34  ;;  %v5464_v30 = vsel %vm3802_vm15, %v10961_v20, %v11262_v7 }
 0x7c6   : > { %6141 = vmatpush.msra.mxu0 %v11168_v28  ;;  %5875 = vmatmul.f32.vlgmr.msra.gmra.mxu1 %v10868_v3  ;;  %v11332_v18 = vand.u32 4294901760, %v5469_v9  ;;  %v11341_v20 = vand.u32 4294901760, %v5464_v30  ;;  %v11344_v28 = vsub.f32 %v5474_v5, %v11317_v11 }
 0x7c7   : > { %6019 = vmatpush.msrb.mxu1 %v11032_v59  ;;  %6047 = vmatpush.msrb.mxu2 %v11206_v60  ;;  %v6108_v59 = vand.u32 4294901760, %v11249_v54  ;;  %v6121_v26 = vsub.f32 %v11272_v58, %v6120_v2 }
 0x7c8   : > { %6081 = vmatpush.msrb.mxu3 %v6080_v21  ;;  %6144 = vmatpush.msra.mxu0 %v11184_v40  ;;  %v11302_v50 = vpop.permute.xlu0 %5386  ;;  %v11354_v40 = vand.u32 4294901760, %v5459_v1  ;;  %v6328_v43 = vand.u32 4294901760, %v11344_v28 }
 0x7c9   : > { %6021 = vmatpush.msrb.mxu1 %v11048_v32  ;;  %6049 = vmatpush.msrb.mxu2 %v11219_v46  ;;  %v6103_v32 = vsub.f32 %v11236_v44, %v6102_v27 }
 0x7ca   : > { %6087 = vmatpush.msrb.mxu3 %v6086_v47  ;;  %6147 = vmatpush.msra.mxu0 %v11194_v22  ;;  %v11324_v47 = vsub.f32 %v5479_v13, %v11296_v15  ;;  %v11359_v13 = vpop.permute.xlu1 %5360  ;;  %v11366_v22 = vsub.f32 %v5464_v30, %v11341_v20 }
 0x7cb   : > { %6023 = vmatpush.msrb.mxu1 %v11056_v52  ;;  %6051 = vmatpush.msrb.mxu2 %v11233_v39  ;;  %v6109_v52 = vsub.f32 %v11249_v54, %v6108_v59  ;;  %v6104_v49 = vand.u32 4294901760, %v6103_v32 }
 0x7cc   : > { %6093 = vmatpush.msrb.mxu3 %v6092_v57  ;;  %6150 = vmatpush.msra.mxu0 %v11211_v42  ;;  %v6322_v57 = vand.u32 4294901760, %v11324_v47  ;;  %v5449_v42 = vsel %vm3802_vm15, %v10996_v56, %v11359_v13 }
 0x7cd   : > { %6177 = vmatpush.msra.mxu1 %v11135_v35  ;;  %5995 = vmatmul.f32.vlgmr.msrb.gmra.mxu0 %v10868_v3  ;;  %v6110_v21 = vand.u32 4294901760, %v6109_v52 }
 0x7ce   : > { %6053 = vmatpush.msrb.mxu2 %v11246_v8  ;;  %6099 = vmatpush.msrb.mxu3 %v6098_v62  ;;  %v6323_v32 = vsub.f32 %v11324_v47, %v6322_v57  ;;  %v11376_v62 = vand.u32 4294901760, %v5454_v4 }
 0x7cf   : > { %6153 = vmatpush.msra.mxu0 %v11236_v44  ;;  %6179 = vmatpush.msra.mxu1 %v11143_v41  ;;  %v11398_v44 = vand.u32 4294901760, %v5449_v42 }
 0x7d0   : > { %6211 = vmatpush.msra.mxu2 %v6072_v53  ;;  %6025 = vmatmul.f32.vlgmr.msrb.gmra.mxu1 %v10868_v3  ;;  %v6116_v53 = vand.u32 4294901760, %v6115_v63  ;;  %v11407_v5 = vsub.f32 %v5454_v4, %v11376_v62 }
 0x7d1   : > { %6105 = vmatpush.msrb.mxu3 %v6104_v49  ;;  %6156 = vmatpush.msra.mxu0 %v11249_v54 }
 0x7d2   : > { %6181 = vmatpush.msra.mxu1 %v11155_v51  ;;  %6215 = vmatpush.msra.mxu2 %v6078_v38  ;;  %v6122_v38 = vand.u32 4294901760, %v6121_v26  ;;  %v6352_v63 = vand.u32 4294901760, %v11407_v5 }
 0x7d3   : > { %6111 = vmatpush.msrb.mxu3 %v6110_v21  ;;  %6159 = vmatpush.msra.mxu0 %v11260_v14  ;;  %v11427_v14 = vsub.f32 %v5449_v42, %v11398_v44 }
 0x7d4   : > { %6183 = vmatpush.msra.mxu1 %v11165_v25  ;;  %6219 = vmatpush.msra.mxu2 %v6084_v19  ;;  %v11357_v19 = vsub.f32 %v5469_v9, %v11332_v18  ;;  %v6353_v30 = vsub.f32 %v11407_v5, %v6352_v63 }
 0x7d5   : > { %6117 = vmatpush.msrb.mxu3 %v6116_v53  ;;  %6162 = vmatpush.msra.mxu0 %v11272_v58  ;;  %v6358_v26 = vand.u32 4294901760, %v11427_v14 }
 0x7d6   : > { %6185 = vmatpush.msra.mxu1 %v11178_v10  ;;  %6223 = vmatpush.msra.mxu2 %v6090_v55  ;;  %v11368_v55 = vpop.permute.xlu0 %5348  ;;  %v6334_v52 = vand.u32 4294901760, %v11357_v19  ;;  %v6354_v4 = vand.u32 4294901760, %v6353_v30 }
 0x7d7   : > { %6123 = vmatpush.msrb.mxu3 %v6122_v38  ;;  %6287 = vmatpush.msrb.mxu0 %v11296_v15  ;;  %v5444_v56 = vsel %vm3802_vm15, %v11004_v31, %v11368_v55 }
 0x7d8   : > { %6187 = vmatpush.msra.mxu1 %v11206_v60  ;;  %6227 = vmatpush.msra.mxu2 %v6096_v29  ;;  %v11387_v29 = vsub.f32 %v5459_v1, %v11354_v40  ;;  %v11415_v54 = vand.u32 4294901760, %v5444_v56 }
 0x7d9   : > { %6257 = vmatpush.msra.mxu3 %v11135_v35  ;;  %6289 = vmatpush.msrb.mxu0 %v11317_v11  ;;  %v11384_v35 = vpop.permute.xlu2 %5336 }
 0x7da   : > { %6189 = vmatpush.msra.mxu1 %v11219_v46  ;;  %6231 = vmatpush.msra.mxu2 %v6102_v27  ;;  %v6340_v27 = vand.u32 4294901760, %v11366_v22  ;;  %v5439_v31 = vsel %vm3802_vm15, %v10712_v45, %v11384_v35  ;;  %v6346_v49 = vand.u32 4294901760, %v11387_v29  ;;  %v11439_v9 = vsub.f32 %v5444_v56, %v11415_v54 }
 0x7db   : > { %6259 = vmatpush.msra.mxu3 %v11143_v41  ;;  %6291 = vmatpush.msrb.mxu0 %v11332_v18  ;;  %v6329_v41 = vsub.f32 %v11344_v28, %v6328_v43  ;;  %v11424_v45 = vand.u32 4294901760, %v5439_v31 }
 0x7dc   : > { %6191 = vmatpush.msra.mxu1 %v11233_v39  ;;  %6235 = vmatpush.msra.mxu2 %v6108_v59  ;;  %v6335_v59 = vsub.f32 %v11357_v19, %v6334_v52  ;;  %v6364_v1 = vand.u32 4294901760, %v11439_v9 }
 0x7dd   : > { %6261 = vmatpush.msra.mxu3 %v11155_v51  ;;  %6293 = vmatpush.msrb.mxu0 %v11341_v20  ;;  %v6324_v51 = vand.u32 4294901760, %v6323_v32  ;;  %v5480_v32 = vsel %vm3802_vm15, %v11189_v0, %v10664_v37  ;;  %v5475_v37 = vsel %vm3802_vm15, %v11174_v12, %v11121_v6 }
 0x7de   : > { %6193 = vmatpush.msra.mxu1 %v11246_v8  ;;  %6239 = vmatpush.msra.mxu2 %v6114_v24  ;;  %v6341_v24 = vsub.f32 %v11366_v22, %v6340_v27  ;;  %v6336_v58 = vand.u32 4294901760, %v6335_v59  ;;  %v11499_v56 = vand.u32 4294901760, %v5475_v37 }
 0x7df   : > { %6263 = vmatpush.msra.mxu3 %v11165_v25  ;;  %6059 = vmatmul.f32.vlgmr.msrb.gmra.mxu2 %v10980_v48  ;;  %v6330_v25 = vand.u32 4294901760, %v6329_v41 }
 0x7e0   : > { %6295 = vmatpush.msrb.mxu0 %v11354_v40  ;;  %6325 = vmatpush.msrb.mxu1 %v6324_v51  ;;  %v6342_v21 = vand.u32 4294901760, %v6341_v24 }
 0x7e1   : > { %6243 = vmatpush.msra.mxu2 %v6120_v2  ;;  %6265 = vmatpush.msra.mxu3 %v11178_v10  ;;  %v6347_v10 = vsub.f32 %v11387_v29, %v6346_v49  ;;  %v11448_v2 = vsub.f32 %v5439_v31, %v11424_v45 }
 0x7e2   : > { %6125 = vmatmul.f32.vlgmr.msrb.gmra.mxu3 %v10868_v3  ;;  %6297 = vmatpush.msrb.mxu0 %v11376_v62 }
 0x7e3   : > { %6331 = vmatpush.msrb.mxu1 %v6330_v25  ;;  %6388 = vmatpush.msrb.mxu2 %v11324_v47  ;;  %v6348_v53 = vand.u32 4294901760, %v6347_v10  ;;  %v6370_v38 = vand.u32 4294901760, %v11448_v2  ;;  %v11486_v47 = vand.u32 4294901760, %v5480_v32 }
 0x7e4   : > { %6267 = vmatpush.msra.mxu3 %v11206_v60  ;;  %6299 = vmatpush.msrb.mxu0 %v11398_v44  ;;  %v5399_v60 = vpop.permute.xlu1 %5398 }
 0x7e5   : > { %6337 = vmatpush.msrb.mxu1 %v6336_v58  ;;  %6391 = vmatpush.msrb.mxu2 %v11344_v28  ;;  %v5470_v28 = vsel %vm3802_vm15, %v11288_v34, %v11068_v16  ;;  %v11505_v6 = vsub.f32 %v5480_v32, %v11486_v47  ;;  %v5465_v12 = vsel %vm3802_vm15, %v11262_v7, %v5399_v60 }
 0x7e6   : > { %6269 = vmatpush.msra.mxu3 %v11219_v46  ;;  %6301 = vmatpush.msrb.mxu0 %v11415_v54  ;;  %v6359_v46 = vsub.f32 %v11427_v14, %v6358_v26  ;;  %v11510_v16 = vand.u32 4294901760, %v5470_v28  ;;  %v5460_v34 = vsel %vm3802_vm15, %v11251_v61, %v11302_v50  ;;  %v11521_v7 = vsub.f32 %v5475_v37, %v11499_v56 }
 0x7e7   : > { %6343 = vmatpush.msrb.mxu1 %v6342_v21  ;;  %6394 = vmatpush.msrb.mxu2 %v11357_v19  ;;  %v11523_v19 = vand.u32 4294901760, %v5465_v12 }
 0x7e8   : > { %6271 = vmatpush.msra.mxu3 %v11233_v39  ;;  %6245 = vmatmul.f32.vlgmr.msra.gmra.mxu2 %v10868_v3  ;;  %v6365_v39 = vsub.f32 %v11439_v9, %v6364_v1  ;;  %v6360_v42 = vand.u32 4294901760, %v6359_v46  ;;  %v11532_v61 = vsub.f32 %v5470_v28, %v11510_v16 }
 0x7e9   : > { %6303 = vmatpush.msrb.mxu0 %v11424_v45  ;;  %6349 = vmatpush.msrb.mxu1 %v6348_v53  ;;  %v11546_v41 = vsub.f32 %v5465_v12, %v11523_v19 }
 0x7ea   : > { %6397 = vmatpush.msrb.mxu2 %v11366_v22  ;;  %6165 = vmatmul.f32.vlgmr.msra.gmra.mxu0 %v10896_v23  ;;  %v6366_v0 = vand.u32 4294901760, %v6365_v39  ;;  %v6572_v22 = vand.u32 4294901760, %v11505_v6  ;;  %v6584_v51 = vand.u32 4294901760, %v11532_v61 }
 0x7eb   : > { %6273 = vmatpush.msra.mxu3 %v11246_v8  ;;  %6461 = vmatpush.msra.mxu0 %v6322_v57  ;;  %v6371_v8 = vsub.f32 %v11448_v2, %v6370_v38 }
 0x7ec   : > { %6275 = vmatmul.f32.vlgmr.msra.gmra.mxu3 %v10868_v3  ;;  %6355 = vmatpush.msrb.mxu1 %v6354_v4  ;;  %v5375_v57 = vpop.permute.xlu1 %5374 }
 0x7ed   : > { %6400 = vmatpush.msrb.mxu2 %v11387_v29  ;;  %6427 = vmatpush.msrb.mxu3 %v11296_v15  ;;  %v5455_v50 = vsel %vm3802_vm15, %v11315_v36, %v5375_v57  ;;  %v5363_v29 = vpop.permute.xlu2 %5362  ;;  %v6578_v36 = vand.u32 4294901760, %v11521_v7 }
 0x7ee   : > { %6465 = vmatpush.msra.mxu0 %v6328_v43  ;;  %6197 = vmatmul.f32.vlgmr.msra.gmra.mxu1 %v10935_v33  ;;  %v6372_v43 = vand.u32 4294901760, %v6371_v8 }
 0x7ef   : > { %6361 = vmatpush.msrb.mxu1 %v6360_v42  ;;  %6403 = vmatpush.msrb.mxu2 %v11407_v5 }
 0x7f0   : > { %6429 = vmatpush.msrb.mxu3 %v11317_v11  ;;  %6469 = vmatpush.msra.mxu0 %v6334_v52  ;;  %v5351_v52 = vpop.permute.xlu0 %5350 }
 0x7f1   : > { %6367 = vmatpush.msrb.mxu1 %v6366_v0  ;;  %6406 = vmatpush.msrb.mxu2 %v11427_v14  ;;  %v5445_v31 = vsel %vm3802_vm15, %v11368_v55, %v5351_v52  ;;  %v6579_v55 = vsub.f32 %v11521_v7, %v6578_v36 }
 0x7f2   : > { %6431 = vmatpush.msrb.mxu3 %v11332_v18  ;;  %6473 = vmatpush.msra.mxu0 %v6340_v27  ;;  %v6573_v27 = vsub.f32 %v11505_v6, %v6572_v22  ;;  %v11580_v14 = vand.u32 4294901760, %v5445_v31 }
 0x7f3   : > { %6373 = vmatpush.msrb.mxu1 %v6372_v43  ;;  %6409 = vmatpush.msrb.mxu2 %v11439_v9  ;;  %v6580_v58 = vand.u32 4294901760, %v6579_v55 }
 0x7f4   : > { %6433 = vmatpush.msrb.mxu3 %v11341_v20  ;;  %6477 = vmatpush.msra.mxu0 %v6346_v49  ;;  %v5339_v5 = vpop.permute.xlu1 %5338  ;;  %v6590_v49 = vand.u32 4294901760, %v11546_v41  ;;  %v11605_v10 = vsub.f32 %v5445_v31, %v11580_v14 }
 0x7f5   : > { %6507 = vmatpush.msra.mxu1 %v11296_v15  ;;  %6412 = vmatpush.msrb.mxu2 %v11448_v2  ;;  %v11534_v15 = vand.u32 4294901760, %v5460_v34 }
 0x7f6   : > { %6435 = vmatpush.msrb.mxu3 %v11354_v40  ;;  %6481 = vmatpush.msra.mxu0 %v6352_v63 }
 0x7f7   : > { %6509 = vmatpush.msra.mxu1 %v11317_v11  ;;  %6537 = vmatpush.msra.mxu2 %v11486_v47  ;;  %v5450_v11 = vsel %vm3802_vm15, %v11359_v13, %v5363_v29  ;;  %v11560_v13 = vsub.f32 %v5460_v34, %v11534_v15 }
 0x7f8   : > { %6437 = vmatpush.msrb.mxu3 %v11376_v62  ;;  %6485 = vmatpush.msra.mxu0 %v6358_v26  ;;  %v11567_v59 = vand.u32 4294901760, %v5450_v11 }
 0x7f9   : > { %6511 = vmatpush.msra.mxu1 %v11332_v18  ;;  %6539 = vmatpush.msra.mxu2 %v11499_v56  ;;  %v11555_v18 = vand.u32 4294901760, %v5455_v50  ;;  %v6596_v24 = vand.u32 4294901760, %v11560_v13 }
 0x7fa   : > { %6439 = vmatpush.msrb.mxu3 %v11398_v44  ;;  %6489 = vmatpush.msra.mxu0 %v6364_v1  ;;  %v11594_v63 = vsub.f32 %v5450_v11, %v11567_v59  ;;  %v6614_v1 = vand.u32 4294901760, %v11605_v10 }
 0x7fb   : > { %6513 = vmatpush.msra.mxu1 %v11341_v20  ;;  %6541 = vmatpush.msra.mxu2 %v11510_v16  ;;  %v5440_v20 = vsel %vm3802_vm15, %v11384_v35, %v5339_v5  ;;  %v11583_v25 = vsub.f32 %v5455_v50, %v11555_v18  ;;  %v6585_v35 = vsub.f32 %v11532_v61, %v6584_v51 }
 0x7fc   : > { %6441 = vmatpush.msrb.mxu3 %v11415_v54  ;;  %6415 = vmatmul.f32.vlgmr.msrb.gmra.mxu2 %v10896_v23  ;;  %v11596_v9 = vand.u32 4294901760, %v5440_v20  ;;  %v6597_v26 = vsub.f32 %v11560_v13, %v6596_v24  ;;  %v6608_v60 = vand.u32 4294901760, %v11594_v63  ;;  %v6615_v4 = vsub.f32 %v11605_v10, %v6614_v1 }
 0x7fd   : > { %6493 = vmatpush.msra.mxu0 %v6370_v38  ;;  %6515 = vmatpush.msra.mxu1 %v11354_v40  ;;  %v6574_v40 = vand.u32 4294901760, %v6573_v27  ;;  %v6602_v2 = vand.u32 4294901760, %v11583_v25  ;;  %v6586_v21 = vand.u32 4294901760, %v6585_v35 }
 0x7fe   : > { %6543 = vmatpush.msra.mxu2 %v11523_v19  ;;  %6309 = vmatmul.f32.vlgmr.msrb.gmra.mxu0 %v10980_v48  ;;  %v6619_v30 = vsub.f32 %v5440_v20, %v11596_v9  ;;  %v6609_v46 = vsub.f32 %v11594_v63, %v6608_v60  ;;  %v6616_v42 = vand.u32 4294901760, %v6615_v4 }
 0x7ff   : > { %6443 = vmatpush.msrb.mxu3 %v11424_v45  ;;  %6638 = vmatpush.msrb.mxu0 %v11505_v6  ;;  %v6603_v53 = vsub.f32 %v11583_v25, %v6602_v2  ;;  %v6990_v6 = vld [vmem:[%s7099_s5] sm:$0xff] }
 0x800   : > { %6447 = vmatmul.f32.vlgmr.msrb.gmra.mxu3 %v10935_v33  ;;  %6517 = vmatpush.msra.mxu1 %v11376_v62  ;;  %v6591_v62 = vsub.f32 %v11546_v41, %v6590_v49  ;;  %v6620_v38 = vand.u32 4294901760, %v6619_v30  ;;  %v6610_v39 = vand.u32 4294901760, %v6609_v46  ;;  %v5161_v12 = vmul.f32 %v6990_v6, %v10570_v17 }
 0x801   : > { %6545 = vmatpush.msra.mxu2 %v11534_v15  ;;  %6575 = vmatpush.msra.mxu3 %v6574_v40 }
 0x802   : > { %6641 = vmatpush.msrb.mxu0 %v11521_v7  ;;  %6375 = vmatmul.f32.vlgmr.msrb.gmra.mxu1 %v10868_v3  ;;  %v6621_v32 = vsub.f32 %v6619_v30, %v6620_v38  ;;  %v11664_v7 = vpop.permute.xlu2 %6786 }
 0x803   : > { %6519 = vmatpush.msra.mxu1 %v11398_v44  ;;  %6547 = vmatpush.msra.mxu2 %v11555_v18  ;;  %v6592_v44 = vand.u32 4294901760, %v6591_v62 }
 0x804   : > { %6581 = vmatpush.msra.mxu3 %v6580_v58  ;;  %6644 = vmatpush.msrb.mxu0 %v11532_v61  ;;  %v6622_v8 = vand.u32 4294901760, %v6621_v32 }
 0x805   : > { %6521 = vmatpush.msra.mxu1 %v11415_v54  ;;  %6549 = vmatpush.msra.mxu2 %v11567_v59  ;;  %v6598_v54 = vand.u32 4294901760, %v6597_v26 }
 0x806   : > { %6587 = vmatpush.msra.mxu3 %v6586_v21  ;;  %6647 = vmatpush.msrb.mxu0 %v11546_v41  ;;  %v6994_v21 = vld [vmem:[%s7099_s5 + $0x10] sm:$0xff] }
 0x807   : > { %6523 = vmatpush.msra.mxu1 %v11424_v45  ;;  %6551 = vmatpush.msra.mxu2 %v11580_v14  ;;  %v6604_v45 = vand.u32 4294901760, %v6603_v53  ;;  %v5163_v26 = vmul.f32 %v6994_v21, %v10570_v17 }
 0x808   : > { %6593 = vmatpush.msra.mxu3 %v6592_v44  ;;  %6650 = vmatpush.msrb.mxu0 %v11560_v13  ;;  %v6992_v13 = vld [vmem:[%s7099_s5 + $0x8] sm:$0xff] }
 0x809   : > { %6677 = vmatpush.msrb.mxu1 %v11486_v47  ;;  %6495 = vmatmul.f32.vlgmr.msra.gmra.mxu0 %v10868_v3  ;;  %v5162_v31 = vmul.f32 %v6992_v13, %v10570_v17  ;;  %v6836_v13 = vld [vmem:[%s7099_s5 + $0x10] sm:$0xff] (%p7088_p4) }
 0x80a   : > { %6553 = vmatpush.msra.mxu2 %v11596_v9  ;;  %6599 = vmatpush.msra.mxu3 %v6598_v54  ;;  %6837 = vst [vmem:[%s6819_s17 + $0x10] sm:$0xff] (%p7088_p4), %v6836_v13 }
 0x80b   : > { %6653 = vmatpush.msrb.mxu0 %v11583_v25  ;;  %6679 = vmatpush.msrb.mxu1 %v11499_v56 }
 0x80c   : > { %6711 = vmatpush.msrb.mxu2 %v6572_v22  ;;  %6525 = vmatmul.f32.vlgmr.msra.gmra.mxu1 %v10868_v3 }
 0x80d   : > { %6605 = vmatpush.msra.mxu3 %v6604_v45  ;;  %6656 = vmatpush.msrb.mxu0 %v11594_v63 }
 0x80e   : > { %6681 = vmatpush.msrb.mxu1 %v11510_v16  ;;  %6715 = vmatpush.msrb.mxu2 %v6578_v36 }
 0x80f   : > { %6611 = vmatpush.msra.mxu3 %v6610_v39  ;;  %6659 = vmatpush.msrb.mxu0 %v11605_v10 }
 0x810   : > { %6683 = vmatpush.msrb.mxu1 %v11523_v19  ;;  %6719 = vmatpush.msrb.mxu2 %v6584_v51 }
 0x811   : > { %6617 = vmatpush.msra.mxu3 %v6616_v42  ;;  %6662 = vmatpush.msrb.mxu0 %v6619_v30 }
 0x812   : > { %6685 = vmatpush.msrb.mxu1 %v11534_v15  ;;  %6723 = vmatpush.msrb.mxu2 %v6590_v49  ;;  %v6993_v49 = vld [vmem:[%s11726_s1 + $0x8] sm:$0xff] }
 0x813   : > { %6623 = vmatpush.msra.mxu3 %v6622_v8  ;;  %6559 = vmatmul.f32.vlgmr.msra.gmra.mxu2 %v10980_v48 }
 0x814   : > { %6687 = vmatpush.msrb.mxu1 %v11555_v18  ;;  %6727 = vmatpush.msrb.mxu2 %v6596_v24 }
 0x815   : > { %6757 = vmatpush.msrb.mxu3 %v11486_v47  ;;  %6665 = vmatmul.f32.vlgmr.msrb.gmra.mxu0 %v10896_v23 }
 0x816   : > { %6689 = vmatpush.msrb.mxu1 %v11567_v59  ;;  %6731 = vmatpush.msrb.mxu2 %v6602_v2 }
 0x817   : > { %6759 = vmatpush.msrb.mxu3 %v11499_v56 }
 0x818   : > { %6691 = vmatpush.msrb.mxu1 %v11580_v14  ;;  %6735 = vmatpush.msrb.mxu2 %v6608_v60 }
 0x819   : > { %6761 = vmatpush.msrb.mxu3 %v11510_v16 }
 0x81a   : > { %6693 = vmatpush.msrb.mxu1 %v11596_v9  ;;  %6739 = vmatpush.msrb.mxu2 %v6614_v1  ;;  %v6995_v1 = vld [vmem:[%s11726_s1 + $0x10] sm:$0xff] }
 0x81b   : > { %6763 = vmatpush.msrb.mxu3 %v11523_v19  ;;  %6697 = vmatmul.f32.vlgmr.msrb.gmra.mxu1 %v10935_v33  ;;  %v5666_v33 = vpop.f32.mrf.mxu0  ;;  %v5698_v0 = vpop.f32.mrf.mxu1 }
 0x81c   : > { %6625 = vmatmul.f32.vlgmr.msra.gmra.mxu3 %v10868_v3  ;;  %6743 = vmatpush.msrb.mxu2 %v6620_v38 }
 0x81d   : > { %6765 = vmatpush.msrb.mxu3 %v11534_v15  ;;  %6745 = vmatmul.f32.vlgmr.msrb.gmra.mxu2 %v10868_v3 }
 0x81f   : > { %6767 = vmatpush.msrb.mxu3 %v11555_v18  ;;  %v5560_v48 = vpop.f32.mrf.mxu2 }
 0x821   : > { %6769 = vmatpush.msrb.mxu3 %v11567_v59 }
 0x822   : > { %v5626_v23 = vpop.f32.mrf.mxu3 }
 0x823   : > { %6771 = vmatpush.msrb.mxu3 %v11580_v14  ;;  %v5627_v47 = vadd.f32 %v5626_v23, %v5560_v48 }
 0x825   : > { %6773 = vmatpush.msrb.mxu3 %v11596_v9  ;;  %v5667_v37 = vadd.f32 %v5666_v33, %v5627_v47  ;;  %v6996_v47 = vld [vmem:[%s7099_s5 + $0x18] sm:$0xff] }
 0x826   : > { %6775 = vmatmul.f32.vlgmr.msrb.gmra.mxu3 %v10868_v3  ;;  %v6991_v3 = vld [vmem:[%s11726_s1] sm:$0xff]  ;;  %v5164_v33 = vmul.f32 %v6996_v47, %v10570_v17 }
 0x827   : > { %v5699_v28 = vadd.f32 %v5698_v0, %v5667_v37 }
 0x82b   : > { %v5746_v57 = vpop.f32.mrf.mxu2 }
 0x82c   : > { %v5747_v43 = vadd.f32 %v5746_v57, %v5699_v28 }
 0x834   : > { %v5776_v56 = vpop.f32.mrf.mxu3 }
 0x835   : > { %v5777_v16 = vadd.f32 %v5776_v56, %v5747_v43  ;;  %v6997_v43 = vld [vmem:[%s11726_s1 + $0x18] sm:$0xff] }
 0x837   : > { %v6779_v34 = vadd.f32 %v5777_v16, %v5161_v12 }
 0x839   : > { %v6789_v19 = vadd.f32 %v11664_v7, %v6779_v34 }
 0x83b   : > { %v6794_v22 = vmax.f32 %v6789_v19, 0.0 }
 0x83d   : > { %v6799_v61 = vmul.f32 %v6991_v3, %v6794_v22 }
 0x83f   : > { %6920 = vst [vmem:[%s7099_s5 + $0x28] sm:$0xff] %v6799_v61  ;;  %v5810_v15 = vpop.f32.mrf.mxu0 }
 0x843   : > { %v5876_v50 = vpop.f32.mrf.mxu1  ;;  %v5916_v29 = vpop.f32.mrf.mxu2 }
 0x844   : > { %v5877_v52 = vadd.f32 %v5876_v50, %v5810_v15 }
 0x846   : > { %v5917_v11 = vadd.f32 %v5916_v29, %v5877_v52  ;;  %v6998_v29 = vld [vmem:[%s7099_s5 + $0x20] sm:$0xff] }
 0x847   : > { %v5948_v41 = vpop.f32.mrf.mxu3  ;;  %v5165_v52 = vmul.f32 %v6998_v29, %v10570_v17  ;;  %v6832_v17 = vld [vmem:[%s7099_s5] sm:$0xff] (%p7088_p4) }
 0x848   : > { %v5949_v36 = vadd.f32 %v5948_v41, %v5917_v11  ;;  %6833 = vst [vmem:[%s6819_s17] sm:$0xff] (%p7088_p4), %v6832_v17 }
 0x84a   : > { %v5996_v27 = vpop.f32.mrf.mxu0 }
 0x84b   : > { %v5997_v18 = vadd.f32 %v5996_v27, %v5949_v36 }
 0x84d   : > { %v6026_v5 = vpop.f32.mrf.mxu1 }
 0x84e   : > { %v6027_v51 = vadd.f32 %v6026_v5, %v5997_v18  ;;  %v6999_v18 = vld [vmem:[%s11726_s1 + $0x20] sm:$0xff] }
 0x850   : > { %v6780_v59 = vadd.f32 %v6027_v51, %v5162_v31  ;;  %v6838_v31 = vld [vmem:[%s7099_s5 + $0x18] sm:$0xff] (%p7088_p4)  ;;  %v6840_v51 = vld [vmem:[%s7099_s5 + $0x20] sm:$0xff] (%p7088_p4) }
 0x851   : > { %6839 = vst [vmem:[%s6819_s17 + $0x18] sm:$0xff] (%p7088_p4), %v6838_v31 }
 0x852   : > { %v6790_v20 = vadd.f32 %v11664_v7, %v6780_v59  ;;  %v6842_v59 = vld [vmem:[%s7099_s5 + $0x28] sm:$0xff] (%p7088_p4)  ;;  %6841 = vst [vmem:[%s6819_s17 + $0x20] sm:$0xff] (%p7088_p4), %v6840_v51 }
 0x853   : > { %6843 = vst [vmem:[%s6819_s17 + $0x50] sm:$0xff] (%p7088_p4), %v6842_v59 }
 0x854   : > { %v6795_v55 = vmax.f32 %v6790_v20, 0.0 }
 0x856   : > { %v6800_v14 = vmul.f32 %v6993_v49, %v6795_v55 }
 0x858   : > { %6921 = vst [vmem:[%s7099_s5 + $0x30] sm:$0xff] %v6800_v14 }
 0x85f   : > { %v6844_v20 = vld [vmem:[%s7099_s5 + $0x30] sm:$0xff] (%p7088_p4) }
 0x860   : > { %6845 = vst [vmem:[%s6819_s17 + $0x58] sm:$0xff] (%p7088_p4), %v6844_v20 }
 0x862   : > { %v6060_v25 = vpop.f32.mrf.mxu2 }
 0x865   : > { %v6126_v40 = vpop.f32.mrf.mxu3 }
 0x866   : > { %v6127_v35 = vadd.f32 %v6126_v40, %v6060_v25 }
 0x867   : > { %v6166_v24 = vpop.f32.mrf.mxu0 }
 0x868   : > { %v6167_v63 = vadd.f32 %v6166_v24, %v6127_v35 }
 0x86b   : > { %v6198_v9 = vpop.f32.mrf.mxu1  ;;  %v6246_v58 = vpop.f32.mrf.mxu2 }
 0x86c   : > { %v6199_v62 = vadd.f32 %v6198_v9, %v6167_v63 }
 0x86e   : > { %v6247_v10 = vadd.f32 %v6246_v58, %v6199_v62 }
 0x86f   : > { %v6276_v2 = vpop.f32.mrf.mxu3 }
 0x870   : > { %v6277_v30 = vadd.f32 %v6276_v2, %v6247_v10 }
 0x872   : > { %v6781_v60 = vadd.f32 %v6277_v30, %v5163_v26 }
 0x874   : > { %v6791_v44 = vadd.f32 %v11664_v7, %v6781_v60 }
 0x876   : > { %v6796_v53 = vmax.f32 %v6791_v44, 0.0 }
 0x878   : > { %v6801_v54 = vmul.f32 %v6995_v1, %v6796_v53 }
 0x87a   : > { %6922 = vst [vmem:[%s7099_s5 + $0x38] sm:$0xff] %v6801_v54 }
 0x87b   : > { %v6310_v46 = vpop.f32.mrf.mxu0 }
 0x87f   : > { %v6376_v38 = vpop.f32.mrf.mxu1  ;;  %v6416_v45 = vpop.f32.mrf.mxu2 }
 0x880   : > { %v6377_v4 = vadd.f32 %v6376_v38, %v6310_v46 }
 0x881   : > { %v6846_v55 = vld [vmem:[%s7099_s5 + $0x38] sm:$0xff] (%p7088_p4) }
 0x882   : > { %v6417_v39 = vadd.f32 %v6416_v45, %v6377_v4  ;;  %6847 = vst [vmem:[%s6819_s17 + $0x60] sm:$0xff] (%p7088_p4), %v6846_v55 }
 0x883   : > { %v6448_v32 = vpop.f32.mrf.mxu3 }
 0x884   : > { %v6449_v42 = vadd.f32 %v6448_v32, %v6417_v39 }
 0x886   : > { %v6496_v8 = vpop.f32.mrf.mxu0 }
 0x887   : > { %v6497_v23 = vadd.f32 %v6496_v8, %v6449_v42 }
 0x889   : > { %v6526_v48 = vpop.f32.mrf.mxu1 }
 0x88a   : > { %v6527_v37 = vadd.f32 %v6526_v48, %v6497_v23 }
 0x88c   : > { %v6782_v0 = vadd.f32 %v6527_v37, %v5164_v33 }
 0x88e   : > { %v6792_v28 = vadd.f32 %v11664_v7, %v6782_v0 }
 0x890   : > { %v6797_v57 = vmax.f32 %v6792_v28, 0.0 }
 0x892   : > { %v6802_v56 = vmul.f32 %v6997_v43, %v6797_v57  ;;  %v6666_v16 = vpop.f32.mrf.mxu0 }
 0x894   : > { %6923 = vst [vmem:[%s7099_s5 + $0x40] sm:$0xff] %v6802_v56 }
 0x896   : > { %v6560_v6 = vpop.f32.mrf.mxu2 }
 0x898   : > { %v6698_v19 = vpop.f32.mrf.mxu1 }
 0x89b   : > { %v6848_v49 = vld [vmem:[%s7099_s5 + $0x40] sm:$0xff] (%p7088_p4) }
 0x89c   : > { %6849 = vst [vmem:[%s6819_s17 + $0x68] sm:$0xff] (%p7088_p4), %v6848_v49 }
 0x89f   : > { %v6626_v12 = vpop.f32.mrf.mxu3 }
 0x8a0   : > { %v6627_v34 = vadd.f32 %v6626_v12, %v6560_v6  ;;  %v6746_v61 = vpop.f32.mrf.mxu2 }
 0x8a2   : > { %v6667_v22 = vadd.f32 %v6666_v16, %v6627_v34 }
 0x8a4   : > { %v6699_v3 = vadd.f32 %v6698_v19, %v6667_v22 }
 0x8a6   : > { %v6747_v15 = vadd.f32 %v6746_v61, %v6699_v3 }
 0x8a9   : > { %v6776_v50 = vpop.f32.mrf.mxu3 }
 0x8aa   : > { %v6777_v11 = vadd.f32 %v6776_v50, %v6747_v15 }
 0x8ac   : > { %v6783_v41 = vadd.f32 %v6777_v11, %v5165_v52 }
 0x8ae   : > { %v6793_v36 = vadd.f32 %v11664_v7, %v6783_v41  ;;  %v6834_v7 = vld [vmem:[%s7099_s5 + $0x8] sm:$0xff] (%p7088_p4) }
 0x8af   : > { %6835 = vst [vmem:[%s6819_s17 + $0x8] sm:$0xff] (%p7088_p4), %v6834_v7 }
 0x8b0   : > { %v6798_v27 = vmax.f32 %v6793_v36, 0.0  ;;  %6816 = sbr.rel (!%p7088_p4) target bundleno = 2237 (0x8bd), region = 44 }
 0x8b2   : > { %v6803_v5 = vmul.f32 %v6999_v18, %v6798_v27 }
 0x8b4   : > { %6924 = vst [vmem:[%s7099_s5 + $0x48] sm:$0xff] %v6803_v5 }
 0x8bb   : > { %v6850_v14 = vld [vmem:[%s7099_s5 + $0x48] sm:$0xff] }
 0x8bc   : > { %6851 = vst [vmem:[%s6819_s17 + $0x70] sm:$0xff] %v6850_v14 }
 0x8bd PF: > { %p11_p9 = scmp.ge.s32.totalorder %s7079_s19, 4   ;;  %s11778_s15 = smov %s7018_s16 }
 0x8be   : > { %s11779_s16 = smov %s7086_s22  ;;  %s11780_s17 = smov %s7079_s19 }
 0x8bf   :  { %13 = sbr.rel (!%p11_p9) target bundleno = 2 (0x2), region = 102 }

</bundles_post_ra>
